<compile_context>
chip_gen: v5e
topology: v5e:2x2
jax: 0.10.0
libtpu: 0.0.40
codegen_flags: <defaults>
</compile_context>

<pallas_src>
import functools

import jax
import jax.numpy as jnp
from jax import lax
from jax.experimental import pallas as pl
from jax.experimental.pallas import tpu as pltpu


def _round_up(a, m):
    return (a + m - 1) // m * m


# ---------------------------------------------------------------------------
# Flat padded layout: rows = [guard, top ring, H image rows, bottom ring, guard]
# cols = [left ring, W image cols, right ring, zero pad to Wr].  Wr is a
# multiple of 16 so bf16 sublane tiles stay aligned for the dy=+-Wr taps.
# ---------------------------------------------------------------------------
def _flat_dims(H, W):
    Wr = _round_up(W + 2, 16)
    return Wr, (H + 4) * Wr


def to_flat(x_nhwc):
    N, H, W, C = x_nhwc.shape
    Wr, nflat = _flat_dims(H, W)
    xp = jnp.pad(x_nhwc, ((0, 0), (2, 2), (1, Wr - W - 1), (0, 0)))
    return xp.reshape(N, nflat, C).astype(jnp.bfloat16)


def from_flat(xf, H, W):
    N, nflat, C = xf.shape
    Wr, _ = _flat_dims(H, W)
    return xf.reshape(N, H + 4, Wr, C)[:, 2:H + 2, 1:W + 1, :]


def _pick_chunk_rows(H, Wr, target_elems=2048):
    rows = max(1, min(H, target_elems // max(Wr, 1)))
    while H % rows:
        rows -= 1
    return rows


# ---------------------------------------------------------------------------
# Kernel 1: standalone 3x3 conv (stride 1, pad 1), optional fused LeakyReLU
# and optional fused residual add (long skip).  No staging copy: the 9 tap
# slices are read straight from the input block (guard rows keep them
# in-bounds; they only feed masked ring-column outputs).
# ---------------------------------------------------------------------------
def _conv3x3_kernel(*refs, H, W, Wr, chunk_rows, lrelu, has_skip):
    if has_skip:
        x_ref, s_ref, w_ref, b_ref, o_ref = refs
    else:
        x_ref, w_ref, b_ref, o_ref = refs
        s_ref = None
    cout = o_ref.shape[2]
    nflat = x_ref.shape[1]
    base = 2 * Wr                       # first interior flat index
    nint = H * Wr                       # interior extent
    ce = chunk_rows * Wr                # chunk size (multiple of 16)
    nchunks = nint // ce

    bias = b_ref[...]                                           # (1, cout) f32
    col = lax.broadcasted_iota(jnp.int32, (ce, 1), 0) % Wr
    mask = (col >= 1) & (col <= W)                              # interior columns

    # Keep the zero ring of the flat layout valid for the next layer.
    o_ref[0, 0:base, :] = jnp.zeros((base, cout), o_ref.dtype)
    o_ref[0, base + nint:nflat, :] = jnp.zeros((nflat - base - nint, cout),
                                               o_ref.dtype)

    for c in range(nchunks):                                    # M-chunked accumulation
        s0 = base + c * ce
        acc = jnp.zeros((ce, cout), jnp.float32)
        for dy in range(3):
            for dx in range(3):
                off = s0 + (dy - 1) * Wr + (dx - 1)             # static, in-bounds
                acc = acc + jnp.dot(x_ref[0, off:off + ce, :],
                                    w_ref[dy * 3 + dx],
                                    preferred_element_type=jnp.float32)
        acc = acc + bias
        if lrelu:
            acc = jnp.maximum(acc, 0.2 * acc)                   # LeakyReLU(0.2)
        if s_ref is not None:
            acc = acc + s_ref[0, s0:s0 + ce, :].astype(jnp.float32)
        acc = jnp.where(mask, acc, 0.0)
        o_ref[0, s0:s0 + ce, :] = acc.astype(o_ref.dtype)


def conv3x3_flat(xf, w, b, H, W, *, lrelu=False, skip=None,
                 out_dtype=jnp.bfloat16, chunk_target=2048):
    """3x3/s1/p1 conv on the flat-padded layout. xf:(N,nflat,Cin) bf16; w:(Co,Ci,3,3)."""
    N, nflat, cin = xf.shape
    cout = w.shape[0]
    Wr, nflat_expect = _flat_dims(H, W)
    assert nflat == nflat_expect
    chunk_rows = _pick_chunk_rows(H, Wr, chunk_target)

    wk = jnp.transpose(w, (2, 3, 1, 0)).reshape(9, cin, cout).astype(jnp.bfloat16)
    b2 = b.reshape(1, cout).astype(jnp.float32)

    kernel = functools.partial(_conv3x3_kernel, H=H, W=W, Wr=Wr,
                               chunk_rows=chunk_rows, lrelu=lrelu,
                               has_skip=skip is not None)

    in_specs = [pl.BlockSpec((1, nflat, cin), lambda n: (n, 0, 0))]
    args = [xf]
    if skip is not None:
        in_specs.append(pl.BlockSpec((1, nflat, cout), lambda n: (n, 0, 0)))
        args.append(skip)
    in_specs += [pl.BlockSpec((9, cin, cout), lambda n: (0, 0, 0)),
                 pl.BlockSpec((1, cout), lambda n: (0, 0))]
    args += [wk, b2]

    out_itemsize = 4 if out_dtype == jnp.float32 else 2
    blk_bytes = (2 * nflat * cin * 2
                 + (2 * nflat * cout * 2 if skip is not None else 0)
                 + 2 * nflat * cout * out_itemsize
                 + 2 * (9 * cin * cout * 2 + cout * 4))
    vmem_limit = min(max(int(blk_bytes * 1.5) + (4 << 20), 32 << 20), 100 << 20)

    return pl.pallas_call(
        kernel,
        out_shape=jax.ShapeDtypeStruct((N, nflat, cout), out_dtype),
        grid=(N,),
        in_specs=in_specs,
        out_specs=pl.BlockSpec((1, nflat, cout), lambda n: (n, 0, 0)),
        compiler_params=pltpu.CompilerParams(
            dimension_semantics=("parallel",),
            vmem_limit_bytes=vmem_limit),
    )(*args)


# ---------------------------------------------------------------------------
# Kernel 2: fused RRDB (3 dense blocks, 15 convs, dense concats, 0.2 residuals).
# Slab channel layout: [x region A | growth x1..x4 | x region B].  rdb1 reads
# x directly from the HBM block; the updated x ping-pongs A->B->A so chunked
# in-place updates never race their own stencil reads.  The dense concat is a
# channel offset (one MXU dot when x sits next to the growth block, a K-split
# pair of dots otherwise).
# ---------------------------------------------------------------------------
def _rrdb_kernel(x_ref, w1, w2, w3, w4, w5, b1, b2, b3, b4, b5, o_ref, slab,
                 *, H, W, Wr, chunk_rows, nf, g):
    nflat = x_ref.shape[1]
    base = 2 * Wr
    nint = H * Wr
    ce = chunk_rows * Wr
    nchunks = nint // ce
    ct = slab.shape[1]
    XA, GR, XB = 0, nf, nf + 4 * g
    ws = (w1, w2, w3, w4, w5)
    bs = (b1, b2, b3, b4, b5)

    col = lax.broadcasted_iota(jnp.int32, (ce, 1), 0) % Wr
    mask = (col >= 1) & (col <= W)

    # Zero the ring/guard rows once so boundary taps read zeros.
    slab[0:base, :] = jnp.zeros((base, ct), slab.dtype)
    slab[base + nint:nflat, :] = jnp.zeros((nflat - base - nint, ct), slab.dtype)

    def x_chunk(src, off):
        if src == 'hbm':
            return x_ref[0, off:off + ce, :]
        o = XA if src == 'a' else XB
        return slab[off:off + ce, o:o + nf]

    plan = (('hbm', XA), (XA, XB), (XB, XA))    # (x source, x destination) per RDB
    src_tag = ('hbm', 'a', 'b')

    for r in range(3):                          # the 3 ResidualDenseBlocks
        src, dst_off = src_tag[r], plan[r][1]
        for i in range(5):                      # the 5 convs of each dense block
            cin = nf + i * g
            cout = g if i < 4 else nf
            bias = bs[i][r]                                     # (1, cout) f32
            wts = [ws[i][r, t] for t in range(9)]               # (cin, cout) bf16
            for c in range(nchunks):
                s0 = base + c * ce
                acc = jnp.zeros((ce, cout), jnp.float32)
                for dy in range(3):
                    for dx in range(3):
                        off = s0 + (dy - 1) * Wr + (dx - 1)
                        wt = wts[dy * 3 + dx]
                        if src == 'a':
                            # x (region A) is contiguous with the growth block.
                            acc = acc + jnp.dot(
                                slab[off:off + ce, 0:cin], wt,
                                preferred_element_type=jnp.float32)
                        else:
                            acc = acc + jnp.dot(
                                x_chunk(src, off), wt[0:nf],
                                preferred_element_type=jnp.float32)
                            if i > 0:
                                acc = acc + jnp.dot(
                                    slab[off:off + ce, GR:GR + i * g],
                                    wt[nf:cin],
                                    preferred_element_type=jnp.float32)
                acc = acc + bias
                if i < 4:
                    acc = jnp.maximum(acc, 0.2 * acc)           # LeakyReLU(0.2)
                    acc = jnp.where(mask, acc, 0.0)
                    slab[s0:s0 + ce, GR + i * g:GR + (i + 1) * g] = acc.astype(slab.dtype)
                else:                                           # x5 * 0.2 + x
                    cur = x_chunk(src, s0).astype(jnp.float32)
                    newx = jnp.where(mask, acc * 0.2 + cur, 0.0)
                    slab[s0:s0 + ce, dst_off:dst_off + nf] = newx.astype(slab.dtype)

    # RRDB residual: out = rdb3_out * 0.2 + x ; keep the zero ring valid.
    o_ref[0, 0:base, :] = jnp.zeros((base, nf), o_ref.dtype)
    o_ref[0, base + nint:nflat, :] = jnp.zeros((nflat - base - nint, nf), o_ref.dtype)
    for c in range(nchunks):
        s0 = base + c * ce
        out = (slab[s0:s0 + ce, XA:XA + nf].astype(jnp.float32) * 0.2
               + x_ref[0, s0:s0 + ce, :].astype(jnp.float32))
        o_ref[0, s0:s0 + ce, :] = out.astype(o_ref.dtype)


def rrdb_flat(xf, blk, H, W, *, chunk_target=2048):
    """One fused RRDB block.  xf:(N,nflat,nf) bf16 flat-padded."""
    N, nflat, nf = xf.shape
    g = blk["rdb1"]["c1_w"].shape[0]
    Wr, nflat_expect = _flat_dims(H, W)
    assert nflat == nflat_expect
    chunk_rows = _pick_chunk_rows(H, Wr, chunk_target)

    ws, bs = [], []
    for i in range(1, 6):
        w = jnp.stack([blk[f"rdb{r}"][f"c{i}_w"] for r in (1, 2, 3)])  # (3,Co,Ci,3,3)
        co, ci = w.shape[1], w.shape[2]
        ws.append(jnp.transpose(w, (0, 3, 4, 2, 1))
                  .reshape(3, 9, ci, co).astype(jnp.bfloat16))
        bs.append(jnp.stack([blk[f"rdb{r}"][f"c{i}_b"] for r in (1, 2, 3)])
                  .reshape(3, 1, co).astype(jnp.float32))

    kernel = functools.partial(_rrdb_kernel, H=H, W=W, Wr=Wr,
                               chunk_rows=chunk_rows, nf=nf, g=g)
    w_specs = [pl.BlockSpec(wi.shape, lambda n: (0, 0, 0, 0)) for wi in ws]
    b_specs = [pl.BlockSpec(bi.shape, lambda n: (0, 0, 0)) for bi in bs]

    ct = 2 * nf + 4 * g
    w_bytes = sum(int(wi.size) * 2 for wi in ws) + sum(int(bi.size) * 4 for bi in bs)
    blk_bytes = (2 * nflat * nf * 2 * 2          # in + out, double-buffered, bf16
                 + nflat * ct * 2                # slab scratch
                 + 2 * w_bytes)
    vmem_limit = min(max(int(blk_bytes * 1.5) + (4 << 20), 32 << 20), 100 << 20)

    return pl.pallas_call(
        kernel,
        out_shape=jax.ShapeDtypeStruct((N, nflat, nf), jnp.bfloat16),
        grid=(N,),
        in_specs=[pl.BlockSpec((1, nflat, nf), lambda n: (n, 0, 0))]
                 + w_specs + b_specs,
        out_specs=pl.BlockSpec((1, nflat, nf), lambda n: (n, 0, 0)),
        scratch_shapes=[pltpu.VMEM((nflat, ct), jnp.bfloat16)],
        compiler_params=pltpu.CompilerParams(
            dimension_semantics=("parallel",),
            vmem_limit_bytes=vmem_limit),
    )(xf, *ws, *bs)


# ---------------------------------------------------------------------------
# Plain-JAX glue matching the PyTorch module structure.
# ---------------------------------------------------------------------------
def pixel_unshuffle_nchw(x, scale):
    n, c, hh, ww = x.shape
    h, w = hh // scale, ww // scale
    x = x.reshape(n, c, h, scale, w, scale)
    x = jnp.transpose(x, (0, 1, 3, 5, 2, 4))
    return x.reshape(n, c * scale * scale, h, w)


def upsample2_nearest(x_nhwc):
    return jnp.repeat(jnp.repeat(x_nhwc, 2, axis=1), 2, axis=2)


def rrdbnet_forward(x_nchw, params, scale):
    if scale == 2:
        feat = pixel_unshuffle_nchw(x_nchw, 2)
    elif scale == 1:
        feat = pixel_unshuffle_nchw(x_nchw, 4)
    else:
        feat = x_nchw
    feat = jnp.transpose(feat, (0, 2, 3, 1))             # NCHW -> NHWC
    N, H, W, _ = feat.shape

    featf = conv3x3_flat(to_flat(feat), params["conv_first_w"],
                         params["conv_first_b"], H, W)
    bodyf = featf
    for blk in params["body"]:
        bodyf = rrdb_flat(bodyf, blk, H, W)              # one fused kernel / RRDB
    # conv_body with the long skip fused into the kernel epilogue.
    featf = conv3x3_flat(bodyf, params["conv_body_w"], params["conv_body_b"],
                         H, W, skip=featf)

    up = upsample2_nearest(from_flat(featf, H, W))
    featf = conv3x3_flat(to_flat(up), params["conv_up1_w"], params["conv_up1_b"],
                         2 * H, 2 * W, lrelu=True)
    up = upsample2_nearest(from_flat(featf, 2 * H, 2 * W))
    featf = conv3x3_flat(to_flat(up), params["conv_up2_w"], params["conv_up2_b"],
                         4 * H, 4 * W, lrelu=True)
    featf = conv3x3_flat(featf, params["conv_hr_w"], params["conv_hr_b"],
                         4 * H, 4 * W, lrelu=True)
    outf = conv3x3_flat(featf, params["conv_last_w"], params["conv_last_b"],
                        4 * H, 4 * W, out_dtype=jnp.float32)
    out = from_flat(outf, 4 * H, 4 * W)
    return jnp.transpose(out, (0, 3, 1, 2)).astype(jnp.float32)   # NHWC -> NCHW


# ---------------------------------------------------------------------------
# Deterministic synthetic parameter init (shapes follow the PyTorch module).
# ---------------------------------------------------------------------------
def _conv_init(key, cin, cout, scale=1.0):
    kw, _ = jax.random.split(key)
    fan_in = cin * 9
    w = jax.random.normal(kw, (cout, cin, 3, 3), jnp.float32) * (
        scale * (2.0 / fan_in) ** 0.5)
    b = jnp.zeros((cout,), jnp.float32)
    return w, b


def make_rrdbnet_params(key, num_in_ch, num_out_ch, scale, num_feat,
                        num_block, num_grow_ch):
    if scale == 2:
        num_in_ch *= 4
    elif scale == 1:
        num_in_ch *= 16

    keys = iter(jax.random.split(key, 8 + num_block * 3 * 5))

    def rdb():
        p = {}
        cins = [num_feat, num_feat + num_grow_ch, num_feat + 2 * num_grow_ch,
                num_feat + 3 * num_grow_ch, num_feat + 4 * num_grow_ch]
        couts = [num_grow_ch] * 4 + [num_feat]
        for i, (ci, co) in enumerate(zip(cins, couts), start=1):
            w, b = _conv_init(next(keys), ci, co, scale=0.1)
            p[f"c{i}_w"], p[f"c{i}_b"] = w, b
        return p

    params = {}
    params["conv_first_w"], params["conv_first_b"] = _conv_init(next(keys), num_in_ch, num_feat)
    params["body"] = [{"rdb1": rdb(), "rdb2": rdb(), "rdb3": rdb()}
                      for _ in range(num_block)]
    params["conv_body_w"], params["conv_body_b"] = _conv_init(next(keys), num_feat, num_feat)
    params["conv_up1_w"], params["conv_up1_b"] = _conv_init(next(keys), num_feat, num_feat)
    params["conv_up2_w"], params["conv_up2_b"] = _conv_init(next(keys), num_feat, num_feat)
    params["conv_hr_w"], params["conv_hr_b"] = _conv_init(next(keys), num_feat, num_feat)
    params["conv_last_w"], params["conv_last_b"] = _conv_init(next(keys), num_feat, num_out_ch)
    return params


# ---------------------------------------------------------------------------
# Pure-JAX (XLA) reference mirroring the kernel precision policy:
# bf16 operands, f32 accumulation, bf16 layer outputs (f32 final output).
# ---------------------------------------------------------------------------
def ref_conv(x, w, b, lrelu=False, skip=None, out_bf16=True):
    y = lax.conv_general_dilated(
        x.astype(jnp.bfloat16),
        jnp.transpose(w, (2, 3, 1, 0)).astype(jnp.bfloat16),
        (1, 1), "SAME", dimension_numbers=("NHWC", "HWIO", "NHWC"),
        preferred_element_type=jnp.float32)
    y = y + b[None, None, None, :]
    if lrelu:
        y = jnp.maximum(y, 0.2 * y)
    if skip is not None:
        y = y + skip.astype(jnp.float32)
    return y.astype(jnp.bfloat16) if out_bf16 else y


def ref_rdb(x, p):
    x1 = ref_conv(x, p["c1_w"], p["c1_b"], True)
    x2 = ref_conv(jnp.concatenate([x, x1], -1), p["c2_w"], p["c2_b"], True)
    x3 = ref_conv(jnp.concatenate([x, x1, x2], -1), p["c3_w"], p["c3_b"], True)
    x4 = ref_conv(jnp.concatenate([x, x1, x2, x3], -1), p["c4_w"], p["c4_b"], True)
    x5 = ref_conv(jnp.concatenate([x, x1, x2, x3, x4], -1), p["c5_w"], p["c5_b"], False)
    return (x5.astype(jnp.float32) * 0.2 + x.astype(jnp.float32)).astype(jnp.bfloat16)


def ref_forward(x_nchw, params, scale):
    if scale == 2:
        feat = pixel_unshuffle_nchw(x_nchw, 2)
    elif scale == 1:
        feat = pixel_unshuffle_nchw(x_nchw, 4)
    else:
        feat = x_nchw
    feat = jnp.transpose(feat, (0, 2, 3, 1)).astype(jnp.bfloat16)
    feat = ref_conv(feat, params["conv_first_w"], params["conv_first_b"])
    body = feat
    for blk in params["body"]:
        out = body
        for name in ("rdb1", "rdb2", "rdb3"):
            out = ref_rdb(out, blk[name])
        body = (out.astype(jnp.float32) * 0.2 + body.astype(jnp.float32)).astype(jnp.bfloat16)
    feat = ref_conv(body, params["conv_body_w"], params["conv_body_b"], skip=feat)
    feat = ref_conv(upsample2_nearest(feat), params["conv_up1_w"], params["conv_up1_b"], True)
    feat = ref_conv(upsample2_nearest(feat), params["conv_up2_w"], params["conv_up2_b"], True)
    feat = ref_conv(feat, params["conv_hr_w"], params["conv_hr_b"], True)
    out = ref_conv(feat, params["conv_last_w"], params["conv_last_b"], out_bf16=False)
    return jnp.transpose(out, (0, 3, 1, 2)).astype(jnp.float32)


# ---------------------------------------------------------------------------
if __name__ == "__main__":
    # Small config: scale=4 RRDBNet, 1 RRDB block, 32 feats, 16 growth chans.
    num_in_ch, num_out_ch = 3, 3
    scale, num_feat, num_block, num_grow_ch = 4, 32, 1, 16
    N, H, W = 2, 16, 16

    key = jax.random.PRNGKey(0)
    k_x, k_p = jax.random.split(key)
    x = jax.random.normal(k_x, (N, num_in_ch, H, W), jnp.float32)
    params = make_rrdbnet_params(k_p, num_in_ch, num_out_ch, scale,
                                 num_feat, num_block, num_grow_ch)

    def max_err(got, ref):
        g = jnp.asarray(got, jnp.float32)
        r = jnp.asarray(ref, jnp.float32)
        return float(jnp.max(jnp.abs(g - r))), float(jnp.max(jnp.abs(r)))

    # Check 1: standalone conv kernel vs XLA conv at identical precision policy.
    x_nhwc = jnp.transpose(x, (0, 2, 3, 1))
    featf = conv3x3_flat(to_flat(x_nhwc), params["conv_first_w"],
                         params["conv_first_b"], H, W)
    ref1 = ref_conv(x_nhwc, params["conv_first_w"], params["conv_first_b"])
    e1, s1 = max_err(from_flat(featf, H, W), ref1)
    assert e1 <= 0.02 * s1 + 0.02, f"conv3x3 kernel mismatch: abs={e1} scale={s1}"

    # Check 2: fused RRDB kernel vs the XLA reference, fed the same bf16 input.
    blk0 = params["body"][0]
    got2 = from_flat(rrdb_flat(featf, blk0, H, W), H, W)
    feat_in = from_flat(featf, H, W)
    r2 = feat_in
    for name in ("rdb1", "rdb2", "rdb3"):
        r2 = ref_rdb(r2, blk0[name])
    r2 = (r2.astype(jnp.float32) * 0.2 + feat_in.astype(jnp.float32)).astype(jnp.bfloat16)
    e2, s2 = max_err(got2, r2)
    assert e2 <= 0.025 * s2 + 0.05, f"RRDB kernel mismatch: abs={e2} scale={s2}"

    # Check 3: full network vs the XLA reference (scale-relative tolerance:
    # bf16 rounding of intermediates legitimately drifts by a few ulps).
    fwd = jax.jit(functools.partial(rrdbnet_forward, scale=scale))
    out = jax.block_until_ready(fwd(x, params))
    assert out.shape == (N, num_out_ch, H * 4, W * 4), out.shape
    assert bool(jnp.all(jnp.isfinite(out)))
    ref_out = jax.jit(functools.partial(ref_forward, scale=scale))(x, params)
    e3, s3 = max_err(out, ref_out)
    assert e3 <= 0.03 * s3 + 0.05, f"full-network mismatch: abs={e3} scale={s3}"

    print("KERNEL_OK")
</pallas_src>

<mosaic_0001>
module attributes {stable_mosaic.version = 11 : i64} {
  func.func @_conv3x3_kernel(%arg0: i32, %arg1: memref<1x640x3xbf16, #tpu.memory_space<vmem>>, %arg2: memref<9x3x32xbf16, #tpu.memory_space<vmem>>, %arg3: memref<1x32xf32, #tpu.memory_space<vmem>>, %arg4: memref<1x640x32xbf16, #tpu.memory_space<vmem>>) attributes {dimension_semantics = [#tpu.dimension_semantics<parallel>], iteration_bounds = array<i64: 2>, scalar_prefetch = 0 : i64, scratch_operands = 0 : i64, tpu.core_type = #tpu.core_type<tc>, window_params = [{transform_indices = @transform_0, window_bounds = array<i64: 1, 640, 3>}, {pipeline_mode = #tpu.pipeline_mode<synchronous>, transform_indices = @transform_1, window_bounds = array<i64: 9, 3, 32>}, {pipeline_mode = #tpu.pipeline_mode<synchronous>, transform_indices = @transform_2, window_bounds = array<i64: 1, 32>}, {transform_indices = @transform_3, window_bounds = array<i64: 1, 640, 32>}]} {
    %c0 = arith.constant 0 : index
    %c0_0 = arith.constant 0 : index
    %0 = vector.load %arg3[%c0, %c0_0] : memref<1x32xf32, #tpu.memory_space<vmem>>, vector<1x32xf32>
    %1 = tpu.iota {dimensions = array<i32: 0>} : vector<512x1xi32>
    %c32_i32 = arith.constant 32 : i32
    %c0_i32 = arith.constant 0 : i32
    %2 = arith.cmpi eq, %c32_i32, %c0_i32 : i32
    %c1_i32 = arith.constant 1 : i32
    %3 = arith.select %2, %c1_i32, %c32_i32 : i32
    %4 = vector.broadcast %3 : i32 to vector<512x1xi32>
    %5 = arith.remsi %1, %4 : vector<512x1xi32>
    %c0_i32_1 = arith.constant 0 : i32
    %6 = vector.broadcast %c0_i32_1 : i32 to vector<512x1xi32>
    %7 = arith.cmpi ne, %5, %6 : vector<512x1xi32>
    %c0_i32_2 = arith.constant 0 : i32
    %8 = vector.broadcast %c0_i32_2 : i32 to vector<512x1xi32>
    %9 = arith.cmpi slt, %5, %8 : vector<512x1xi32>
    %c0_i32_3 = arith.constant 0 : i32
    %10 = arith.cmpi slt, %3, %c0_i32_3 : i32
    %11 = vector.broadcast %10 : i1 to vector<512x1xi1>
    %12 = vector.broadcast %11 : vector<512x1xi1> to vector<512x1xi1>
    %13 = arith.xori %9, %12 : vector<512x1xi1>
    %14 = arith.andi %13, %7 : vector<512x1xi1>
    %15 = vector.broadcast %3 : i32 to vector<512x1xi32>
    %16 = arith.addi %5, %15 : vector<512x1xi32>
    %17 = arith.select %14, %16, %5 : vector<512x1xi1>, vector<512x1xi32>
    %c1_i32_4 = arith.constant 1 : i32
    %18 = vector.broadcast %c1_i32_4 : i32 to vector<512x1xi32>
    %19 = arith.cmpi sge, %17, %18 : vector<512x1xi32>
    %c16_i32 = arith.constant 16 : i32
    %20 = vector.broadcast %c16_i32 : i32 to vector<512x1xi32>
    %21 = arith.cmpi sle, %17, %20 : vector<512x1xi32>
    %22 = arith.andi %19, %21 : vector<512x1xi1>
    %cst = arith.constant 0.000000e+00 : bf16
    %23 = vector.broadcast %cst : bf16 to vector<64x32xbf16>
    %c0_5 = arith.constant 0 : index
    %c0_6 = arith.constant 0 : index
    %c0_7 = arith.constant 0 : index
    %24 = vector.load %arg4[%c0_5, %c0_6, %c0_7] : memref<1x640x32xbf16, #tpu.memory_space<vmem>>, vector<1x64x32xbf16>
    %25 = vector.shape_cast %24 : vector<1x64x32xbf16> to vector<64x32xbf16>
    %26 = vector.shape_cast %23 : vector<64x32xbf16> to vector<1x64x32xbf16>
    tpu.vector_store %arg4[%c0_5, %c0_6, %c0_7], %26 {strides = array<i32>} : memref<1x640x32xbf16, #tpu.memory_space<vmem>>, vector<1x64x32xbf16>,
    %cst_8 = arith.constant 0.000000e+00 : bf16
    %27 = vector.broadcast %cst_8 : bf16 to vector<64x32xbf16>
    %c0_9 = arith.constant 0 : index
    %c576 = arith.constant 576 : index
    %c0_10 = arith.constant 0 : index
    %28 = vector.load %arg4[%c0_9, %c576, %c0_10] : memref<1x640x32xbf16, #tpu.memory_space<vmem>>, vector<1x64x32xbf16>
    %29 = vector.shape_cast %28 : vector<1x64x32xbf16> to vector<64x32xbf16>
    %30 = vector.shape_cast %27 : vector<64x32xbf16> to vector<1x64x32xbf16>
    tpu.vector_store %arg4[%c0_9, %c576, %c0_10], %30 {strides = array<i32>} : memref<1x640x32xbf16, #tpu.memory_space<vmem>>, vector<1x64x32xbf16>,
    %cst_11 = arith.constant 0.000000e+00 : f32
    %31 = vector.broadcast %cst_11 : f32 to vector<512x32xf32>
    %c0_12 = arith.constant 0 : index
    %c31 = arith.constant 31 : index
    %c0_13 = arith.constant 0 : index
    %32 = vector.load %arg1[%c0_12, %c31, %c0_13] : memref<1x640x3xbf16, #tpu.memory_space<vmem>>, vector<1x512x3xbf16>
    %33 = vector.shape_cast %32 : vector<1x512x3xbf16> to vector<512x3xbf16>
    %c0_14 = arith.constant 0 : index
    %c0_15 = arith.constant 0 : index
    %c0_16 = arith.constant 0 : index
    %34 = vector.load %arg2[%c0_14, %c0_15, %c0_16] : memref<9x3x32xbf16, #tpu.memory_space<vmem>>, vector<1x3x32xbf16>
    %35 = vector.shape_cast %34 : vector<1x3x32xbf16> to vector<3x32xbf16>
    %cst_17 = arith.constant dense<0.000000e+00> : vector<512x32xf32>
    %36 = tpu.matmul %33, %35, %cst_17 {dimension_numbers = #tpu.dot_dimension_numbers<[1], [0], [0], [1], [0, 0, 1, 1], [], []>} : vector<512x3xbf16>, vector<3x32xbf16>, vector<512x32xf32> -> vector<512x32xf32>
    %37 = arith.addf %31, %36 : vector<512x32xf32>
    %c0_18 = arith.constant 0 : index
    %c32 = arith.constant 32 : index
    %c0_19 = arith.constant 0 : index
    %38 = vector.load %arg1[%c0_18, %c32, %c0_19] : memref<1x640x3xbf16, #tpu.memory_space<vmem>>, vector<1x512x3xbf16>
    %39 = vector.shape_cast %38 : vector<1x512x3xbf16> to vector<512x3xbf16>
    %c1 = arith.constant 1 : index
    %c0_20 = arith.constant 0 : index
    %c0_21 = arith.constant 0 : index
    %40 = vector.load %arg2[%c1, %c0_20, %c0_21] : memref<9x3x32xbf16, #tpu.memory_space<vmem>>, vector<1x3x32xbf16>
    %41 = vector.shape_cast %40 : vector<1x3x32xbf16> to vector<3x32xbf16>
    %cst_22 = arith.constant dense<0.000000e+00> : vector<512x32xf32>
    %42 = tpu.matmul %39, %41, %cst_22 {dimension_numbers = #tpu.dot_dimension_numbers<[1], [0], [0], [1], [0, 0, 1, 1], [], []>} : vector<512x3xbf16>, vector<3x32xbf16>, vector<512x32xf32> -> vector<512x32xf32>
    %43 = arith.addf %37, %42 : vector<512x32xf32>
    %c0_23 = arith.constant 0 : index
    %c33 = arith.constant 33 : index
    %c0_24 = arith.constant 0 : index
    %44 = vector.load %arg1[%c0_23, %c33, %c0_24] : memref<1x640x3xbf16, #tpu.memory_space<vmem>>, vector<1x512x3xbf16>
    %45 = vector.shape_cast %44 : vector<1x512x3xbf16> to vector<512x3xbf16>
    %c2 = arith.constant 2 : index
    %c0_25 = arith.constant 0 : index
    %c0_26 = arith.constant 0 : index
    %46 = vector.load %arg2[%c2, %c0_25, %c0_26] : memref<9x3x32xbf16, #tpu.memory_space<vmem>>, vector<1x3x32xbf16>
    %47 = vector.shape_cast %46 : vector<1x3x32xbf16> to vector<3x32xbf16>
    %cst_27 = arith.constant dense<0.000000e+00> : vector<512x32xf32>
    %48 = tpu.matmul %45, %47, %cst_27 {dimension_numbers = #tpu.dot_dimension_numbers<[1], [0], [0], [1], [0, 0, 1, 1], [], []>} : vector<512x3xbf16>, vector<3x32xbf16>, vector<512x32xf32> -> vector<512x32xf32>
    %49 = arith.addf %43, %48 : vector<512x32xf32>
    %c0_28 = arith.constant 0 : index
    %c63 = arith.constant 63 : index
    %c0_29 = arith.constant 0 : index
    %50 = vector.load %arg1[%c0_28, %c63, %c0_29] : memref<1x640x3xbf16, #tpu.memory_space<vmem>>, vector<1x512x3xbf16>
    %51 = vector.shape_cast %50 : vector<1x512x3xbf16> to vector<512x3xbf16>
    %c3 = arith.constant 3 : index
    %c0_30 = arith.constant 0 : index
    %c0_31 = arith.constant 0 : index
    %52 = vector.load %arg2[%c3, %c0_30, %c0_31] : memref<9x3x32xbf16, #tpu.memory_space<vmem>>, vector<1x3x32xbf16>
    %53 = vector.shape_cast %52 : vector<1x3x32xbf16> to vector<3x32xbf16>
    %cst_32 = arith.constant dense<0.000000e+00> : vector<512x32xf32>
    %54 = tpu.matmul %51, %53, %cst_32 {dimension_numbers = #tpu.dot_dimension_numbers<[1], [0], [0], [1], [0, 0, 1, 1], [], []>} : vector<512x3xbf16>, vector<3x32xbf16>, vector<512x32xf32> -> vector<512x32xf32>
    %55 = arith.addf %49, %54 : vector<512x32xf32>
    %c0_33 = arith.constant 0 : index
    %c64 = arith.constant 64 : index
    %c0_34 = arith.constant 0 : index
    %56 = vector.load %arg1[%c0_33, %c64, %c0_34] : memref<1x640x3xbf16, #tpu.memory_space<vmem>>, vector<1x512x3xbf16>
    %57 = vector.shape_cast %56 : vector<1x512x3xbf16> to vector<512x3xbf16>
    %c4 = arith.constant 4 : index
    %c0_35 = arith.constant 0 : index
    %c0_36 = arith.constant 0 : index
    %58 = vector.load %arg2[%c4, %c0_35, %c0_36] : memref<9x3x32xbf16, #tpu.memory_space<vmem>>, vector<1x3x32xbf16>
    %59 = vector.shape_cast %58 : vector<1x3x32xbf16> to vector<3x32xbf16>
    %cst_37 = arith.constant dense<0.000000e+00> : vector<512x32xf32>
    %60 = tpu.matmul %57, %59, %cst_37 {dimension_numbers = #tpu.dot_dimension_numbers<[1], [0], [0], [1], [0, 0, 1, 1], [], []>} : vector<512x3xbf16>, vector<3x32xbf16>, vector<512x32xf32> -> vector<512x32xf32>
    %61 = arith.addf %55, %60 : vector<512x32xf32>
    %c0_38 = arith.constant 0 : index
    %c65 = arith.constant 65 : index
    %c0_39 = arith.constant 0 : index
    %62 = vector.load %arg1[%c0_38, %c65, %c0_39] : memref<1x640x3xbf16, #tpu.memory_space<vmem>>, vector<1x512x3xbf16>
    %63 = vector.shape_cast %62 : vector<1x512x3xbf16> to vector<512x3xbf16>
    %c5 = arith.constant 5 : index
    %c0_40 = arith.constant 0 : index
    %c0_41 = arith.constant 0 : index
    %64 = vector.load %arg2[%c5, %c0_40, %c0_41] : memref<9x3x32xbf16, #tpu.memory_space<vmem>>, vector<1x3x32xbf16>
    %65 = vector.shape_cast %64 : vector<1x3x32xbf16> to vector<3x32xbf16>
    %cst_42 = arith.constant dense<0.000000e+00> : vector<512x32xf32>
    %66 = tpu.matmul %63, %65, %cst_42 {dimension_numbers = #tpu.dot_dimension_numbers<[1], [0], [0], [1], [0, 0, 1, 1], [], []>} : vector<512x3xbf16>, vector<3x32xbf16>, vector<512x32xf32> -> vector<512x32xf32>
    %67 = arith.addf %61, %66 : vector<512x32xf32>
    %c0_43 = arith.constant 0 : index
    %c95 = arith.constant 95 : index
    %c0_44 = arith.constant 0 : index
    %68 = vector.load %arg1[%c0_43, %c95, %c0_44] : memref<1x640x3xbf16, #tpu.memory_space<vmem>>, vector<1x512x3xbf16>
    %69 = vector.shape_cast %68 : vector<1x512x3xbf16> to vector<512x3xbf16>
    %c6 = arith.constant 6 : index
    %c0_45 = arith.constant 0 : index
    %c0_46 = arith.constant 0 : index
    %70 = vector.load %arg2[%c6, %c0_45, %c0_46] : memref<9x3x32xbf16, #tpu.memory_space<vmem>>, vector<1x3x32xbf16>
    %71 = vector.shape_cast %70 : vector<1x3x32xbf16> to vector<3x32xbf16>
    %cst_47 = arith.constant dense<0.000000e+00> : vector<512x32xf32>
    %72 = tpu.matmul %69, %71, %cst_47 {dimension_numbers = #tpu.dot_dimension_numbers<[1], [0], [0], [1], [0, 0, 1, 1], [], []>} : vector<512x3xbf16>, vector<3x32xbf16>, vector<512x32xf32> -> vector<512x32xf32>
    %73 = arith.addf %67, %72 : vector<512x32xf32>
    %c0_48 = arith.constant 0 : index
    %c96 = arith.constant 96 : index
    %c0_49 = arith.constant 0 : index
    %74 = vector.load %arg1[%c0_48, %c96, %c0_49] : memref<1x640x3xbf16, #tpu.memory_space<vmem>>, vector<1x512x3xbf16>
    %75 = vector.shape_cast %74 : vector<1x512x3xbf16> to vector<512x3xbf16>
    %c7 = arith.constant 7 : index
    %c0_50 = arith.constant 0 : index
    %c0_51 = arith.constant 0 : index
    %76 = vector.load %arg2[%c7, %c0_50, %c0_51] : memref<9x3x32xbf16, #tpu.memory_space<vmem>>, vector<1x3x32xbf16>
    %77 = vector.shape_cast %76 : vector<1x3x32xbf16> to vector<3x32xbf16>
    %cst_52 = arith.constant dense<0.000000e+00> : vector<512x32xf32>
    %78 = tpu.matmul %75, %77, %cst_52 {dimension_numbers = #tpu.dot_dimension_numbers<[1], [0], [0], [1], [0, 0, 1, 1], [], []>} : vector<512x3xbf16>, vector<3x32xbf16>, vector<512x32xf32> -> vector<512x32xf32>
    %79 = arith.addf %73, %78 : vector<512x32xf32>
    %c0_53 = arith.constant 0 : index
    %c97 = arith.constant 97 : index
    %c0_54 = arith.constant 0 : index
    %80 = vector.load %arg1[%c0_53, %c97, %c0_54] : memref<1x640x3xbf16, #tpu.memory_space<vmem>>, vector<1x512x3xbf16>
    %81 = vector.shape_cast %80 : vector<1x512x3xbf16> to vector<512x3xbf16>
    %c8 = arith.constant 8 : index
    %c0_55 = arith.constant 0 : index
    %c0_56 = arith.constant 0 : index
    %82 = vector.load %arg2[%c8, %c0_55, %c0_56] : memref<9x3x32xbf16, #tpu.memory_space<vmem>>, vector<1x3x32xbf16>
    %83 = vector.shape_cast %82 : vector<1x3x32xbf16> to vector<3x32xbf16>
    %cst_57 = arith.constant dense<0.000000e+00> : vector<512x32xf32>
    %84 = tpu.matmul %81, %83, %cst_57 {dimension_numbers = #tpu.dot_dimension_numbers<[1], [0], [0], [1], [0, 0, 1, 1], [], []>} : vector<512x3xbf16>, vector<3x32xbf16>, vector<512x32xf32> -> vector<512x32xf32>
    %85 = arith.addf %79, %84 : vector<512x32xf32>
    %86 = vector.broadcast %0 : vector<1x32xf32> to vector<512x32xf32>
    %87 = arith.addf %85, %86 : vector<512x32xf32>
    %cst_58 = arith.constant 0.000000e+00 : f32
    %88 = vector.shape_cast %22 : vector<512x1xi1> to vector<512x1xi1>
    %89 = vector.broadcast %88 : vector<512x1xi1> to vector<512x32xi1>
    %90 = vector.broadcast %cst_58 : f32 to vector<512x32xf32>
    %91 = arith.select %89, %87, %90 : vector<512x32xi1>, vector<512x32xf32>
    %92 = arith.truncf %91 : vector<512x32xf32> to vector<512x32xbf16>
    %c0_59 = arith.constant 0 : index
    %c64_60 = arith.constant 64 : index
    %c0_61 = arith.constant 0 : index
    %93 = vector.load %arg4[%c0_59, %c64_60, %c0_61] : memref<1x640x32xbf16, #tpu.memory_space<vmem>>, vector<1x512x32xbf16>
    %94 = vector.shape_cast %93 : vector<1x512x32xbf16> to vector<512x32xbf16>
    %95 = vector.shape_cast %92 : vector<512x32xbf16> to vector<1x512x32xbf16>
    tpu.vector_store %arg4[%c0_59, %c64_60, %c0_61], %95 {strides = array<i32>} : memref<1x640x32xbf16, #tpu.memory_space<vmem>>, vector<1x512x32xbf16>,
    return
  }
  func.func @transform_0(%arg0: i32) -> (i32, i32, i32) {
    %c0_i32 = arith.constant 0 : i32
    %c0_i32_0 = arith.constant 0 : i32
    %c0_i32_1 = arith.constant 0 : i32
    return %arg0, %c0_i32, %c0_i32_0 : i32, i32, i32
  }
  func.func @transform_1(%arg0: i32) -> (i32, i32, i32) {
    %c0_i32 = arith.constant 0 : i32
    %c0_i32_0 = arith.constant 0 : i32
    %c0_i32_1 = arith.constant 0 : i32
    %c0_i32_2 = arith.constant 0 : i32
    return %c0_i32, %c0_i32_0, %c0_i32_1 : i32, i32, i32
  }
  func.func @transform_2(%arg0: i32) -> (i32, i32) {
    %c0_i32 = arith.constant 0 : i32
    %c0_i32_0 = arith.constant 0 : i32
    %c0_i32_1 = arith.constant 0 : i32
    return %c0_i32, %c0_i32_0 : i32, i32
  }
  func.func @transform_3(%arg0: i32) -> (i32, i32, i32) {
    %c0_i32 = arith.constant 0 : i32
    %c0_i32_0 = arith.constant 0 : i32
    %c0_i32_1 = arith.constant 0 : i32
    return %arg0, %c0_i32, %c0_i32_0 : i32, i32, i32
  }
}

</mosaic_0001>

<bundles_post_ra>
// kernel: tpu_custom_call.1
= control target key start
LH: loop header
LB: loop body
LE: loop exit
PB: predicated region body
PF: predicated region fallthrough
CT: control target
= control target key end

     0   :  { %s9654_s12 = smov 0   ;;  %s11289_s0 = inlined_call_operand.vmem [shape: bf16[2,640,3], index: 0, kind: input, shape index: {}]   ;;  %s11290_s1 = inlined_call_operand.vmem [shape: bf16[9,3,32], index: 1, kind: input, shape index: {}]   ;;  %s11291_s2 = inlined_call_operand.vmem [shape: f32[1,32], index: 2, kind: input, shape index: {}]   ;;  %s11292_s3 = inlined_call_operand.vmem [shape: bf16[2,640,32], index: 3, kind: output, shape index: {}]  }
   0x1 LB: > { %s7673_s13 = sadd.s32 4294967295, %s9629_s12   ;;  %p7677_p0 = scmp.ge.s32.totalorder %s9629_s12, 1  ;;  %s9629_s12 = sphi %s9654_s12, %s13_s12  }
   0x2   : > { %p137_p1 = scmp.lt.s32.totalorder %s9629_s12, 3 }
   0x4   : > { %p138_p2 = pnand %p7677_p0, %p137_p1 }
   0x6   : > { %141 = sbr.rel (%p138_p2) target bundleno = 1300 (0x514), region = 32 }
   0xb   : > { %v7680_v0 = vld [vmem:[%s11290_s1 + $0x2] sm:$0x3]  ;;  %vm1540_vm0 = vcmask 1040384   ;;  %vm1541_vm1 = vcmask 1041408   ;;  %v9631_v1 = vmov 65535   ;;  %p161_p3 = scmp.lt.s32.totalorder %s7673_s13, 1 }
   0xc   : > { %v1542_v2 = vsel %vm1540_vm0, 4294967295, %v9631_v1  ;;  %v7745_v3 = vld [vmem:[%s11290_s1 + $0x4] sm:$0x3]  ;;  %v7906_v5 = vld [vmem:[%s11290_s1 + $0x6] sm:$0x3]  ;;  %vm1443_vm2 = vcmask 23552  }
   0xd   : > { %v9668_v4 = vsel %vm1541_vm1, %v1542_v2, 0  ;;  %v1280_v6 = vld [vmem:[%s11290_s1] sm:$0x3]  ;;  %s11350_s13 = smov (!%p161_p3, %s7673_s13), 1  ;;  %v7939_v10 = vld [vmem:[%s11290_s1 + $0x8] sm:$0x3] }
   0xe   : > { %v1545_v7 = vand.u32 %v7680_v0, %v9668_v4  ;;  %v2904_v8 = vand.u32 %v7745_v3, %v9668_v4  ;;  %v3762_v9 = vand.u32 %v7906_v5, %v9668_v4  ;;  %v2145_v11 = vand.u32 %v9668_v4, %v1280_v6  ;;  %s9607_s24 = smul.u32 320, %s11350_s13  ;;  %v8133_v41 = vld [vmem:[%s11290_s1 + $0xc] sm:$0x3]  ;;  %v8166_v42 = vld [vmem:[%s11290_s1 + $0xe] sm:$0x3] }
   0xf   : > { %v4128_v12 = vand.u32 %v7939_v10, %v9668_v4  ;;  %v5808_v43 = vand.u32 %v8133_v41, %v9668_v4  ;;  %v6174_v44 = vand.u32 %v8166_v42, %v9668_v4  ;;  %v7972_v45 = vld [vmem:[%s11290_s1 + $0xa] sm:$0x3]  ;;  %v8199_v47 = vld [vmem:[%s11290_s1 + $0x10] sm:$0x3]  ;;  %vm1751_vm3 = vsmask.f32 4352 }
  0x10   : > { %9478 = vmatpush.bf16.msra.mxu1 %v1545_v7  ;;  %9479 = vmatpush.bf16.msra.mxu2 %v1545_v7  ;;  %s9692_s27 = scalar_lea.vmem %s11289_s0, %s9607_s24  ;;  %v4950_v46 = vand.u32 %v7972_v45, %v9668_v4  ;;  %v6996_v48 = vand.u32 %v8199_v47, %v9668_v4  ;;  %vm2546_vm4 = vsmask.f32 7424  ;;  %s10503_s11 = scalar_lea.vmem %s11292_s3, %s9607_s24  ;;  %vm1198_vm5 = vcmask 257024  }
  0x11   : > { %9480 = vmatpush.bf16.msra.mxu3 %v1545_v7  ;;  %1554 = vmatpush.bf16.msra.mxu0 %v1545_v7  ;;  %v9695_v13 = vld [vmem:[%s9692_s27 + $0x50] sm:$0xff]   ;;  %v9706_v17 = vld [vmem:[%s9692_s27 + $0x58] sm:$0xff]   ;;  %v9717_v21 = vld [vmem:[%s9692_s27 + $0x60] sm:$0xff]  }
  0x12   : > { %v8858_v14 = vld [vmem:[%s9692_s27 + $0x90] sm:$0xff]   ;;  %v8859_v18 = vld [vmem:[%s9692_s27 + $0x98] sm:$0xff]   ;;  %v8860_v22 = vld [vmem:[%s9692_s27 + $0xa0] sm:$0xff]  }
  0x13   : > { %v8866_v15 = vld [vmem:[%s9692_s27 + $0xd0] sm:$0xff]   ;;  %7689 = vmatmul.msk.bf16.vlgmr.msra.gmra.mxu1 %vm1443_vm2, %v9695_v13  ;;  %7697 = vmatmul.msk.bf16.vlgmr.msra.gmra.mxu2 %vm1443_vm2, %v8858_v14  ;;  %v8867_v19 = vld [vmem:[%s9692_s27 + $0xd8] sm:$0xff]   ;;  %v8868_v23 = vld [vmem:[%s9692_s27 + $0xe0] sm:$0xff]  }
  0x14   : > { %2913 = vmatpush.bf16.msrb.mxu2 %v2904_v8  ;;  %2154 = vmatpush.bf16.msrb.mxu1 %v2145_v11  ;;  %v8842_v16 = vld [vmem:[%s9692_s27 + $0x10] sm:$0xff]   ;;  %v8843_v20 = vld [vmem:[%s9692_s27 + $0x18] sm:$0xff]   ;;  %v9722_v24 = vld [vmem:[%s9692_s27 + $0x20] sm:$0xff]  }
  0x15   : > { %3771 = vmatpush.bf16.msrb.mxu3 %v3762_v9  ;;  %4137 = vmatpush.bf16.msrb.mxu0 %v4128_v12  ;;  %v9731_v25 = vld [vmem:[%s9692_s27 + $0x68] sm:$0xff]   ;;  %v9745_v29 = vld [vmem:[%s9692_s27 + $0x70] sm:$0xff]   ;;  %v8855_v33 = vld [vmem:[%s9692_s27 + $0x78] sm:$0xff]  }
  0x16   : > { %7705 = vmatmul.msk.bf16.vlgmr.msra.gmra.mxu3 %vm1443_vm2, %v8866_v15  ;;  %7681 = vmatmul.msk.bf16.vlgmr.msra.gmra.mxu0 %vm1443_vm2, %v8842_v16  ;;  %v8861_v26 = vld [vmem:[%s9692_s27 + $0xa8] sm:$0xff]   ;;  %v8862_v30 = vld [vmem:[%s9692_s27 + $0xb0] sm:$0xff]   ;;  %v8863_v34 = vld [vmem:[%s9692_s27 + $0xb8] sm:$0xff]  }
  0x17   : > { %v8869_v27 = vld [vmem:[%s9692_s27 + $0xe8] sm:$0xff]   ;;  %v8870_v31 = vld [vmem:[%s9692_s27 + $0xf0] sm:$0xff]   ;;  %v8871_v35 = vld [vmem:[%s9692_s27 + $0xf8] sm:$0xff]  }
  0x18   : > { %v9736_v28 = vld [vmem:[%s9692_s27 + $0x28] sm:$0xff]   ;;  %v9750_v32 = vld [vmem:[%s9692_s27 + $0x30] sm:$0xff]   ;;  %v9762_v36 = vld [vmem:[%s9692_s27 + $0x38] sm:$0xff]   ;;  %5817 = vmatpush.bf16.msra.mxu2 %v5808_v43  ;;  %4959 = vmatpush.bf16.msra.mxu1 %v4950_v46 }
  0x19   : > { %v8856_v37 = vld [vmem:[%s9692_s27 + $0x80] sm:$0xff]   ;;  %6183 = vmatpush.bf16.msra.mxu3 %v6174_v44  ;;  %v8876_v49 = vld [vmem:[%s9692_s27 + $0xc] sm:$0x8]  ;;  %v9098_v50 = vld [vmem:[%s9692_s27 + $0xc] sm:$0xf0]   ;;  %7005 = vmatpush.bf16.msra.mxu0 %v6996_v48 }
  0x1a   : > { %v8864_v38 = vld [vmem:[%s9692_s27 + $0xc0] sm:$0xff]   ;;  %v9162_v51 = vld [vmem:[%s9692_s27 + $0x1c] sm:$0x8]  ;;  %v9100_v53 = vld [vmem:[%s9692_s27 + $0x14] sm:$0xff]   ;;  %v8877_v54 = vor.u32 %v9098_v50, %v8876_v49 }
  0x1b   : > { %v8872_v39 = vld [vmem:[%s9692_s27 + $0x100] sm:$0xff]   ;;  %v8857_v55 = vld [vmem:[%s9692_s27 + $0x88] sm:$0xff]   ;;  %v8362_v57 = vld [vmem:[%s9692_s27 + $0x10] sm:$0xff]  ;;  %v1761_v0 = vshrl.u32 %v9100_v53, 16  ;;  %v1764_v1 = vshll.u32 %v9100_v53, 16 }
  0x1c   : > { %v9773_v40 = vld [vmem:[%s9692_s27 + $0x40] sm:$0xff]   ;;  %v8865_v56 = vld [vmem:[%s9692_s27 + $0xc8] sm:$0xff]   ;;  %v1753_v62 = vshrl.u32 %v8877_v54, 16  ;;  %v1756_v63 = vshll.u32 %v8877_v54, 16  ;;  %v8363_v2 = vld [vmem:[%s9692_s27 + $0x18] sm:$0xff]  ;;  %v2550_v3 = vshll.u32 %v8362_v57, 16 }
  0x1d   : > { %v9482_v52 = vld [vmem:[%s9692_s27 + $0x1c] sm:$0xf0]   ;;  %v8873_v58 = vld [vmem:[%s9692_s27 + $0x108] sm:$0xff]   ;;  %v1763_v10 = vrot.slane %v1761_v0, 3  ;;  %v1766_v11 = vrot.slane %v1764_v1, 4  ;;  %v2548_v12 = vshrl.u32 %v8362_v57, 16 }
  0x1e   : > { %v9806_v59 = vld [vmem:[%s9692_s27 + $0x48] sm:$0xff]   ;;  %v9163_v61 = vor.u32 %v9482_v52, %v9162_v51  ;;  %v1755_v8 = vrot.slane %v1753_v62, 3  ;;  %v1758_v9 = vrot.slane %v1756_v63, 4  ;;  %v2552_v14 = vrot.slane %v2550_v3, 1  ;;  %v8364_v44 = vld [vmem:[%s9692_s27 + $0x20] sm:$0xff] }
  0x1f   : > { %v9484_v60 = vld [vmem:[%s9692_s27 + $0x24] sm:$0xff]   ;;  %v2555_v15 = vshll.u32 %v8363_v2, 16  ;;  %v9486_v41 = vld [vmem:[%s9692_s27 + $0x2c] sm:$0xff]   ;;  %v2559_v52 = vshrl.u32 %v8363_v2, 16  ;;  %v2563_v53 = vshll.u32 %v8364_v44, 16 }
  0x20   : > { %v3370_v4 = vshrl.u32 %v9163_v61, 16  ;;  %v3373_v5 = vshll.u32 %v9163_v61, 16  ;;  %v3378_v6 = vshrl.u32 %v9484_v60, 16  ;;  %v3381_v7 = vshll.u32 %v9484_v60, 16  ;;  %v9104_v2 = vld [vmem:[%s9692_s27 + $0x24] sm:$0xff]  }
  0x21   : > { %v3387_v45 = vshrl.u32 %v9486_v41, 16  ;;  %v3390_v46 = vshll.u32 %v9486_v41, 16  ;;  %v9106_v41 = vld [vmem:[%s9692_s27 + $0x2c] sm:$0xff]  }
  0x22   : > { %v3372_v16 = vrot.slane %v3370_v4, 3 }
  0x23   : > { %7690 = vmatmul.msk.bf16.gmra.mxu1 %vm1443_vm2, %v9706_v17  ;;  %7698 = vmatmul.msk.bf16.gmra.mxu2 %vm1443_vm2, %v8859_v18  ;;  %v3375_v18 = vrot.slane %v3373_v5, 4  ;;  %v9488_v5 = vld [vmem:[%s9692_s27 + $0x34] sm:$0xff]  }
  0x26   : > { %7706 = vmatmul.msk.bf16.gmra.mxu3 %vm1443_vm2, %v8867_v19  ;;  %7682 = vmatmul.msk.bf16.gmra.mxu0 %vm1443_vm2, %v8843_v20  ;;  %v3380_v19 = vrot.slane %v3378_v6, 3  ;;  %v3383_v20 = vrot.slane %v3381_v7, 4  ;;  %v1779_v6 = vshrl.u32 %v9104_v2, 16  ;;  %v1782_v7 = vshll.u32 %v9104_v2, 16 }
  0x33   : > { %7691 = vmatmul.msk.bf16.gmra.mxu1 %vm1443_vm2, %v9717_v21  ;;  %7699 = vmatmul.msk.bf16.gmra.mxu2 %vm1443_vm2, %v8860_v22  ;;  %v1759_v22 = vor.u32 %v1758_v9, %v1755_v8  ;;  %v8365_v8 = vld [vmem:[%s9692_s27 + $0x28] sm:$0xff]  ;;  %v3396_v9 = vshrl.u32 %v9488_v5, 16 }
  0x36   : > { %7707 = vmatmul.msk.bf16.gmra.mxu3 %vm1443_vm2, %v8868_v23  ;;  %7683 = vmatmul.msk.bf16.gmra.mxu0 %vm1443_vm2, %v9722_v24  ;;  %v1767_v23 = vor.u32 %v1766_v11, %v1763_v10  ;;  %v3399_v10 = vshll.u32 %v9488_v5, 16 }
  0x43   : > { %7692 = vmatmul.msk.bf16.gmra.mxu1 %vm1443_vm2, %v9731_v25  ;;  %7700 = vmatmul.msk.bf16.gmra.mxu2 %vm1443_vm2, %v8861_v26  ;;  %v2553_v26 = vor.u32 %v2552_v14, %v2548_v12 }
  0x46   : > { %7708 = vmatmul.msk.bf16.gmra.mxu3 %vm1443_vm2, %v8869_v27  ;;  %7684 = vmatmul.msk.bf16.gmra.mxu0 %vm1443_vm2, %v9736_v28  ;;  %v2557_v27 = vrot.slane %v2555_v15, 1  ;;  %v1781_v15 = vrot.slane %v1779_v6, 3 }
  0x48   : > { %v2561_v57 = vor.u32 %v2559_v52, %v2557_v27 }
  0x53   : > { %7693 = vmatmul.msk.bf16.gmra.mxu1 %vm1443_vm2, %v9745_v29  ;;  %7701 = vmatmul.msk.bf16.gmra.mxu2 %vm1443_vm2, %v8862_v30  ;;  %v3376_v30 = vor.u32 %v3375_v18, %v3372_v16  ;;  %v1784_v16 = vrot.slane %v1782_v7, 4  ;;  %v2567_v18 = vshrl.u32 %v8364_v44, 16  ;;  %v9490_v44 = vld [vmem:[%s9692_s27 + $0x3c] sm:$0xff]  }
  0x54   : > { %v3408_v52 = vshll.u32 %v9490_v44, 16 }
  0x56   : > { %7709 = vmatmul.msk.bf16.gmra.mxu3 %vm1443_vm2, %v8870_v31  ;;  %7685 = vmatmul.msk.bf16.gmra.mxu0 %vm1443_vm2, %v9750_v32  ;;  %v3384_v31 = vor.u32 %v3383_v20, %v3380_v19  ;;  %v2571_v19 = vshll.u32 %v8365_v8, 16 }
  0x63   : > { %7694 = vmatmul.msk.bf16.gmra.mxu1 %vm1443_vm2, %v8855_v33  ;;  %7702 = vmatmul.msk.bf16.gmra.mxu2 %vm1443_vm2, %v8863_v34  ;;  %v1768_v34 = vsel %vm1751_vm3, %v1759_v22, %v1767_v23  ;;  %v3398_v22 = vrot.slane %v3396_v9, 3 }
  0x66   : > { %7710 = vmatmul.msk.bf16.gmra.mxu3 %vm1443_vm2, %v8871_v35  ;;  %7686 = vmatmul.msk.bf16.gmra.mxu0 %vm1443_vm2, %v9762_v36  ;;  %v2558_v35 = vsel %vm2546_vm4, %v2553_v26, %v2557_v27  ;;  %v2573_v27 = vrot.slane %v2571_v19, 1  ;;  %v9492_v19 = vld [vmem:[%s9692_s27 + $0x44] sm:$0xff]  }
  0x73   : > { %7695 = vmatmul.msk.bf16.gmra.mxu1 %vm1443_vm2, %v8856_v37  ;;  %7703 = vmatmul.msk.bf16.gmra.mxu2 %vm1443_vm2, %v8864_v38  ;;  %v9102_v37 = vld [vmem:[%s9692_s27 + $0x1c] sm:$0xff]  }
  0x74   : > { %v1770_v42 = vshrl.u32 %v9102_v37, 16  ;;  %v1773_v43 = vshll.u32 %v9102_v37, 16 }
  0x76   : > { %7711 = vmatmul.msk.bf16.gmra.mxu3 %vm1443_vm2, %v8872_v39  ;;  %7687 = vmatmul.msk.bf16.gmra.mxu0 %vm1443_vm2, %v9773_v40  ;;  %v3385_v39 = vsel %vm1751_vm3, %v3376_v30, %v3384_v31  ;;  %v1772_v50 = vrot.slane %v1770_v42, 3  ;;  %v1775_v51 = vrot.slane %v1773_v43, 4 }
  0x83   : > { %7696 = vmatmul.msk.bf16.gmra.mxu1 %vm1443_vm2, %v8857_v55  ;;  %7704 = vmatmul.msk.bf16.gmra.mxu2 %vm1443_vm2, %v8865_v56  ;;  %v3392_v55 = vrot.slane %v3390_v46, 4  ;;  %v1776_v56 = vor.u32 %v1775_v51, %v1772_v50  ;;  %v1791_v46 = vshll.u32 %v9106_v41, 16  ;;  %v8366_v50 = vld [vmem:[%s9692_s27 + $0x30] sm:$0xff]  ;;  %v3405_v51 = vshrl.u32 %v9490_v44, 16 }
  0x85   : > { %v1777_v0 = vsel %vm1751_vm3, %v1767_v23, %v1776_v56  ;;  %v3401_v23 = vrot.slane %v3399_v10, 4 }
  0x86   : > { %7712 = vmatmul.msk.bf16.gmra.mxu3 %vm1443_vm2, %v8873_v58  ;;  %7688 = vmatmul.msk.bf16.gmra.mxu0 %vm1443_vm2, %v9806_v59  ;;  %v2565_v58 = vrot.slane %v2563_v53, 1 }
  0x87   : > { %v3402_v30 = vor.u32 %v3401_v23, %v3398_v22  ;;  %v8367_v23 = vld [vmem:[%s9692_s27 + $0x38] sm:$0xff] }
  0x88   : > { %v2566_v1 = vsel %vm2546_vm4, %v2561_v57, %v2565_v58  ;;  %v2569_v26 = vor.u32 %v2567_v18, %v2565_v58  ;;  %v1793_v57 = vrot.slane %v1791_v46, 4  ;;  %v2575_v58 = vshrl.u32 %v8365_v8, 16 }
  0x90   : > { %v9815_v33 = vpop.f32.mrf.mxu1 }
  0x93   : > { %v9820_v38 = vpop.f32.mrf.mxu0  ;;  %7713 = vmatmul.msk.bf16.vlgmr.msrb.gmra.mxu1 %vm1443_vm2, %v1768_v34  ;;  %7874 = vmatmul.msk.bf16.vlgmr.msrb.gmra.mxu2 %vm1443_vm2, %v2558_v35 }
  0x96   : > { %7907 = vmatmul.msk.bf16.vlgmr.msrb.gmra.mxu3 %vm1443_vm2, %v3385_v39  ;;  %7940 = vmatmul.msk.bf16.vlgmr.msrb.gmra.mxu0 %vm1443_vm2, %v9722_v24  ;;  %v9830_v47 = vpop.f32.mrf.mxu2  ;;  %v3389_v24 = vrot.slane %v3387_v45, 3  ;;  %v2574_v39 = vsel %vm2546_vm4, %v2569_v26, %v2573_v27  ;;  %v1788_v45 = vshrl.u32 %v9106_v41, 16  ;;  %v3417_v26 = vshll.u32 %v9492_v19, 16 }
  0x97   : > { %v2587_v41 = vshll.u32 %v8367_v23, 16 }
  0x98   : > { %v9834_v49 = vpop.f32.mrf.mxu1  ;;  %v3393_v60 = vor.u32 %v3392_v55, %v3389_v24 }
  0x99   : > { %v9832_v48 = vpop.f32.mrf.mxu3 }
  0x9a   : > { %11293 = vst [vmem:[#allocation2_spill] sm:$0xff] %v9832_v48  ;;  %v3394_v4 = vsel %vm1751_vm3, %v3384_v31, %v3393_v60  ;;  %v3403_v43 = vsel %vm1751_vm3, %v3393_v60, %v3402_v30  ;;  %v2579_v60 = vshll.u32 %v8366_v50, 16 }
  0x9b   : > { %v9836_v54 = vpop.f32.mrf.mxu0 }
  0x9c   : > { %v2581_v5 = vrot.slane %v2579_v60, 1 }
  0x9e   : > { %v9838_v61 = vpop.f32.mrf.mxu2 }
  0xa0   : > { %v9842_v63 = vpop.f32.mrf.mxu1 }
  0xa1   : > { %v9840_v62 = vpop.f32.mrf.mxu3 }
  0xa2   : > { %11294 = vst [vmem:[#allocation3_spill] sm:$0xff] %v9840_v62 }
  0xa3   : > { %v9847_v3 = vpop.f32.mrf.mxu0  ;;  %7714 = vmatmul.msk.bf16.gmra.mxu1 %vm1443_vm2, %v1777_v0  ;;  %7875 = vmatmul.msk.bf16.gmra.mxu2 %vm1443_vm2, %v2566_v1  ;;  %v3410_v1 = vrot.slane %v3408_v52, 4 }
  0xa6   : > { %7908 = vmatmul.msk.bf16.gmra.mxu3 %vm1443_vm2, %v3394_v4  ;;  %7941 = vmatmul.msk.bf16.gmra.mxu0 %vm1443_vm2, %v9736_v28  ;;  %v9857_v11 = vpop.f32.mrf.mxu2  ;;  %v1785_v28 = vor.u32 %v1784_v16, %v1781_v15  ;;  %v2577_v4 = vor.u32 %v2575_v58, %v2573_v27  ;;  %v9108_v15 = vld [vmem:[%s9692_s27 + $0x34] sm:$0xff]  }
  0xa7   : > { %v1800_v22 = vshll.u32 %v9108_v15, 16 }
  0xa8   : > { %v1603_v14 = vpop.f32.mrf.mxu1  ;;  %v1786_v37 = vsel %vm1751_vm3, %v1776_v56, %v1785_v28  ;;  %v1790_v56 = vrot.slane %v1788_v45, 3  ;;  %v2582_v8 = vsel %vm2546_vm4, %v2577_v4, %v2581_v5  ;;  %v3419_v45 = vrot.slane %v3417_v26, 4 }
  0xa9   : > { %v9859_v12 = vpop.f32.mrf.mxu3  ;;  %v2591_v26 = vshrl.u32 %v8367_v23, 16 }
  0xaa   : > { %11295 = vst [vmem:[#allocation4_spill] sm:$0xff] %v9859_v12  ;;  %v1794_v2 = vor.u32 %v1793_v57, %v1790_v56 }
  0xab   : > { %v1563_v20 = vpop.f32.mrf.mxu0 }
  0xac   : > { %v1795_v14 = vsel %vm1751_vm3, %v1785_v28, %v1794_v2  ;;  %v1797_v20 = vshrl.u32 %v9108_v15, 16  ;;  %v3414_v28 = vshrl.u32 %v9492_v19, 16 }
  0xae   : > { %v1643_v31 = vpop.f32.mrf.mxu2  ;;  %v3416_v44 = vrot.slane %v3414_v28, 3 }
  0xb0   : > { %v9861_v35 = vpop.f32.mrf.mxu1  ;;  %v3420_v52 = vor.u32 %v3419_v45, %v3416_v44 }
  0xb1   : > { %v1683_v34 = vpop.f32.mrf.mxu3 }
  0xb2   : > { %v1799_v34 = vrot.slane %v1797_v20, 3 }
  0xb3   : > { %v9866_v42 = vpop.f32.mrf.mxu0  ;;  %7715 = vmatmul.msk.bf16.gmra.mxu1 %vm1443_vm2, %v1786_v37  ;;  %7876 = vmatmul.msk.bf16.gmra.mxu2 %vm1443_vm2, %v2574_v39  ;;  %v1802_v37 = vrot.slane %v1800_v22, 4  ;;  %v2583_v39 = vshrl.u32 %v8366_v50, 16 }
  0xb5   : > { %v2585_v46 = vor.u32 %v2583_v39, %v2581_v5 }
  0xb6   : > { %7909 = vmatmul.msk.bf16.gmra.mxu3 %vm1443_vm2, %v3403_v43  ;;  %7942 = vmatmul.msk.bf16.gmra.mxu0 %vm1443_vm2, %v9750_v32  ;;  %v9876_v53 = vpop.f32.mrf.mxu2  ;;  %v3407_v32 = vrot.slane %v3405_v51, 3  ;;  %v2589_v51 = vrot.slane %v2587_v41, 1 }
  0xb8   : > { %v9880_v55 = vpop.f32.mrf.mxu1  ;;  %v3411_v6 = vor.u32 %v3410_v1, %v3407_v32  ;;  %v2590_v32 = vsel %vm2546_vm4, %v2585_v46, %v2589_v51  ;;  %v9110_v1 = vld [vmem:[%s9692_s27 + $0x3c] sm:$0xff]   ;;  %v2593_v41 = vor.u32 %v2591_v26, %v2589_v51 }
  0xb9   : > { %v9878_v24 = vpop.f32.mrf.mxu3  ;;  %v1806_v5 = vshrl.u32 %v9110_v1, 16 }
  0xba   : > { %11296 = vst [vmem:[#allocation5_spill] sm:$0xff] %v9878_v24  ;;  %v3412_v18 = vsel %vm1751_vm3, %v3402_v30, %v3411_v6  ;;  %v3421_v4 = vsel %vm1751_vm3, %v3411_v6, %v3420_v52 }
  0xbb   : > { %v9882_v0 = vpop.f32.mrf.mxu0  ;;  %v1808_v22 = vrot.slane %v1806_v5, 3 }
  0xbe   : > { %v9884_v7 = vpop.f32.mrf.mxu2 }
  0xc0   : > { %v9888_v10 = vpop.f32.mrf.mxu1 }
  0xc1   : > { %v9886_v9 = vpop.f32.mrf.mxu3 }
  0xc2   : > { %11297 = vst [vmem:[#allocation6_spill] sm:$0xff] %v9886_v9 }
  0xc3   : > { %v9893_v16 = vpop.f32.mrf.mxu0  ;;  %7716 = vmatmul.msk.bf16.gmra.mxu1 %vm1443_vm2, %v1795_v14  ;;  %7877 = vmatmul.msk.bf16.gmra.mxu2 %vm1443_vm2, %v2582_v8  ;;  %v9494_v14 = vld [vmem:[%s9692_s27 + $0x4c] sm:$0xff]   ;;  %v1809_v8 = vshll.u32 %v9110_v1, 16 }
  0xc4   : > { %v3423_v15 = vshrl.u32 %v9494_v14, 16 }
  0xc5   : > { %v1811_v28 = vrot.slane %v1809_v8, 4 }
  0xc6   : > { %7910 = vmatmul.msk.bf16.gmra.mxu3 %vm1443_vm2, %v3412_v18  ;;  %7943 = vmatmul.msk.bf16.gmra.mxu0 %vm1443_vm2, %v9762_v36  ;;  %v9903_v27 = vpop.f32.mrf.mxu2  ;;  %v1803_v36 = vor.u32 %v1802_v37, %v1799_v34  ;;  %v3426_v18 = vshll.u32 %v9494_v14, 16 }
  0xc7   : > { %v1812_v39 = vor.u32 %v1811_v28, %v1808_v22 }
  0xc8   : > { %v1613_v30 = vpop.f32.mrf.mxu1  ;;  %v1804_v60 = vsel %vm1751_vm3, %v1794_v2, %v1803_v36  ;;  %v8368_v2 = vld [vmem:[%s9692_s27 + $0x40] sm:$0xff]  ;;  %v3428_v37 = vrot.slane %v3426_v18, 4 }
  0xc9   : > { %v9905_v31 = vpop.f32.mrf.mxu3  ;;  %v2595_v30 = vshll.u32 %v8368_v2, 16  ;;  %v2599_v26 = vshrl.u32 %v8368_v2, 16 }
  0xca   : > { %11298 = vst [vmem:[#allocation7_spill] sm:$0xff] %v9905_v31 }
  0xcb   : > { %v1573_v43 = vpop.f32.mrf.mxu0 }
  0xcc   : > { %v2597_v43 = vrot.slane %v2595_v30, 1 }
  0xce   : > { %v1653_v56 = vpop.f32.mrf.mxu2  ;;  %v2598_v23 = vsel %vm2546_vm4, %v2593_v41, %v2597_v43 }
  0xd0   : > { %v9907_v58 = vpop.f32.mrf.mxu1 }
  0xd1   : > { %v1693_v57 = vpop.f32.mrf.mxu3 }
  0xd2   : > { %v1813_v57 = vsel %vm1751_vm3, %v1803_v36, %v1812_v39  ;;  %v8369_v36 = vld [vmem:[%s9692_s27 + $0x48] sm:$0xff] }
  0xd3   : > { %v9912_v50 = vpop.f32.mrf.mxu0  ;;  %7717 = vmatmul.msk.bf16.gmra.mxu1 %vm1443_vm2, %v1804_v60  ;;  %7878 = vmatmul.msk.bf16.gmra.mxu2 %vm1443_vm2, %v2590_v32  ;;  %v9112_v60 = vld [vmem:[%s9692_s27 + $0x44] sm:$0xff]   ;;  %v2603_v30 = vshll.u32 %v8369_v36, 16 }
  0xd4   : > { %v1815_v51 = vshrl.u32 %v9112_v60, 16  ;;  %v1818_v14 = vshll.u32 %v9112_v60, 16 }
  0xd6   : > { %7911 = vmatmul.msk.bf16.gmra.mxu3 %vm1443_vm2, %v3421_v4  ;;  %7944 = vmatmul.msk.bf16.gmra.mxu0 %vm1443_vm2, %v9773_v40  ;;  %v9922_v19 = vpop.f32.mrf.mxu2  ;;  %v3425_v40 = vrot.slane %v3423_v15, 3  ;;  %v9496_v4 = vld [vmem:[%s9692_s27 + $0x54] sm:$0xff]   ;;  %v1817_v22 = vrot.slane %v1815_v51, 3  ;;  %v1820_v28 = vrot.slane %v1818_v14, 4  ;;  %v9114_v14 = vld [vmem:[%s9692_s27 + $0x4c] sm:$0xff]  }
  0xd7   : > { %v3432_v5 = vshrl.u32 %v9496_v4, 16  ;;  %v3435_v8 = vshll.u32 %v9496_v4, 16 }
  0xd8   : > { %v9926_v6 = vpop.f32.mrf.mxu1  ;;  %v3429_v44 = vor.u32 %v3428_v37, %v3425_v40 }
  0xd9   : > { %v9924_v20 = vpop.f32.mrf.mxu3  ;;  %v3434_v37 = vrot.slane %v3432_v5, 3  ;;  %v3437_v41 = vrot.slane %v3435_v8, 4  ;;  %v9498_v5 = vld [vmem:[%s9692_s27 + $0x5c] sm:$0xff]   ;;  %v1827_v8 = vshll.u32 %v9114_v14, 16 }
  0xda   : > { %11299 = vst [vmem:[#allocation8_spill] sm:$0xff] %v9924_v20  ;;  %v3430_v1 = vsel %vm1751_vm3, %v3420_v52, %v3429_v44 }
  0xdb   : > { %v9928_v34 = vpop.f32.mrf.mxu0  ;;  %v3438_v60 = vor.u32 %v3437_v41, %v3434_v37  ;;  %v1829_v41 = vrot.slane %v1827_v8, 4  ;;  %v9116_v8 = vld [vmem:[%s9692_s27 + $0x54] sm:$0xff]  }
  0xde   : > { %v9930_v45 = vpop.f32.mrf.mxu2 }
  0xe0   : > { %v9934_v56 = vpop.f32.mrf.mxu1 }
  0xe1   : > { %v9932_v46 = vpop.f32.mrf.mxu3 }
  0xe2   : > { %11300 = vst [vmem:[#allocation9_spill] sm:$0xff] %v9932_v46 }
  0xe3   : > { %v9939_v32 = vpop.f32.mrf.mxu0  ;;  %7718 = vmatmul.msk.bf16.gmra.mxu1 %vm1443_vm2, %v1813_v57  ;;  %7879 = vmatmul.msk.bf16.gmra.mxu2 %vm1443_vm2, %v2598_v23  ;;  %v2601_v57 = vor.u32 %v2599_v26, %v2597_v43  ;;  %v2605_v23 = vrot.slane %v2603_v30, 1  ;;  %v1824_v43 = vshrl.u32 %v9114_v14, 16 }
  0xe5   : > { %v2606_v51 = vsel %vm2546_vm4, %v2601_v57, %v2605_v23  ;;  %v1826_v37 = vrot.slane %v1824_v43, 3  ;;  %v2607_v57 = vshrl.u32 %v8369_v36, 16 }
  0xe6   : > { %7912 = vmatmul.msk.bf16.gmra.mxu3 %vm1443_vm2, %v3430_v1  ;;  %7945 = vmatmul.msk.bf16.gmra.mxu0 %vm1443_vm2, %v9806_v59  ;;  %v9949_v15 = vpop.f32.mrf.mxu2  ;;  %v1821_v59 = vor.u32 %v1820_v28, %v1817_v22  ;;  %v3441_v22 = vshrl.u32 %v9498_v5, 16  ;;  %v3444_v28 = vshll.u32 %v9498_v5, 16 }
  0xe7   : > { %v2609_v14 = vor.u32 %v2607_v57, %v2605_v23  ;;  %v1833_v23 = vshrl.u32 %v9116_v8, 16 }
  0xe8   : > { %v1623_v52 = vpop.f32.mrf.mxu1 }
  0xe9   : > { %v9951_v18 = vpop.f32.mrf.mxu3  ;;  %v1822_v52 = vsel %vm1751_vm3, %v1812_v39, %v1821_v59  ;;  %v8370_v39 = vld [vmem:[%s9692_s27 + $0x50] sm:$0xff] }
  0xea   : > { %11301 = vst [vmem:[#allocation10_spill] sm:$0xff] %v9951_v18 }
  0xeb   : > { %v1583_v40 = vpop.f32.mrf.mxu0 }
  0xec   : > { %v3439_v40 = vsel %vm1751_vm3, %v3429_v44, %v3438_v60 }
  0xee   : > { %v1663_v1 = vpop.f32.mrf.mxu2 }
  0xef   : > { %v2611_v1 = vshll.u32 %v8370_v39, 16 }
  0xf0   : > { %v9953_v46 = vpop.f32.mrf.mxu1 }
  0xf1   : > { %v1703_v4 = vpop.f32.mrf.mxu3 }
  0xf3   : > { %v9958_v2 = vpop.f32.mrf.mxu0  ;;  %7719 = vmatmul.msk.bf16.gmra.mxu1 %vm1443_vm2, %v1822_v52  ;;  %7880 = vmatmul.msk.bf16.gmra.mxu2 %vm1443_vm2, %v2606_v51  ;;  %v3446_v52 = vrot.slane %v3444_v28, 4  ;;  %v1830_v51 = vor.u32 %v1829_v41, %v1826_v37  ;;  %v9500_v28 = vld [vmem:[%s9692_s27 + $0x64] sm:$0xff]   ;;  %v1836_v37 = vshll.u32 %v9116_v8, 16 }
  0xf4   : > { %v3450_v41 = vshrl.u32 %v9500_v28, 16  ;;  %v3453_v57 = vshll.u32 %v9500_v28, 16 }
  0xf5   : > { %v1831_v43 = vsel %vm1751_vm3, %v1821_v59, %v1830_v51  ;;  %v8371_v59 = vld [vmem:[%s9692_s27 + $0x58] sm:$0xff] }
  0xf6   : > { %7913 = vmatmul.msk.bf16.gmra.mxu3 %vm1443_vm2, %v3439_v40  ;;  %7946 = vmatmul.msk.bf16.gmra.mxu0 %vm1443_vm2, %v9695_v13  ;;  %v9968_v26 = vpop.f32.mrf.mxu2  ;;  %v3443_v13 = vrot.slane %v3441_v22, 3  ;;  %v2613_v40 = vrot.slane %v2611_v1, 1  ;;  %v3455_v9 = vrot.slane %v3453_v57, 4 }
  0xf8   : > { %v9972_v44 = vpop.f32.mrf.mxu1  ;;  %v3447_v5 = vor.u32 %v3446_v52, %v3443_v13  ;;  %v2614_v36 = vsel %vm2546_vm4, %v2609_v14, %v2613_v40  ;;  %v1835_v52 = vrot.slane %v1833_v23, 3  ;;  %v1838_v14 = vrot.slane %v1836_v37, 4 }
  0xf9   : > { %v9970_v30 = vpop.f32.mrf.mxu3 }
  0xfa   : > { %11302 = vst [vmem:[#allocation11_spill] sm:$0xff] %v9970_v30  ;;  %v3448_v22 = vsel %vm1751_vm3, %v3438_v60, %v3447_v5 }
  0xfb   : > { %v9974_v4 = vpop.f32.mrf.mxu0 }
  0xfe   : > { %v9976_v18 = vpop.f32.mrf.mxu2 }
  0xff   : > { %11303 = vst [vmem:[#allocation12_spill] sm:$0xff] %v9976_v18 }
 0x100   : > { %v9980_v20 = vpop.f32.mrf.mxu1 }
 0x101   : > { %v9978_v30 = vpop.f32.mrf.mxu3 }
 0x102   : > { %11304 = vst [vmem:[#allocation13_spill] sm:$0xff] %v9978_v30  ;;  %v3452_v30 = vrot.slane %v3450_v41, 3 }
 0x103   : > { %v9985_v31 = vpop.f32.mrf.mxu0  ;;  %7720 = vmatmul.msk.bf16.gmra.mxu1 %vm1443_vm2, %v1831_v43  ;;  %7881 = vmatmul.msk.bf16.gmra.mxu2 %vm1443_vm2, %v2614_v36  ;;  %v2615_v43 = vshrl.u32 %v8370_v39, 16  ;;  %v2619_v36 = vshll.u32 %v8371_v59, 16 }
 0x104   : > { %v3456_v12 = vor.u32 %v3455_v9, %v3452_v30  ;;  %v8372_v30 = vld [vmem:[%s9692_s27 + $0x60] sm:$0xff] }
 0x105   : > { %v2617_v24 = vor.u32 %v2615_v43, %v2613_v40  ;;  %v2621_v8 = vrot.slane %v2619_v36, 1  ;;  %v2623_v43 = vshrl.u32 %v8371_v59, 16  ;;  %v2627_v36 = vshll.u32 %v8372_v30, 16 }
 0x106   : > { %7914 = vmatmul.msk.bf16.gmra.mxu3 %vm1443_vm2, %v3448_v22  ;;  %7947 = vmatmul.msk.bf16.gmra.mxu0 %vm1443_vm2, %v9706_v17  ;;  %v9995_v1 = vpop.f32.mrf.mxu2  ;;  %v1839_v17 = vor.u32 %v1838_v14, %v1835_v52  ;;  %v3457_v39 = vsel %vm1751_vm3, %v3447_v5, %v3456_v12 }
 0x107   : > { %11305 = vst [vmem:[#allocation14_spill] sm:$0xff] %v9995_v1  ;;  %v2622_v23 = vsel %vm2546_vm4, %v2617_v24, %v2621_v8  ;;  %v9502_v1 = vld [vmem:[%s9692_s27 + $0x6c] sm:$0xff]  }
 0x108   : > { %v1633_v60 = vpop.f32.mrf.mxu1  ;;  %v3459_v24 = vshrl.u32 %v9502_v1, 16  ;;  %v3462_v40 = vshll.u32 %v9502_v1, 16 }
 0x109   : > { %v9997_v13 = vpop.f32.mrf.mxu3  ;;  %v9118_v60 = vld [vmem:[%s9692_s27 + $0x5c] sm:$0xff]  }
 0x10a   : > { %11306 = vst [vmem:[#allocation15_spill] sm:$0xff] %v9997_v13  ;;  %v1840_v13 = vsel %vm1751_vm3, %v1830_v51, %v1839_v17  ;;  %v1845_v9 = vshll.u32 %v9118_v60, 16 }
 0x10b   : > { %v1593_v22 = vpop.f32.mrf.mxu0 }
 0x10e   : > { %v1673_v28 = vpop.f32.mrf.mxu2 }
 0x110   : > { %v2156_v48 = vpop.f32.mrf.mxu1 }
 0x111   : > { %v1713_v62 = vpop.f32.mrf.mxu3  ;;  %v2157_v51 = vadd.f32 %v2156_v48, %v9820_v38  ;;  %v2625_v38 = vor.u32 %v2623_v43, %v2621_v8  ;;  %v2629_v48 = vrot.slane %v2627_v36, 1 }
 0x112   : > { %v1842_v62 = vshrl.u32 %v9118_v60, 16 }
 0x113   : > { %v4139_v37 = vpop.f32.mrf.mxu0  ;;  %7721 = vmatmul.msk.bf16.gmra.mxu1 %vm1443_vm2, %v1840_v13  ;;  %7882 = vmatmul.msk.bf16.gmra.mxu2 %vm1443_vm2, %v2622_v23  ;;  %v1847_v13 = vrot.slane %v1845_v9, 4  ;;  %v3461_v23 = vrot.slane %v3459_v24, 3  ;;  %v9120_v24 = vld [vmem:[%s9692_s27 + $0x64] sm:$0xff]  }
 0x114   : > { %v1844_v14 = vrot.slane %v1842_v62, 3  ;;  %v1854_v8 = vshll.u32 %v9120_v24, 16 }
 0x116   : > { %7915 = vmatmul.msk.bf16.gmra.mxu3 %vm1443_vm2, %v3457_v39  ;;  %7948 = vmatmul.msk.bf16.gmra.mxu0 %vm1443_vm2, %v9717_v21  ;;  %v2915_v41 = vpop.f32.mrf.mxu2  ;;  %v3464_v21 = vrot.slane %v3462_v40, 4  ;;  %v1848_v60 = vor.u32 %v1847_v13, %v1844_v14  ;;  %v9504_v14 = vld [vmem:[%s9692_s27 + $0x74] sm:$0xff]  }
 0x117   : > { %v3075_v57 = vadd.f32 %v2915_v41, %v2157_v51  ;;  %v3468_v13 = vshrl.u32 %v9504_v14, 16  ;;  %v3471_v43 = vshll.u32 %v9504_v14, 16 }
 0x118   : > { %v2158_v52 = vpop.f32.mrf.mxu1  ;;  %v3465_v51 = vor.u32 %v3464_v21, %v3461_v23  ;;  %v1849_v9 = vsel %vm1751_vm3, %v1839_v17, %v1848_v60  ;;  %v1851_v17 = vshrl.u32 %v9120_v24, 16 }
 0x119   : > { %v3773_v5 = vpop.f32.mrf.mxu3  ;;  %v2159_v1 = vadd.f32 %v2158_v52, %v9836_v54  ;;  %v8373_v52 = vld [vmem:[%s9692_s27 + $0x68] sm:$0xff] }
 0x11a   : > { %v3933_v22 = vadd.f32 %v3773_v5, %v3075_v57  ;;  %v2630_v57 = vsel %vm2546_vm4, %v2625_v38, %v2629_v48  ;;  %v3466_v5 = vsel %vm1751_vm3, %v3456_v12, %v3465_v51  ;;  %v1853_v21 = vrot.slane %v1851_v17, 3 }
 0x11b   : > { %v4141_v28 = vpop.f32.mrf.mxu0  ;;  %v1856_v38 = vrot.slane %v1854_v8, 4  ;;  %v9122_v8 = vld [vmem:[%s9692_s27 + $0x6c] sm:$0xff]  }
 0x11c   : > { %v10011_v39 = vadd.f32 %v4139_v37, %v3933_v22 }
 0x11d   : > { %v1857_v24 = vor.u32 %v1856_v38, %v1853_v21 }
 0x11e   : > { %v2917_v41 = vpop.f32.mrf.mxu2 }
 0x11f   : > { %v3076_v18 = vadd.f32 %v2917_v41, %v2159_v1  ;;  %v2635_v1 = vshll.u32 %v8373_v52, 16  ;;  %v1858_v17 = vsel %vm1751_vm3, %v1848_v60, %v1857_v24 }
 0x120   : > { %v2161_v59 = vpop.f32.mrf.mxu1 }
 0x121   : > { %v3775_v62 = vpop.f32.mrf.mxu3 }
 0x122   : > { %v3934_v40 = vadd.f32 %v3775_v62, %v3076_v18  ;;  %v2162_v18 = vadd.f32 %v2161_v59, %v9847_v3  ;;  %v2637_v59 = vrot.slane %v2635_v1, 1 }
 0x123   : > { %v4144_v37 = vpop.f32.mrf.mxu0  ;;  %7722 = vmatmul.msk.bf16.gmra.mxu1 %vm1443_vm2, %v1849_v9  ;;  %7883 = vmatmul.msk.bf16.gmra.mxu2 %vm1443_vm2, %v2630_v57  ;;  %v3473_v9 = vrot.slane %v3471_v43, 4  ;;  %v8374_v43 = vld [vmem:[%s9692_s27 + $0x70] sm:$0xff] }
 0x124   : > { %v10021_v54 = vadd.f32 %v4141_v28, %v3934_v40  ;;  %v2631_v28 = vshrl.u32 %v8372_v30, 16 }
 0x126   : > { %7916 = vmatmul.msk.bf16.gmra.mxu3 %vm1443_vm2, %v3466_v5  ;;  %7949 = vmatmul.msk.bf16.gmra.mxu0 %vm1443_vm2, %v9731_v25  ;;  %v2920_v12 = vpop.f32.mrf.mxu2  ;;  %v3470_v25 = vrot.slane %v3468_v13, 3  ;;  %v2633_v3 = vor.u32 %v2631_v28, %v2629_v48  ;;  %v9506_v13 = vld [vmem:[%s9692_s27 + $0x7c] sm:$0xff]   ;;  %v1860_v48 = vshrl.u32 %v9122_v8, 16 }
 0x127   : > { %v3077_v36 = vadd.f32 %v2920_v12, %v2162_v18 }
 0x128   : > { %v2163_v23 = vpop.f32.mrf.mxu1  ;;  %v3474_v40 = vor.u32 %v3473_v9, %v3470_v25  ;;  %v2638_v30 = vsel %vm2546_vm4, %v2633_v3, %v2637_v59  ;;  %v1862_v1 = vrot.slane %v1860_v48, 3  ;;  %v2643_v25 = vshll.u32 %v8374_v43, 16 }
 0x129   : > { %v3778_v22 = vpop.f32.mrf.mxu3  ;;  %v3480_v23 = vshll.u32 %v9506_v13, 16 }
 0x12a   : > { %v3935_v41 = vadd.f32 %v3778_v22, %v3077_v36  ;;  %v3475_v36 = vsel %vm1751_vm3, %v3465_v51, %v3474_v40  ;;  %v3477_v22 = vshrl.u32 %v9506_v13, 16 }
 0x12b   : > { %v4146_v62 = vpop.f32.mrf.mxu0 }
 0x12c   : > { %v10028_v57 = vadd.f32 %v4144_v37, %v3935_v41  ;;  %v1863_v37 = vshll.u32 %v9122_v8, 16  ;;  %v2639_v62 = vshrl.u32 %v8373_v52, 16 }
 0x12e   : > { %v2922_v5 = vpop.f32.mrf.mxu2  ;;  %v1865_v41 = vrot.slane %v1863_v37, 4 }
 0x12f   : > { %v3479_v5 = vrot.slane %v3477_v22, 3  ;;  %v9124_v22 = vld [vmem:[%s9692_s27 + $0x74] sm:$0xff]  }
 0x130   : > { %v2166_v18 = vpop.f32.mrf.mxu1 }
 0x131   : > { %v3780_v14 = vpop.f32.mrf.mxu3  ;;  %v2167_v60 = vadd.f32 %v2166_v18, %v9866_v42  ;;  %v2641_v42 = vor.u32 %v2639_v62, %v2637_v59  ;;  %v2645_v18 = vrot.slane %v2643_v25, 1  ;;  %v9508_v59 = vld [vmem:[%s9692_s27 + $0x84] sm:$0xff]  }
 0x132   : > { %v3489_v62 = vshll.u32 %v9508_v59, 16 }
 0x133   : > { %v4149_v12 = vpop.f32.mrf.mxu0  ;;  %7723 = vmatmul.msk.bf16.gmra.mxu1 %vm1443_vm2, %v1858_v17  ;;  %7884 = vmatmul.msk.bf16.gmra.mxu2 %vm1443_vm2, %v2638_v30  ;;  %v1866_v17 = vor.u32 %v1865_v41, %v1862_v1  ;;  %v3486_v41 = vshrl.u32 %v9508_v59, 16 }
 0x135   : > { %v1867_v37 = vsel %vm1751_vm3, %v1857_v24, %v1866_v17  ;;  %v1869_v24 = vshrl.u32 %v9124_v22, 16 }
 0x136   : > { %7917 = vmatmul.msk.bf16.gmra.mxu3 %vm1443_vm2, %v3475_v36  ;;  %7950 = vmatmul.msk.bf16.gmra.mxu0 %vm1443_vm2, %v9745_v29  ;;  %v2925_v21 = vpop.f32.mrf.mxu2  ;;  %v3482_v29 = vrot.slane %v3480_v23, 4 }
 0x137   : > { %v3079_v38 = vadd.f32 %v2925_v21, %v2167_v60  ;;  %v2646_v60 = vsel %vm2546_vm4, %v2641_v42, %v2645_v18 }
 0x138   : > { %v2168_v28 = vpop.f32.mrf.mxu1  ;;  %v3483_v8 = vor.u32 %v3482_v29, %v3479_v5  ;;  %v1871_v29 = vrot.slane %v1869_v24, 3 }
 0x139   : > { %v3783_v51 = vpop.f32.mrf.mxu3  ;;  %v2169_v30 = vadd.f32 %v2168_v28, %v9882_v0  ;;  %v8375_v28 = vld [vmem:[%s9692_s27 + $0x78] sm:$0xff] }
 0x13a   : > { %v3937_v9 = vadd.f32 %v3783_v51, %v3079_v38  ;;  %v3484_v21 = vsel %vm1751_vm3, %v3474_v40, %v3483_v8  ;;  %v9044_v38 = vld [vmem:[%s9692_s27 + $0x78] sm:$0xff]   ;;  %v1872_v51 = vshll.u32 %v9124_v22, 16 }
 0x13b   : > { %v4151_v3 = vpop.f32.mrf.mxu0 }
 0x13c   : > { %v10042_v14 = vadd.f32 %v4149_v12, %v3937_v9  ;;  %v1874_v42 = vrot.slane %v1872_v51, 4  ;;  %v9126_v51 = vld [vmem:[%s9692_s27 + $0x7c] sm:$0xff]  }
 0x13e   : > { %v2927_v36 = vpop.f32.mrf.mxu2 }
 0x13f   : > { %v3080_v13 = vadd.f32 %v2927_v36, %v2169_v30  ;;  %v2647_v30 = vshrl.u32 %v8374_v43, 16 }
 0x140   : > { %v2171_v52 = vpop.f32.mrf.mxu1 }
 0x141   : > { %v3785_v48 = vpop.f32.mrf.mxu3  ;;  %v2172_v1 = vadd.f32 %v2171_v52, %v9893_v16  ;;  %v1875_v16 = vor.u32 %v1874_v42, %v1871_v29  ;;  %v2649_v52 = vor.u32 %v2647_v30, %v2645_v18  ;;  %v1878_v18 = vshrl.u32 %v9126_v51, 16 }
 0x142   : > { %v3938_v12 = vadd.f32 %v3785_v48, %v3080_v13  ;;  %v3488_v48 = vrot.slane %v3486_v41, 3 }
 0x143   : > { %v4154_v23 = vpop.f32.mrf.mxu0  ;;  %7724 = vmatmul.msk.bf16.gmra.mxu1 %vm1443_vm2, %v1867_v37  ;;  %7885 = vmatmul.msk.bf16.gmra.mxu2 %vm1443_vm2, %v2646_v60  ;;  %v3491_v37 = vrot.slane %v3489_v62, 4  ;;  %v1876_v43 = vsel %vm1751_vm3, %v1866_v17, %v1875_v16  ;;  %v9510_v62 = vld [vmem:[%s9692_s27 + $0x8c] sm:$0xff]  }
 0x144   : > { %v10053_v0 = vadd.f32 %v4151_v3, %v3938_v12  ;;  %v2651_v3 = vshll.u32 %v8375_v28, 16 }
 0x145   : > { %v3492_v12 = vor.u32 %v3491_v37, %v3488_v48 }
 0x146   : > { %7918 = vmatmul.msk.bf16.gmra.mxu3 %vm1443_vm2, %v3484_v21  ;;  %7951 = vmatmul.msk.bf16.gmra.mxu0 %vm1443_vm2, %v9044_v38  ;;  %v2930_v40 = vpop.f32.mrf.mxu2  ;;  %v2653_v22 = vrot.slane %v2651_v3, 1  ;;  %v1880_v3 = vrot.slane %v1878_v18, 3 }
 0x147   : > { %v3081_v25 = vadd.f32 %v2930_v40, %v2172_v1  ;;  %v3493_v41 = vsel %vm1751_vm3, %v3483_v8, %v3492_v12  ;;  %v9045_v40 = vld [vmem:[%s9692_s27 + $0x80] sm:$0xff]  }
 0x148   : > { %v2173_v5 = vpop.f32.mrf.mxu1  ;;  %v2654_v24 = vsel %vm2546_vm4, %v2649_v52, %v2653_v22 }
 0x149   : > { %v3788_v9 = vpop.f32.mrf.mxu3  ;;  %v3498_v5 = vshll.u32 %v9510_v62, 16 }
 0x14a   : > { %v3939_v36 = vadd.f32 %v3788_v9, %v3081_v25  ;;  %v8376_v25 = vld [vmem:[%s9692_s27 + $0x80] sm:$0xff]  ;;  %v3495_v9 = vshrl.u32 %v9510_v62, 16 }
 0x14b   : > { %v4156_v13 = vpop.f32.mrf.mxu0  ;;  %v2659_v48 = vshll.u32 %v8376_v25, 16 }
 0x14c   : > { %v10059_v60 = vadd.f32 %v4154_v23, %v3939_v36  ;;  %v1881_v23 = vshll.u32 %v9126_v51, 16  ;;  %v2655_v13 = vshrl.u32 %v8375_v28, 16 }
 0x14e   : > { %v2932_v21 = vpop.f32.mrf.mxu2  ;;  %v1883_v36 = vrot.slane %v1881_v23, 4 }
 0x14f   : > { %v3497_v21 = vrot.slane %v3495_v9, 3  ;;  %v9128_v9 = vld [vmem:[%s9692_s27 + $0x84] sm:$0xff]  }
 0x150   : > { %v2176_v59 = vpop.f32.mrf.mxu1 }
 0x151   : > { %v3790_v38 = vpop.f32.mrf.mxu3  ;;  %v2177_v17 = vadd.f32 %v2176_v59, %v9912_v50  ;;  %v2657_v50 = vor.u32 %v2655_v13, %v2653_v22  ;;  %v2661_v59 = vrot.slane %v2659_v48, 1  ;;  %v9512_v22 = vld [vmem:[%s9692_s27 + $0x94] sm:$0xff]  }
 0x152   : > { %v3500_v38 = vrot.slane %v3498_v5, 4  ;;  %v3507_v13 = vshll.u32 %v9512_v22, 16 }
 0x153   : > { %v4159_v1 = vpop.f32.mrf.mxu0  ;;  %7725 = vmatmul.msk.bf16.gmra.mxu1 %vm1443_vm2, %v1876_v43  ;;  %7886 = vmatmul.msk.bf16.gmra.mxu2 %vm1443_vm2, %v2654_v24  ;;  %v1884_v24 = vor.u32 %v1883_v36, %v1880_v3  ;;  %v3504_v36 = vshrl.u32 %v9512_v22, 16 }
 0x155   : > { %v1885_v23 = vsel %vm1751_vm3, %v1875_v16, %v1884_v24  ;;  %v1887_v16 = vshrl.u32 %v9128_v9, 16 }
 0x156   : > { %7919 = vmatmul.msk.bf16.gmra.mxu3 %vm1443_vm2, %v3493_v41  ;;  %7952 = vmatmul.msk.bf16.gmra.mxu0 %vm1443_vm2, %v9045_v40  ;;  %v2935_v29 = vpop.f32.mrf.mxu2  ;;  %v3501_v41 = vor.u32 %v3500_v38, %v3497_v21 }
 0x157   : > { %v3083_v42 = vadd.f32 %v2935_v29, %v2177_v17  ;;  %v2662_v17 = vsel %vm2546_vm4, %v2657_v50, %v2661_v59  ;;  %v1889_v38 = vrot.slane %v1887_v16, 3 }
 0x158   : > { %v2178_v30 = vpop.f32.mrf.mxu1  ;;  %v3502_v29 = vsel %vm1751_vm3, %v3492_v12, %v3501_v41 }
 0x159   : > { %v3793_v8 = vpop.f32.mrf.mxu3  ;;  %v2179_v51 = vadd.f32 %v2178_v30, %v9928_v34  ;;  %v8377_v30 = vld [vmem:[%s9692_s27 + $0x88] sm:$0xff] }
 0x15a   : > { %v3941_v37 = vadd.f32 %v3793_v8, %v3083_v42  ;;  %v9046_v42 = vld [vmem:[%s9692_s27 + $0x88] sm:$0xff]   ;;  %v1890_v8 = vshll.u32 %v9128_v9, 16 }
 0x15b   : > { %v4161_v52 = vpop.f32.mrf.mxu0 }
 0x15c   : > { %v10073_v43 = vadd.f32 %v4159_v1, %v3941_v37  ;;  %v1892_v50 = vrot.slane %v1890_v8, 4  ;;  %v9130_v8 = vld [vmem:[%s9692_s27 + $0x8c] sm:$0xff]  }
 0x15e   : > { %v2937_v40 = vpop.f32.mrf.mxu2 }
 0x15f   : > { %v3084_v62 = vadd.f32 %v2937_v40, %v2179_v51  ;;  %v2663_v51 = vshrl.u32 %v8376_v25, 16 }
 0x160   : > { %v2181_v28 = vpop.f32.mrf.mxu1 }
 0x161   : > { %v3795_v18 = vpop.f32.mrf.mxu3  ;;  %v2182_v3 = vadd.f32 %v2181_v28, %v9939_v32  ;;  %v1893_v32 = vor.u32 %v1892_v50, %v1889_v38  ;;  %v2665_v28 = vor.u32 %v2663_v51, %v2661_v59  ;;  %v1896_v59 = vshrl.u32 %v9130_v8, 16 }
 0x162   : > { %v3942_v1 = vadd.f32 %v3795_v18, %v3084_v62  ;;  %v3506_v18 = vrot.slane %v3504_v36, 3 }
 0x163   : > { %v4164_v5 = vpop.f32.mrf.mxu0  ;;  %7726 = vmatmul.msk.bf16.gmra.mxu1 %vm1443_vm2, %v1885_v23  ;;  %7887 = vmatmul.msk.bf16.gmra.mxu2 %vm1443_vm2, %v2662_v17  ;;  %v3509_v23 = vrot.slane %v3507_v13, 4  ;;  %v1894_v25 = vsel %vm1751_vm3, %v1884_v24, %v1893_v32  ;;  %v9514_v13 = vld [vmem:[%s9692_s27 + $0x9c] sm:$0xff]  }
 0x164   : > { %v10084_v34 = vadd.f32 %v4161_v52, %v3942_v1  ;;  %v2667_v52 = vshll.u32 %v8377_v30, 16 }
 0x165   : > { %v3510_v1 = vor.u32 %v3509_v23, %v3506_v18 }
 0x166   : > { %7920 = vmatmul.msk.bf16.gmra.mxu3 %vm1443_vm2, %v3502_v29  ;;  %7953 = vmatmul.msk.bf16.gmra.mxu0 %vm1443_vm2, %v9046_v42  ;;  %v2940_v12 = vpop.f32.mrf.mxu2  ;;  %v2669_v9 = vrot.slane %v2667_v52, 1  ;;  %v1898_v52 = vrot.slane %v1896_v59, 3 }
 0x167   : > { %v3085_v48 = vadd.f32 %v2940_v12, %v2182_v3  ;;  %v3511_v36 = vsel %vm1751_vm3, %v3501_v41, %v3510_v1  ;;  %v9047_v12 = vld [vmem:[%s9692_s27 + $0x90] sm:$0xff]  }
 0x168   : > { %v2183_v21 = vpop.f32.mrf.mxu1  ;;  %v2670_v16 = vsel %vm2546_vm4, %v2665_v28, %v2669_v9 }
 0x169   : > { %v3798_v37 = vpop.f32.mrf.mxu3  ;;  %v3516_v21 = vshll.u32 %v9514_v13, 16 }
 0x16a   : > { %v3943_v40 = vadd.f32 %v3798_v37, %v3085_v48  ;;  %v8378_v48 = vld [vmem:[%s9692_s27 + $0x90] sm:$0xff]  ;;  %v3513_v37 = vshrl.u32 %v9514_v13, 16 }
 0x16b   : > { %v4166_v62 = vpop.f32.mrf.mxu0  ;;  %v2675_v18 = vshll.u32 %v8378_v48, 16 }
 0x16c   : > { %v10090_v17 = vadd.f32 %v4164_v5, %v3943_v40  ;;  %v1899_v5 = vshll.u32 %v9130_v8, 16  ;;  %v2671_v62 = vshrl.u32 %v8377_v30, 16 }
 0x16e   : > { %v2942_v29 = vpop.f32.mrf.mxu2  ;;  %v1901_v40 = vrot.slane %v1899_v5, 4 }
 0x16f   : > { %v3515_v29 = vrot.slane %v3513_v37, 3  ;;  %v9132_v37 = vld [vmem:[%s9692_s27 + $0x94] sm:$0xff]  }
 0x170   : > { %v2186_v22 = vpop.f32.mrf.mxu1 }
 0x171   : > { %v3800_v42 = vpop.f32.mrf.mxu3  ;;  %v2187_v24 = vadd.f32 %v2186_v22, %v9958_v2  ;;  %v2673_v2 = vor.u32 %v2671_v62, %v2669_v9  ;;  %v2677_v22 = vrot.slane %v2675_v18, 1  ;;  %v9516_v9 = vld [vmem:[%s9692_s27 + $0xa4] sm:$0xff]  }
 0x172   : > { %v3518_v42 = vrot.slane %v3516_v21, 4  ;;  %v3525_v62 = vshll.u32 %v9516_v9, 16 }
 0x173   : > { %v4169_v3 = vpop.f32.mrf.mxu0  ;;  %7727 = vmatmul.msk.bf16.gmra.mxu1 %vm1443_vm2, %v1894_v25  ;;  %7888 = vmatmul.msk.bf16.gmra.mxu2 %vm1443_vm2, %v2670_v16  ;;  %v1902_v16 = vor.u32 %v1901_v40, %v1898_v52  ;;  %v3522_v40 = vshrl.u32 %v9516_v9, 16 }
 0x175   : > { %v1903_v5 = vsel %vm1751_vm3, %v1893_v32, %v1902_v16  ;;  %v1905_v32 = vshrl.u32 %v9132_v37, 16 }
 0x176   : > { %7921 = vmatmul.msk.bf16.gmra.mxu3 %vm1443_vm2, %v3511_v36  ;;  %7954 = vmatmul.msk.bf16.gmra.mxu0 %vm1443_vm2, %v9047_v12  ;;  %v2945_v38 = vpop.f32.mrf.mxu2  ;;  %v3519_v36 = vor.u32 %v3518_v42, %v3515_v29 }
 0x177   : > { %v3087_v50 = vadd.f32 %v2945_v38, %v2187_v24  ;;  %v2678_v24 = vsel %vm2546_vm4, %v2673_v2, %v2677_v22  ;;  %v1907_v42 = vrot.slane %v1905_v32, 3 }
 0x178   : > { %v2188_v51 = vpop.f32.mrf.mxu1  ;;  %v3520_v38 = vsel %vm1751_vm3, %v3510_v1, %v3519_v36 }
 0x179   : > { %v3803_v41 = vpop.f32.mrf.mxu3  ;;  %v2189_v8 = vadd.f32 %v2188_v51, %v9974_v4  ;;  %v8379_v51 = vld [vmem:[%s9692_s27 + $0x98] sm:$0xff] }
 0x17a   : > { %v3945_v23 = vadd.f32 %v3803_v41, %v3087_v50  ;;  %v9048_v50 = vld [vmem:[%s9692_s27 + $0x98] sm:$0xff]   ;;  %v1908_v41 = vshll.u32 %v9132_v37, 16 }
 0x17b   : > { %v4171_v28 = vpop.f32.mrf.mxu0 }
 0x17c   : > { %v10104_v25 = vadd.f32 %v4169_v3, %v3945_v23  ;;  %v1910_v2 = vrot.slane %v1908_v41, 4  ;;  %v9134_v41 = vld [vmem:[%s9692_s27 + $0x9c] sm:$0xff]  }
 0x17e   : > { %v2947_v12 = vpop.f32.mrf.mxu2 }
 0x17f   : > { %v3088_v13 = vadd.f32 %v2947_v12, %v2189_v8  ;;  %v2679_v8 = vshrl.u32 %v8378_v48, 16 }
 0x180   : > { %v2191_v30 = vpop.f32.mrf.mxu1 }
 0x181   : > { %v3805_v59 = vpop.f32.mrf.mxu3  ;;  %v2192_v52 = vadd.f32 %v2191_v30, %v9985_v31  ;;  %v1911_v31 = vor.u32 %v1910_v2, %v1907_v42  ;;  %v2681_v30 = vor.u32 %v2679_v8, %v2677_v22  ;;  %v1914_v22 = vshrl.u32 %v9134_v41, 16 }
 0x182   : > { %v3946_v3 = vadd.f32 %v3805_v59, %v3088_v13  ;;  %v3524_v59 = vrot.slane %v3522_v40, 3 }
 0x183   : > { %v4174_v21 = vpop.f32.mrf.mxu0  ;;  %7728 = vmatmul.msk.bf16.gmra.mxu1 %vm1443_vm2, %v1903_v5  ;;  %7889 = vmatmul.msk.bf16.gmra.mxu2 %vm1443_vm2, %v2678_v24  ;;  %v3527_v5 = vrot.slane %v3525_v62, 4  ;;  %v1912_v48 = vsel %vm1751_vm3, %v1902_v16, %v1911_v31  ;;  %v9518_v62 = vld [vmem:[%s9692_s27 + $0xac] sm:$0xff]  }
 0x184   : > { %v10115_v4 = vadd.f32 %v4171_v28, %v3946_v3  ;;  %v2683_v28 = vshll.u32 %v8379_v51, 16 }
 0x185   : > { %v3528_v3 = vor.u32 %v3527_v5, %v3524_v59 }
 0x186   : > { %7922 = vmatmul.msk.bf16.gmra.mxu3 %vm1443_vm2, %v3520_v38  ;;  %7955 = vmatmul.msk.bf16.gmra.mxu0 %vm1443_vm2, %v9048_v50  ;;  %v2950_v1 = vpop.f32.mrf.mxu2  ;;  %v2685_v37 = vrot.slane %v2683_v28, 1  ;;  %v1916_v28 = vrot.slane %v1914_v22, 3 }
 0x187   : > { %v3089_v18 = vadd.f32 %v2950_v1, %v2192_v52  ;;  %v3529_v40 = vsel %vm1751_vm3, %v3519_v36, %v3528_v3  ;;  %v9049_v1 = vld [vmem:[%s9692_s27 + $0xa0] sm:$0xff]  }
 0x188   : > { %v2193_v29 = vpop.f32.mrf.mxu1  ;;  %v2686_v32 = vsel %vm2546_vm4, %v2681_v30, %v2685_v37 }
 0x189   : > { %v3808_v23 = vpop.f32.mrf.mxu3  ;;  %v3534_v29 = vshll.u32 %v9518_v62, 16 }
 0x18a   : > { %v3947_v12 = vadd.f32 %v3808_v23, %v3089_v18  ;;  %v8380_v18 = vld [vmem:[%s9692_s27 + $0xa0] sm:$0xff]  ;;  %v3531_v23 = vshrl.u32 %v9518_v62, 16 }
 0x18b   : > { %v4176_v13 = vpop.f32.mrf.mxu0  ;;  %v2691_v59 = vshll.u32 %v8380_v18, 16 }
 0x18c   : > { %v10121_v24 = vadd.f32 %v4174_v21, %v3947_v12  ;;  %v1917_v21 = vshll.u32 %v9134_v41, 16  ;;  %v2687_v13 = vshrl.u32 %v8379_v51, 16 }
 0x18e   : > { %v2952_v38 = vpop.f32.mrf.mxu2  ;;  %v1919_v12 = vrot.slane %v1917_v21, 4 }
 0x18f   : > { %v3533_v38 = vrot.slane %v3531_v23, 3  ;;  %v9136_v23 = vld [vmem:[%s9692_s27 + $0xa4] sm:$0xff]  }
 0x190   : > { %v2196_v9 = vpop.f32.mrf.mxu1 }
 0x191   : > { %v3810_v50 = vpop.f32.mrf.mxu3  ;;  %v2197_v16 = vadd.f32 %v2196_v9, %v9815_v33  ;;  %v2689_v33 = vor.u32 %v2687_v13, %v2685_v37  ;;  %v2693_v9 = vrot.slane %v2691_v59, 1  ;;  %v9520_v37 = vld [vmem:[%s9692_s27 + $0xb4] sm:$0xff]  }
 0x192   : > { %v3536_v50 = vrot.slane %v3534_v29, 4  ;;  %v3543_v13 = vshll.u32 %v9520_v37, 16 }
 0x193   : > { %v4179_v52 = vpop.f32.mrf.mxu0  ;;  %7729 = vmatmul.msk.bf16.gmra.mxu1 %vm1443_vm2, %v1912_v48  ;;  %7890 = vmatmul.msk.bf16.gmra.mxu2 %vm1443_vm2, %v2686_v32  ;;  %v1920_v32 = vor.u32 %v1919_v12, %v1916_v28  ;;  %v3540_v12 = vshrl.u32 %v9520_v37, 16 }
 0x195   : > { %v1921_v21 = vsel %vm1751_vm3, %v1911_v31, %v1920_v32  ;;  %v1923_v31 = vshrl.u32 %v9136_v23, 16 }
 0x196   : > { %7923 = vmatmul.msk.bf16.gmra.mxu3 %vm1443_vm2, %v3529_v40  ;;  %7956 = vmatmul.msk.bf16.gmra.mxu0 %vm1443_vm2, %v9049_v1  ;;  %v2955_v42 = vpop.f32.mrf.mxu2  ;;  %v3537_v40 = vor.u32 %v3536_v50, %v3533_v38 }
 0x197   : > { %v3091_v2 = vadd.f32 %v2955_v42, %v2197_v16  ;;  %v2694_v16 = vsel %vm2546_vm4, %v2689_v33, %v2693_v9  ;;  %v1925_v50 = vrot.slane %v1923_v31, 3 }
 0x198   : > { %v2198_v8 = vpop.f32.mrf.mxu1  ;;  %v3538_v42 = vsel %vm1751_vm3, %v3528_v3, %v3537_v40 }
 0x199   : > { %v3813_v36 = vpop.f32.mrf.mxu3  ;;  %v2199_v41 = vadd.f32 %v2198_v8, %v9834_v49  ;;  %v8381_v8 = vld [vmem:[%s9692_s27 + $0xa8] sm:$0xff] }
 0x19a   : > { %v3949_v5 = vadd.f32 %v3813_v36, %v3091_v2  ;;  %v9050_v2 = vld [vmem:[%s9692_s27 + $0xa8] sm:$0xff]   ;;  %v1926_v36 = vshll.u32 %v9136_v23, 16 }
 0x19b   : > { %v4181_v30 = vpop.f32.mrf.mxu0 }
 0x19c   : > { %v10135_v48 = vadd.f32 %v4179_v52, %v3949_v5  ;;  %v1928_v33 = vrot.slane %v1926_v36, 4  ;;  %v9138_v36 = vld [vmem:[%s9692_s27 + $0xac] sm:$0xff]  }
 0x19e   : > { %v2957_v1 = vpop.f32.mrf.mxu2 }
 0x19f   : > { %v3092_v62 = vadd.f32 %v2957_v1, %v2199_v41  ;;  %v2695_v41 = vshrl.u32 %v8380_v18, 16 }
 0x1a0   : > { %v2201_v51 = vpop.f32.mrf.mxu1 }
 0x1a1   : > { %v3815_v22 = vpop.f32.mrf.mxu3  ;;  %v2202_v28 = vadd.f32 %v2201_v51, %v9842_v63  ;;  %v1929_v63 = vor.u32 %v1928_v33, %v1925_v50  ;;  %v2697_v51 = vor.u32 %v2695_v41, %v2693_v9  ;;  %v1932_v9 = vshrl.u32 %v9138_v36, 16 }
 0x1a2   : > { %v3950_v52 = vadd.f32 %v3815_v22, %v3092_v62  ;;  %v3542_v22 = vrot.slane %v3540_v12, 3 }
 0x1a3   : > { %v4184_v29 = vpop.f32.mrf.mxu0  ;;  %7730 = vmatmul.msk.bf16.gmra.mxu1 %vm1443_vm2, %v1921_v21  ;;  %7891 = vmatmul.msk.bf16.gmra.mxu2 %vm1443_vm2, %v2694_v16  ;;  %v3545_v21 = vrot.slane %v3543_v13, 4  ;;  %v1930_v18 = vsel %vm1751_vm3, %v1920_v32, %v1929_v63  ;;  %v9522_v13 = vld [vmem:[%s9692_s27 + $0xbc] sm:$0xff]  }
 0x1a4   : > { %v10146_v49 = vadd.f32 %v4181_v30, %v3950_v52  ;;  %v2699_v30 = vshll.u32 %v8381_v8, 16 }
 0x1a5   : > { %v3546_v52 = vor.u32 %v3545_v21, %v3542_v22 }
 0x1a6   : > { %7924 = vmatmul.msk.bf16.gmra.mxu3 %vm1443_vm2, %v3538_v42  ;;  %7957 = vmatmul.msk.bf16.gmra.mxu0 %vm1443_vm2, %v9050_v2  ;;  %v2960_v3 = vpop.f32.mrf.mxu2  ;;  %v2701_v23 = vrot.slane %v2699_v30, 1  ;;  %v1934_v30 = vrot.slane %v1932_v9, 3 }
 0x1a7   : > { %v3093_v59 = vadd.f32 %v2960_v3, %v2202_v28  ;;  %v3547_v12 = vsel %vm1751_vm3, %v3537_v40, %v3546_v52  ;;  %v9051_v3 = vld [vmem:[%s9692_s27 + $0xb0] sm:$0xff]  }
 0x1a8   : > { %v2203_v38 = vpop.f32.mrf.mxu1  ;;  %v2702_v31 = vsel %vm2546_vm4, %v2697_v51, %v2701_v23 }
 0x1a9   : > { %v3818_v5 = vpop.f32.mrf.mxu3  ;;  %v3552_v38 = vshll.u32 %v9522_v13, 16 }
 0x1aa   : > { %v3951_v1 = vadd.f32 %v3818_v5, %v3093_v59  ;;  %v8382_v59 = vld [vmem:[%s9692_s27 + $0xb0] sm:$0xff]  ;;  %v3549_v5 = vshrl.u32 %v9522_v13, 16 }
 0x1ab   : > { %v4186_v62 = vpop.f32.mrf.mxu0  ;;  %v2707_v22 = vshll.u32 %v8382_v59, 16 }
 0x1ac   : > { %v10152_v16 = vadd.f32 %v4184_v29, %v3951_v1  ;;  %v1935_v29 = vshll.u32 %v9138_v36, 16  ;;  %v2703_v62 = vshrl.u32 %v8381_v8, 16 }
 0x1ae   : > { %v2962_v42 = vpop.f32.mrf.mxu2  ;;  %v1937_v1 = vrot.slane %v1935_v29, 4 }
 0x1af   : > { %v3551_v42 = vrot.slane %v3549_v5, 3  ;;  %v9140_v5 = vld [vmem:[%s9692_s27 + $0xb4] sm:$0xff]  }
 0x1b0   : > { %v2206_v37 = vpop.f32.mrf.mxu1 }
 0x1b1   : > { %v3820_v2 = vpop.f32.mrf.mxu3  ;;  %v2207_v32 = vadd.f32 %v2206_v37, %v9861_v35  ;;  %v2705_v35 = vor.u32 %v2703_v62, %v2701_v23  ;;  %v2709_v37 = vrot.slane %v2707_v22, 1  ;;  %v9524_v23 = vld [vmem:[%s9692_s27 + $0xc4] sm:$0xff]  }
 0x1b2   : > { %v3554_v2 = vrot.slane %v3552_v38, 4  ;;  %v3561_v62 = vshll.u32 %v9524_v23, 16 }
 0x1b3   : > { %v4189_v28 = vpop.f32.mrf.mxu0  ;;  %7731 = vmatmul.msk.bf16.gmra.mxu1 %vm1443_vm2, %v1930_v18  ;;  %7892 = vmatmul.msk.bf16.gmra.mxu2 %vm1443_vm2, %v2702_v31  ;;  %v1938_v31 = vor.u32 %v1937_v1, %v1934_v30  ;;  %v3558_v1 = vshrl.u32 %v9524_v23, 16 }
 0x1b5   : > { %v1939_v29 = vsel %vm1751_vm3, %v1929_v63, %v1938_v31  ;;  %v1941_v63 = vshrl.u32 %v9140_v5, 16 }
 0x1b6   : > { %7925 = vmatmul.msk.bf16.gmra.mxu3 %vm1443_vm2, %v3547_v12  ;;  %7958 = vmatmul.msk.bf16.gmra.mxu0 %vm1443_vm2, %v9051_v3  ;;  %v2965_v50 = vpop.f32.mrf.mxu2  ;;  %v3555_v12 = vor.u32 %v3554_v2, %v3551_v42 }
 0x1b7   : > { %v3095_v33 = vadd.f32 %v2965_v50, %v2207_v32  ;;  %v2710_v32 = vsel %vm2546_vm4, %v2705_v35, %v2709_v37  ;;  %v1943_v2 = vrot.slane %v1941_v63, 3 }
 0x1b8   : > { %v2208_v41 = vpop.f32.mrf.mxu1  ;;  %v3556_v50 = vsel %vm1751_vm3, %v3546_v52, %v3555_v12 }
 0x1b9   : > { %v3823_v40 = vpop.f32.mrf.mxu3  ;;  %v2209_v36 = vadd.f32 %v2208_v41, %v9880_v55  ;;  %v8383_v41 = vld [vmem:[%s9692_s27 + $0xb8] sm:$0xff] }
 0x1ba   : > { %v3953_v21 = vadd.f32 %v3823_v40, %v3095_v33  ;;  %v9052_v33 = vld [vmem:[%s9692_s27 + $0xb8] sm:$0xff]   ;;  %v1944_v40 = vshll.u32 %v9140_v5, 16 }
 0x1bb   : > { %v4191_v51 = vpop.f32.mrf.mxu0 }
 0x1bc   : > { %v10166_v18 = vadd.f32 %v4189_v28, %v3953_v21  ;;  %v1946_v35 = vrot.slane %v1944_v40, 4  ;;  %v9142_v40 = vld [vmem:[%s9692_s27 + $0xbc] sm:$0xff]  }
 0x1be   : > { %v2967_v3 = vpop.f32.mrf.mxu2 }
 0x1bf   : > { %v3096_v13 = vadd.f32 %v2967_v3, %v2209_v36  ;;  %v2711_v36 = vshrl.u32 %v8382_v59, 16 }
 0x1c0   : > { %v2211_v8 = vpop.f32.mrf.mxu1 }
 0x1c1   : > { %v3825_v9 = vpop.f32.mrf.mxu3  ;;  %v2212_v30 = vadd.f32 %v2211_v8, %v9888_v10  ;;  %v1947_v10 = vor.u32 %v1946_v35, %v1943_v2  ;;  %v2713_v8 = vor.u32 %v2711_v36, %v2709_v37  ;;  %v1950_v37 = vshrl.u32 %v9142_v40, 16 }
 0x1c2   : > { %v3954_v28 = vadd.f32 %v3825_v9, %v3096_v13  ;;  %v3560_v9 = vrot.slane %v3558_v1, 3 }
 0x1c3   : > { %v4194_v38 = vpop.f32.mrf.mxu0  ;;  %7732 = vmatmul.msk.bf16.gmra.mxu1 %vm1443_vm2, %v1939_v29  ;;  %7893 = vmatmul.msk.bf16.gmra.mxu2 %vm1443_vm2, %v2710_v32  ;;  %v3563_v29 = vrot.slane %v3561_v62, 4  ;;  %v1948_v59 = vsel %vm1751_vm3, %v1938_v31, %v1947_v10  ;;  %v9526_v62 = vld [vmem:[%s9692_s27 + $0xcc] sm:$0xff]  }
 0x1c4   : > { %v10177_v55 = vadd.f32 %v4191_v51, %v3954_v28  ;;  %v2715_v51 = vshll.u32 %v8383_v41, 16 }
 0x1c5   : > { %v3564_v28 = vor.u32 %v3563_v29, %v3560_v9 }
 0x1c6   : > { %7926 = vmatmul.msk.bf16.gmra.mxu3 %vm1443_vm2, %v3556_v50  ;;  %7959 = vmatmul.msk.bf16.gmra.mxu0 %vm1443_vm2, %v9052_v33  ;;  %v2970_v52 = vpop.f32.mrf.mxu2  ;;  %v2717_v5 = vrot.slane %v2715_v51, 1  ;;  %v1952_v51 = vrot.slane %v1950_v37, 3 }
 0x1c7   : > { %v3097_v22 = vadd.f32 %v2970_v52, %v2212_v30  ;;  %v3565_v1 = vsel %vm1751_vm3, %v3555_v12, %v3564_v28  ;;  %v9053_v52 = vld [vmem:[%s9692_s27 + $0xc0] sm:$0xff]  }
 0x1c8   : > { %v2213_v42 = vpop.f32.mrf.mxu1  ;;  %v2718_v63 = vsel %vm2546_vm4, %v2713_v8, %v2717_v5 }
 0x1c9   : > { %v3828_v21 = vpop.f32.mrf.mxu3  ;;  %v3570_v42 = vshll.u32 %v9526_v62, 16 }
 0x1ca   : > { %v3955_v3 = vadd.f32 %v3828_v21, %v3097_v22  ;;  %v8384_v22 = vld [vmem:[%s9692_s27 + $0xc0] sm:$0xff]  ;;  %v3567_v21 = vshrl.u32 %v9526_v62, 16 }
 0x1cb   : > { %v4196_v13 = vpop.f32.mrf.mxu0  ;;  %v2723_v9 = vshll.u32 %v8384_v22, 16 }
 0x1cc   : > { %v10183_v32 = vadd.f32 %v4194_v38, %v3955_v3  ;;  %v1953_v38 = vshll.u32 %v9142_v40, 16  ;;  %v2719_v13 = vshrl.u32 %v8383_v41, 16 }
 0x1ce   : > { %v2972_v50 = vpop.f32.mrf.mxu2  ;;  %v1955_v3 = vrot.slane %v1953_v38, 4 }
 0x1cf   : > { %v3569_v50 = vrot.slane %v3567_v21, 3  ;;  %v9144_v21 = vld [vmem:[%s9692_s27 + $0xc4] sm:$0xff]  }
 0x1d0   : > { %v2216_v23 = vpop.f32.mrf.mxu1 }
 0x1d1   : > { %v3830_v33 = vpop.f32.mrf.mxu3  ;;  %v2217_v31 = vadd.f32 %v2216_v23, %v9907_v58  ;;  %v2721_v58 = vor.u32 %v2719_v13, %v2717_v5  ;;  %v2725_v23 = vrot.slane %v2723_v9, 1  ;;  %v9528_v5 = vld [vmem:[%s9692_s27 + $0xd4] sm:$0xff]  }
 0x1d2   : > { %v3572_v33 = vrot.slane %v3570_v42, 4  ;;  %v3579_v13 = vshll.u32 %v9528_v5, 16 }
 0x1d3   : > { %v4199_v30 = vpop.f32.mrf.mxu0  ;;  %7733 = vmatmul.msk.bf16.gmra.mxu1 %vm1443_vm2, %v1948_v59  ;;  %7894 = vmatmul.msk.bf16.gmra.mxu2 %vm1443_vm2, %v2718_v63  ;;  %v1956_v63 = vor.u32 %v1955_v3, %v1952_v51  ;;  %v3576_v3 = vshrl.u32 %v9528_v5, 16 }
 0x1d5   : > { %v1957_v38 = vsel %vm1751_vm3, %v1947_v10, %v1956_v63  ;;  %v1959_v10 = vshrl.u32 %v9144_v21, 16 }
 0x1d6   : > { %7927 = vmatmul.msk.bf16.gmra.mxu3 %vm1443_vm2, %v3565_v1  ;;  %7960 = vmatmul.msk.bf16.gmra.mxu0 %vm1443_vm2, %v9053_v52  ;;  %v2975_v2 = vpop.f32.mrf.mxu2  ;;  %v3573_v1 = vor.u32 %v3572_v33, %v3569_v50 }
 0x1d7   : > { %v3099_v35 = vadd.f32 %v2975_v2, %v2217_v31  ;;  %v2726_v31 = vsel %vm2546_vm4, %v2721_v58, %v2725_v23  ;;  %v1961_v33 = vrot.slane %v1959_v10, 3 }
 0x1d8   : > { %v2218_v36 = vpop.f32.mrf.mxu1  ;;  %v3574_v2 = vsel %vm1751_vm3, %v3564_v28, %v3573_v1 }
 0x1d9   : > { %v3833_v12 = vpop.f32.mrf.mxu3  ;;  %v2219_v40 = vadd.f32 %v2218_v36, %v9926_v6  ;;  %v8385_v36 = vld [vmem:[%s9692_s27 + $0xc8] sm:$0xff] }
 0x1da   : > { %v3957_v29 = vadd.f32 %v3833_v12, %v3099_v35  ;;  %v9054_v35 = vld [vmem:[%s9692_s27 + $0xc8] sm:$0xff]   ;;  %v1962_v12 = vshll.u32 %v9144_v21, 16 }
 0x1db   : > { %v4201_v8 = vpop.f32.mrf.mxu0 }
 0x1dc   : > { %v10197_v59 = vadd.f32 %v4199_v30, %v3957_v29  ;;  %v1964_v58 = vrot.slane %v1962_v12, 4  ;;  %v9146_v12 = vld [vmem:[%s9692_s27 + $0xcc] sm:$0xff]  }
 0x1de   : > { %v2977_v52 = vpop.f32.mrf.mxu2 }
 0x1df   : > { %v3100_v62 = vadd.f32 %v2977_v52, %v2219_v40  ;;  %v2727_v40 = vshrl.u32 %v8384_v22, 16 }
 0x1e0   : > { %v2221_v41 = vpop.f32.mrf.mxu1 }
 0x1e1   : > { %v3835_v37 = vpop.f32.mrf.mxu3  ;;  %v2222_v51 = vadd.f32 %v2221_v41, %v9934_v56  ;;  %v1965_v56 = vor.u32 %v1964_v58, %v1961_v33  ;;  %v2729_v41 = vor.u32 %v2727_v40, %v2725_v23  ;;  %v1968_v23 = vshrl.u32 %v9146_v12, 16 }
 0x1e2   : > { %v3958_v30 = vadd.f32 %v3835_v37, %v3100_v62  ;;  %v3578_v37 = vrot.slane %v3576_v3, 3 }
 0x1e3   : > { %v4204_v42 = vpop.f32.mrf.mxu0  ;;  %7734 = vmatmul.msk.bf16.gmra.mxu1 %vm1443_vm2, %v1957_v38  ;;  %7895 = vmatmul.msk.bf16.gmra.mxu2 %vm1443_vm2, %v2726_v31  ;;  %v3581_v38 = vrot.slane %v3579_v13, 4  ;;  %v1966_v22 = vsel %vm1751_vm3, %v1956_v63, %v1965_v56  ;;  %v9530_v13 = vld [vmem:[%s9692_s27 + $0xdc] sm:$0xff]  }
 0x1e4   : > { %v10208_v6 = vadd.f32 %v4201_v8, %v3958_v30  ;;  %v2731_v8 = vshll.u32 %v8385_v36, 16 }
 0x1e5   : > { %v3582_v30 = vor.u32 %v3581_v38, %v3578_v37 }
 0x1e6   : > { %7928 = vmatmul.msk.bf16.gmra.mxu3 %vm1443_vm2, %v3574_v2  ;;  %7961 = vmatmul.msk.bf16.gmra.mxu0 %vm1443_vm2, %v9054_v35  ;;  %v2980_v28 = vpop.f32.mrf.mxu2  ;;  %v2733_v21 = vrot.slane %v2731_v8, 1  ;;  %v1970_v8 = vrot.slane %v1968_v23, 3 }
 0x1e7   : > { %v3101_v9 = vadd.f32 %v2980_v28, %v2222_v51  ;;  %v3583_v3 = vsel %vm1751_vm3, %v3573_v1, %v3582_v30  ;;  %v9055_v28 = vld [vmem:[%s9692_s27 + $0xd0] sm:$0xff]  }
 0x1e8   : > { %v2223_v50 = vpop.f32.mrf.mxu1  ;;  %v2734_v10 = vsel %vm2546_vm4, %v2729_v41, %v2733_v21 }
 0x1e9   : > { %v3838_v29 = vpop.f32.mrf.mxu3  ;;  %v3588_v50 = vshll.u32 %v9530_v13, 16 }
 0x1ea   : > { %v3959_v52 = vadd.f32 %v3838_v29, %v3101_v9  ;;  %v8386_v9 = vld [vmem:[%s9692_s27 + $0xd0] sm:$0xff]  ;;  %v3585_v29 = vshrl.u32 %v9530_v13, 16 }
 0x1eb   : > { %v4206_v62 = vpop.f32.mrf.mxu0  ;;  %v2739_v37 = vshll.u32 %v8386_v9, 16 }
 0x1ec   : > { %v10214_v31 = vadd.f32 %v4204_v42, %v3959_v52  ;;  %v1971_v42 = vshll.u32 %v9146_v12, 16  ;;  %v2735_v62 = vshrl.u32 %v8385_v36, 16 }
 0x1ee   : > { %v2982_v2 = vpop.f32.mrf.mxu2  ;;  %v1973_v52 = vrot.slane %v1971_v42, 4 }
 0x1ef   : > { %v3587_v2 = vrot.slane %v3585_v29, 3  ;;  %v9148_v29 = vld [vmem:[%s9692_s27 + $0xd4] sm:$0xff]  }
 0x1f0   : > { %v2226_v5 = vpop.f32.mrf.mxu1 }
 0x1f1   : > { %v3840_v35 = vpop.f32.mrf.mxu3  ;;  %v2227_v63 = vadd.f32 %v2226_v5, %v9953_v46  ;;  %v2737_v46 = vor.u32 %v2735_v62, %v2733_v21  ;;  %v2741_v5 = vrot.slane %v2739_v37, 1  ;;  %v9532_v21 = vld [vmem:[%s9692_s27 + $0xe4] sm:$0xff]  }
 0x1f2   : > { %v3590_v35 = vrot.slane %v3588_v50, 4  ;;  %v3597_v62 = vshll.u32 %v9532_v21, 16 }
 0x1f3   : > { %v4209_v51 = vpop.f32.mrf.mxu0  ;;  %7735 = vmatmul.msk.bf16.gmra.mxu1 %vm1443_vm2, %v1966_v22  ;;  %7896 = vmatmul.msk.bf16.gmra.mxu2 %vm1443_vm2, %v2734_v10  ;;  %v1974_v10 = vor.u32 %v1973_v52, %v1970_v8  ;;  %v3594_v52 = vshrl.u32 %v9532_v21, 16 }
 0x1f5   : > { %v1975_v42 = vsel %vm1751_vm3, %v1965_v56, %v1974_v10  ;;  %v1977_v56 = vshrl.u32 %v9148_v29, 16 }
 0x1f6   : > { %7929 = vmatmul.msk.bf16.gmra.mxu3 %vm1443_vm2, %v3583_v3  ;;  %7962 = vmatmul.msk.bf16.gmra.mxu0 %vm1443_vm2, %v9055_v28  ;;  %v2985_v33 = vpop.f32.mrf.mxu2  ;;  %v3591_v3 = vor.u32 %v3590_v35, %v3587_v2 }
 0x1f7   : > { %v3103_v58 = vadd.f32 %v2985_v33, %v2227_v63  ;;  %v2742_v63 = vsel %vm2546_vm4, %v2737_v46, %v2741_v5  ;;  %v1979_v35 = vrot.slane %v1977_v56, 3 }
 0x1f8   : > { %v2228_v40 = vpop.f32.mrf.mxu1  ;;  %v3592_v33 = vsel %vm1751_vm3, %v3582_v30, %v3591_v3 }
 0x1f9   : > { %v3843_v1 = vpop.f32.mrf.mxu3  ;;  %v2229_v12 = vadd.f32 %v2228_v40, %v9972_v44  ;;  %v8387_v40 = vld [vmem:[%s9692_s27 + $0xd8] sm:$0xff] }
 0x1fa   : > { %v3961_v38 = vadd.f32 %v3843_v1, %v3103_v58  ;;  %v9056_v58 = vld [vmem:[%s9692_s27 + $0xd8] sm:$0xff]   ;;  %v1980_v1 = vshll.u32 %v9148_v29, 16 }
 0x1fb   : > { %v4211_v41 = vpop.f32.mrf.mxu0 }
 0x1fc   : > { %v10228_v22 = vadd.f32 %v4209_v51, %v3961_v38  ;;  %v1982_v46 = vrot.slane %v1980_v1, 4  ;;  %v9150_v1 = vld [vmem:[%s9692_s27 + $0xdc] sm:$0xff]  }
 0x1fe   : > { %v2987_v28 = vpop.f32.mrf.mxu2 }
 0x1ff   : > { %v3104_v13 = vadd.f32 %v2987_v28, %v2229_v12  ;;  %v2743_v12 = vshrl.u32 %v8386_v9, 16 }
 0x200   : > { %v2231_v36 = vpop.f32.mrf.mxu1 }
 0x201   : > { %v3845_v23 = vpop.f32.mrf.mxu3  ;;  %v2232_v8 = vadd.f32 %v2231_v36, %v9980_v20  ;;  %v1983_v20 = vor.u32 %v1982_v46, %v1979_v35  ;;  %v2745_v36 = vor.u32 %v2743_v12, %v2741_v5  ;;  %v1986_v5 = vshrl.u32 %v9150_v1, 16 }
 0x202   : > { %v3962_v51 = vadd.f32 %v3845_v23, %v3104_v13  ;;  %v3596_v23 = vrot.slane %v3594_v52, 3 }
 0x203   : > { %v4214_v50 = vpop.f32.mrf.mxu0  ;;  %7736 = vmatmul.msk.bf16.gmra.mxu1 %vm1443_vm2, %v1975_v42  ;;  %7897 = vmatmul.msk.bf16.gmra.mxu2 %vm1443_vm2, %v2742_v63  ;;  %v3599_v42 = vrot.slane %v3597_v62, 4  ;;  %v1984_v9 = vsel %vm1751_vm3, %v1974_v10, %v1983_v20  ;;  %v9534_v62 = vld [vmem:[%s9692_s27 + $0xec] sm:$0xff]  }
 0x204   : > { %v10239_v44 = vadd.f32 %v4211_v41, %v3962_v51  ;;  %v2747_v41 = vshll.u32 %v8387_v40, 16 }
 0x205   : > { %v3600_v51 = vor.u32 %v3599_v42, %v3596_v23 }
 0x206   : > { %7930 = vmatmul.msk.bf16.gmra.mxu3 %vm1443_vm2, %v3592_v33  ;;  %7963 = vmatmul.msk.bf16.gmra.mxu0 %vm1443_vm2, %v9056_v58  ;;  %v2990_v30 = vpop.f32.mrf.mxu2  ;;  %v2749_v29 = vrot.slane %v2747_v41, 1  ;;  %v1988_v41 = vrot.slane %v1986_v5, 3 }
 0x207   : > { %v3105_v37 = vadd.f32 %v2990_v30, %v2232_v8  ;;  %v3601_v52 = vsel %vm1751_vm3, %v3591_v3, %v3600_v51  ;;  %v9057_v30 = vld [vmem:[%s9692_s27 + $0xe0] sm:$0xff]  }
 0x208   : > { %v2233_v2 = vpop.f32.mrf.mxu1  ;;  %v2750_v56 = vsel %vm2546_vm4, %v2745_v36, %v2749_v29 }
 0x209   : > { %v3848_v38 = vpop.f32.mrf.mxu3  ;;  %v3606_v2 = vshll.u32 %v9534_v62, 16 }
 0x20a   : > { %v3963_v28 = vadd.f32 %v3848_v38, %v3105_v37  ;;  %v8388_v37 = vld [vmem:[%s9692_s27 + $0xe0] sm:$0xff]  ;;  %v3603_v38 = vshrl.u32 %v9534_v62, 16 }
 0x20b   : > { %v4216_v13 = vpop.f32.mrf.mxu0  ;;  %v2755_v23 = vshll.u32 %v8388_v37, 16 }
 0x20c   : > { %v10245_v63 = vadd.f32 %v4214_v50, %v3963_v28  ;;  %v1989_v50 = vshll.u32 %v9150_v1, 16  ;;  %v2751_v13 = vshrl.u32 %v8387_v40, 16 }
 0x20e   : > { %v2992_v33 = vpop.f32.mrf.mxu2  ;;  %v1991_v28 = vrot.slane %v1989_v50, 4 }
 0x20f   : > { %v3605_v33 = vrot.slane %v3603_v38, 3  ;;  %v9152_v38 = vld [vmem:[%s9692_s27 + $0xe4] sm:$0xff]  }
 0x210   : > { %v2236_v21 = vpop.f32.mrf.mxu1 }
 0x211   : > { %v3850_v58 = vpop.f32.mrf.mxu3  ;;  %v2237_v10 = vadd.f32 %v2236_v21, %v9830_v47  ;;  %v2753_v47 = vor.u32 %v2751_v13, %v2749_v29  ;;  %v2757_v21 = vrot.slane %v2755_v23, 1  ;;  %v9536_v29 = vld [vmem:[%s9692_s27 + $0xf4] sm:$0xff]  }
 0x212   : > { %v3608_v58 = vrot.slane %v3606_v2, 4  ;;  %v3615_v13 = vshll.u32 %v9536_v29, 16 }
 0x213   : > { %v4219_v8 = vpop.f32.mrf.mxu0  ;;  %7737 = vmatmul.msk.bf16.gmra.mxu1 %vm1443_vm2, %v1984_v9  ;;  %7898 = vmatmul.msk.bf16.gmra.mxu2 %vm1443_vm2, %v2750_v56  ;;  %v1992_v56 = vor.u32 %v1991_v28, %v1988_v41  ;;  %v3612_v28 = vshrl.u32 %v9536_v29, 16 }
 0x215   : > { %v1993_v50 = vsel %vm1751_vm3, %v1983_v20, %v1992_v56  ;;  %v1995_v20 = vshrl.u32 %v9152_v38, 16 }
 0x216   : > { %7931 = vmatmul.msk.bf16.gmra.mxu3 %vm1443_vm2, %v3601_v52  ;;  %7964 = vmatmul.msk.bf16.gmra.mxu0 %vm1443_vm2, %v9057_v30  ;;  %v2995_v35 = vpop.f32.mrf.mxu2  ;;  %v3609_v52 = vor.u32 %v3608_v58, %v3605_v33 }
 0x217   : > { %v3107_v46 = vadd.f32 %v2995_v35, %v2237_v10  ;;  %v2758_v10 = vsel %vm2546_vm4, %v2753_v47, %v2757_v21  ;;  %v1997_v58 = vrot.slane %v1995_v20, 3 }
 0x218   : > { %v2238_v12 = vpop.f32.mrf.mxu1  ;;  %v3610_v35 = vsel %vm1751_vm3, %v3600_v51, %v3609_v52 }
 0x219   : > { %v3853_v3 = vpop.f32.mrf.mxu3  ;;  %v2239_v1 = vadd.f32 %v2238_v12, %v9838_v61  ;;  %v8389_v12 = vld [vmem:[%s9692_s27 + $0xe8] sm:$0xff] }
 0x21a   : > { %v3965_v42 = vadd.f32 %v3853_v3, %v3107_v46  ;;  %v9058_v46 = vld [vmem:[%s9692_s27 + $0xe8] sm:$0xff]   ;;  %v1998_v3 = vshll.u32 %v9152_v38, 16 }
 0x21b   : > { %v4221_v36 = vpop.f32.mrf.mxu0 }
 0x21c   : > { %v10259_v9 = vadd.f32 %v4219_v8, %v3965_v42  ;;  %v2000_v47 = vrot.slane %v1998_v3, 4  ;;  %v9154_v3 = vld [vmem:[%s9692_s27 + $0xec] sm:$0xff]  }
 0x21e   : > { %v2997_v30 = vpop.f32.mrf.mxu2 }
 0x21f   : > { %v3108_v62 = vadd.f32 %v2997_v30, %v2239_v1  ;;  %v2759_v1 = vshrl.u32 %v8388_v37, 16 }
 0x220   : > { %v2241_v40 = vpop.f32.mrf.mxu1 }
 0x221   : > { %v3855_v5 = vpop.f32.mrf.mxu3  ;;  %v2242_v41 = vadd.f32 %v2241_v40, %v9857_v11  ;;  %v2001_v11 = vor.u32 %v2000_v47, %v1997_v58  ;;  %v2761_v40 = vor.u32 %v2759_v1, %v2757_v21  ;;  %v2004_v21 = vshrl.u32 %v9154_v3, 16 }
 0x222   : > { %v3966_v8 = vadd.f32 %v3855_v5, %v3108_v62  ;;  %v3614_v5 = vrot.slane %v3612_v28, 3 }
 0x223   : > { %v4224_v2 = vpop.f32.mrf.mxu0  ;;  %7738 = vmatmul.msk.bf16.gmra.mxu1 %vm1443_vm2, %v1993_v50  ;;  %7899 = vmatmul.msk.bf16.gmra.mxu2 %vm1443_vm2, %v2758_v10  ;;  %v3617_v50 = vrot.slane %v3615_v13, 4  ;;  %v2002_v37 = vsel %vm1751_vm3, %v1992_v56, %v2001_v11  ;;  %v9538_v13 = vld [vmem:[%s9692_s27 + $0xfc] sm:$0xff]  }
 0x224   : > { %v10270_v61 = vadd.f32 %v4221_v36, %v3966_v8  ;;  %v2763_v36 = vshll.u32 %v8389_v12, 16 }
 0x225   : > { %v3618_v8 = vor.u32 %v3617_v50, %v3614_v5 }
 0x226   : > { %7932 = vmatmul.msk.bf16.gmra.mxu3 %vm1443_vm2, %v3610_v35  ;;  %7965 = vmatmul.msk.bf16.gmra.mxu0 %vm1443_vm2, %v9058_v46  ;;  %v3000_v51 = vpop.f32.mrf.mxu2  ;;  %v2765_v38 = vrot.slane %v2763_v36, 1  ;;  %v2006_v36 = vrot.slane %v2004_v21, 3 }
 0x227   : > { %v3109_v23 = vadd.f32 %v3000_v51, %v2242_v41  ;;  %v3619_v28 = vsel %vm1751_vm3, %v3609_v52, %v3618_v8  ;;  %v9059_v51 = vld [vmem:[%s9692_s27 + $0xf0] sm:$0xff]  }
 0x228   : > { %v2243_v33 = vpop.f32.mrf.mxu1  ;;  %v2766_v20 = vsel %vm2546_vm4, %v2761_v40, %v2765_v38 }
 0x229   : > { %v3858_v42 = vpop.f32.mrf.mxu3  ;;  %v3624_v33 = vshll.u32 %v9538_v13, 16 }
 0x22a   : > { %v3967_v30 = vadd.f32 %v3858_v42, %v3109_v23  ;;  %v8390_v23 = vld [vmem:[%s9692_s27 + $0xf0] sm:$0xff]  ;;  %v3621_v42 = vshrl.u32 %v9538_v13, 16 }
 0x22b   : > { %v4226_v62 = vpop.f32.mrf.mxu0  ;;  %v2771_v5 = vshll.u32 %v8390_v23, 16 }
 0x22c   : > { %v10276_v10 = vadd.f32 %v4224_v2, %v3967_v30  ;;  %v2007_v2 = vshll.u32 %v9154_v3, 16  ;;  %v2767_v62 = vshrl.u32 %v8389_v12, 16 }
 0x22e   : > { %v3002_v35 = vpop.f32.mrf.mxu2  ;;  %v2009_v30 = vrot.slane %v2007_v2, 4 }
 0x22f   : > { %v3623_v35 = vrot.slane %v3621_v42, 3  ;;  %v9156_v42 = vld [vmem:[%s9692_s27 + $0xf4] sm:$0xff]  }
 0x230   : > { %v2246_v29 = vpop.f32.mrf.mxu1 }
 0x231   : > { %v3860_v46 = vpop.f32.mrf.mxu3  ;;  %v2247_v56 = vadd.f32 %v2246_v29, %v9876_v53  ;;  %v2769_v53 = vor.u32 %v2767_v62, %v2765_v38  ;;  %v2773_v29 = vrot.slane %v2771_v5, 1  ;;  %v9540_v38 = vld [vmem:[%s9692_s27 + $0x104] sm:$0xff]  }
 0x232   : > { %v3626_v46 = vrot.slane %v3624_v33, 4  ;;  %v3633_v62 = vshll.u32 %v9540_v38, 16 }
 0x233   : > { %v4229_v41 = vpop.f32.mrf.mxu0  ;;  %7739 = vmatmul.msk.bf16.gmra.mxu1 %vm1443_vm2, %v2002_v37  ;;  %7900 = vmatmul.msk.bf16.gmra.mxu2 %vm1443_vm2, %v2766_v20  ;;  %v2010_v20 = vor.u32 %v2009_v30, %v2006_v36  ;;  %v3630_v30 = vshrl.u32 %v9540_v38, 16 }
 0x235   : > { %v2011_v2 = vsel %vm1751_vm3, %v2001_v11, %v2010_v20  ;;  %v2013_v11 = vshrl.u32 %v9156_v42, 16 }
 0x236   : > { %7933 = vmatmul.msk.bf16.gmra.mxu3 %vm1443_vm2, %v3619_v28  ;;  %7966 = vmatmul.msk.bf16.gmra.mxu0 %vm1443_vm2, %v9059_v51  ;;  %v3005_v58 = vpop.f32.mrf.mxu2  ;;  %v3627_v28 = vor.u32 %v3626_v46, %v3623_v35 }
 0x237   : > { %v3111_v47 = vadd.f32 %v3005_v58, %v2247_v56  ;;  %v2774_v56 = vsel %vm2546_vm4, %v2769_v53, %v2773_v29  ;;  %v2015_v46 = vrot.slane %v2013_v11, 3 }
 0x238   : > { %v2248_v1 = vpop.f32.mrf.mxu1  ;;  %v3628_v58 = vsel %vm1751_vm3, %v3618_v8, %v3627_v28 }
 0x239   : > { %v3863_v52 = vpop.f32.mrf.mxu3  ;;  %v2249_v3 = vadd.f32 %v2248_v1, %v9884_v7  ;;  %v8391_v1 = vld [vmem:[%s9692_s27 + $0xf8] sm:$0xff] }
 0x23a   : > { %v3969_v50 = vadd.f32 %v3863_v52, %v3111_v47  ;;  %v9060_v47 = vld [vmem:[%s9692_s27 + $0xf8] sm:$0xff]   ;;  %v2016_v52 = vshll.u32 %v9156_v42, 16 }
 0x23b   : > { %v4231_v40 = vpop.f32.mrf.mxu0 }
 0x23c   : > { %v10290_v37 = vadd.f32 %v4229_v41, %v3969_v50  ;;  %v2018_v53 = vrot.slane %v2016_v52, 4  ;;  %v9158_v52 = vld [vmem:[%s9692_s27 + $0xfc] sm:$0xff]  }
 0x23e   : > { %v3007_v51 = vpop.f32.mrf.mxu2 }
 0x23f   : > { %v3112_v13 = vadd.f32 %v3007_v51, %v2249_v3  ;;  %v2775_v3 = vshrl.u32 %v8390_v23, 16 }
 0x240   : > { %v2251_v12 = vpop.f32.mrf.mxu1 }
 0x241   : > { %v3865_v21 = vpop.f32.mrf.mxu3  ;;  %v2252_v36 = vadd.f32 %v2251_v12, %v9903_v27  ;;  %v2019_v27 = vor.u32 %v2018_v53, %v2015_v46  ;;  %v2777_v12 = vor.u32 %v2775_v3, %v2773_v29  ;;  %v2022_v29 = vshrl.u32 %v9158_v52, 16 }
 0x242   : > { %v3970_v41 = vadd.f32 %v3865_v21, %v3112_v13  ;;  %v3632_v21 = vrot.slane %v3630_v30, 3 }
 0x243   : > { %v4234_v33 = vpop.f32.mrf.mxu0  ;;  %7740 = vmatmul.msk.bf16.gmra.mxu1 %vm1443_vm2, %v2011_v2  ;;  %7901 = vmatmul.msk.bf16.gmra.mxu2 %vm1443_vm2, %v2774_v56  ;;  %v3635_v2 = vrot.slane %v3633_v62, 4  ;;  %v2020_v23 = vsel %vm1751_vm3, %v2010_v20, %v2019_v27  ;;  %v9542_v62 = vld [vmem:[%s9692_s27 + $0x10c] sm:$0xff]  }
 0x244   : > { %v10301_v7 = vadd.f32 %v4231_v40, %v3970_v41  ;;  %v2779_v40 = vshll.u32 %v8391_v1, 16 }
 0x245   : > { %v3636_v41 = vor.u32 %v3635_v2, %v3632_v21 }
 0x246   : > { %7934 = vmatmul.msk.bf16.gmra.mxu3 %vm1443_vm2, %v3628_v58  ;;  %7967 = vmatmul.msk.bf16.gmra.mxu0 %vm1443_vm2, %v9060_v47  ;;  %v3010_v8 = vpop.f32.mrf.mxu2  ;;  %v2781_v42 = vrot.slane %v2779_v40, 1  ;;  %v2024_v40 = vrot.slane %v2022_v29, 3 }
 0x247   : > { %v3113_v5 = vadd.f32 %v3010_v8, %v2252_v36  ;;  %v3637_v30 = vsel %vm1751_vm3, %v3627_v28, %v3636_v41  ;;  %v9061_v8 = vld [vmem:[%s9692_s27 + $0x100] sm:$0xff]  }
 0x248   : > { %v2253_v35 = vpop.f32.mrf.mxu1  ;;  %v2782_v11 = vsel %vm2546_vm4, %v2777_v12, %v2781_v42 }
 0x249   : > { %v3868_v50 = vpop.f32.mrf.mxu3  ;;  %v3642_v35 = vshll.u32 %v9542_v62, 16 }
 0x24a   : > { %v3971_v51 = vadd.f32 %v3868_v50, %v3113_v5  ;;  %v10320_v5 = vld [vmem:[%s9692_s27 + $0x100] sm:$0xff]  ;;  %v3639_v50 = vshrl.u32 %v9542_v62, 16 }
 0x24b   : > { %v4236_v13 = vpop.f32.mrf.mxu0  ;;  %v2787_v21 = vshll.u32 %v10320_v5, 16 }
 0x24c   : > { %v10307_v56 = vadd.f32 %v4234_v33, %v3971_v51  ;;  %v2025_v33 = vshll.u32 %v9158_v52, 16  ;;  %v2783_v13 = vshrl.u32 %v8391_v1, 16 }
 0x24e   : > { %v3012_v58 = vpop.f32.mrf.mxu2  ;;  %v2027_v51 = vrot.slane %v2025_v33, 4 }
 0x24f   : > { %v3641_v58 = vrot.slane %v3639_v50, 3  ;;  %v9159_v50 = vld [vmem:[%s9692_s27 + $0x104] sm:$0xff]  }
 0x250   : > { %v2256_v38 = vpop.f32.mrf.mxu1 }
 0x251   : > { %v3870_v47 = vpop.f32.mrf.mxu3  ;;  %v2257_v20 = vadd.f32 %v2256_v38, %v9922_v19  ;;  %v2028_v19 = vor.u32 %v2027_v51, %v2024_v40  ;;  %v2785_v38 = vor.u32 %v2783_v13, %v2781_v42  ;;  %v9543_v42 = vld [vmem:[%s9692_s27 + $0x114] sm:$0xff]  }
 0x252   : > { %v3644_v47 = vrot.slane %v3642_v35, 4  ;;  %v3648_v51 = vshrl.u32 %v9543_v42, 16 }
 0x253   : > { %v4239_v36 = vpop.f32.mrf.mxu0  ;;  %7741 = vmatmul.msk.bf16.gmra.mxu1 %vm1443_vm2, %v2020_v23  ;;  %7902 = vmatmul.msk.bf16.gmra.mxu2 %vm1443_vm2, %v2782_v11  ;;  %v2789_v11 = vrot.slane %v2787_v21, 1  ;;  %v2029_v33 = vsel %vm1751_vm3, %v2019_v27, %v2028_v19  ;;  %v2031_v27 = vshrl.u32 %v9159_v50, 16 }
 0x256   : > { %7935 = vmatmul.msk.bf16.gmra.mxu3 %vm1443_vm2, %v3637_v30  ;;  %7968 = vmatmul.msk.bf16.gmra.mxu0 %vm1443_vm2, %v9061_v8  ;;  %v3015_v46 = vpop.f32.mrf.mxu2  ;;  %v3645_v30 = vor.u32 %v3644_v47, %v3641_v58  ;;  %v2033_v47 = vrot.slane %v2031_v27, 3  ;;  %v2380_v27 = vld [vmem:[%s9692_s27 + $0x110] sm:$0x1] }
 0x257   : > { %v3115_v28 = vadd.f32 %v3015_v46, %v2257_v20  ;;  %v2790_v20 = vsel %vm2546_vm4, %v2785_v38, %v2789_v11  ;;  %v2791_v38 = vshrl.u32 %v10320_v5, 16 }
 0x258   : > { %v2258_v3 = vpop.f32.mrf.mxu1  ;;  %v3646_v46 = vsel %vm1751_vm3, %v3636_v41, %v3645_v30  ;;  %v3651_v41 = vshll.u32 %v9543_v42, 16 }
 0x259   : > { %v3873_v53 = vpop.f32.mrf.mxu3  ;;  %v2259_v52 = vadd.f32 %v2258_v3, %v9930_v45  ;;  %v8393_v3 = vld [vmem:[%s9692_s27 + $0x108] sm:$0xff] }
 0x25a   : > { %v3973_v2 = vadd.f32 %v3873_v53, %v3115_v28  ;;  %v9062_v28 = vld [vmem:[%s9692_s27 + $0x108] sm:$0xff]   ;;  %v2034_v53 = vshll.u32 %v9159_v50, 16 }
 0x25b   : > { %v4241_v12 = vpop.f32.mrf.mxu0 }
 0x25c   : > { %v10324_v23 = vadd.f32 %v4239_v36, %v3973_v2 }
 0x25e   : > { %v3017_v8 = vpop.f32.mrf.mxu2 }
 0x25f   : > { %v3116_v62 = vadd.f32 %v3017_v8, %v2259_v52  ;;  %v2795_v52 = vshll.u32 %v8393_v3, 16 }
 0x260   : > { %v2261_v29 = vpop.f32.mrf.mxu1 }
 0x261   : > { %v3875_v1 = vpop.f32.mrf.mxu3  ;;  %v2262_v40 = vadd.f32 %v2261_v29, %v9949_v15  ;;  %v9620_v29 = vld [vmem:[%s9692_s27 + $0x108] sm:$0xff]  }
 0x262   : > { %v3974_v36 = vadd.f32 %v3875_v1, %v3116_v62  ;;  %v3650_v1 = vrot.slane %v3648_v51, 3  ;;  %v8585_v50 = vunpack.c.h.b16 %v9620_v29 }
 0x263   : > { %v4244_v35 = vpop.f32.mrf.mxu0  ;;  %7742 = vmatmul.msk.bf16.gmra.mxu1 %vm1443_vm2, %v2029_v33  ;;  %7903 = vmatmul.msk.bf16.gmra.mxu2 %vm1443_vm2, %v2790_v20  ;;  %v3653_v33 = vrot.slane %v3651_v41, 4  ;;  %v10343_v20 = vld [vmem:[%s9692_s27 + $0x118] sm:$0xff]  }
 0x264   : > { %v10335_v45 = vadd.f32 %v4241_v12, %v3974_v36  ;;  %v2036_v12 = vrot.slane %v2034_v53, 4  ;;  %v8713_v53 = vunpack.c.h.b16 %v10343_v20 }
 0x265   : > { %v3654_v42 = vor.u32 %v3653_v33, %v3650_v1 }
 0x266   : > { %7936 = vmatmul.msk.bf16.gmra.mxu3 %vm1443_vm2, %v3646_v46  ;;  %7969 = vmatmul.msk.bf16.gmra.mxu0 %vm1443_vm2, %v9062_v28  ;;  %v3020_v13 = vpop.f32.mrf.mxu2  ;;  %v2037_v36 = vor.u32 %v2036_v12, %v2033_v47  ;;  %v2793_v46 = vor.u32 %v2791_v38, %v2789_v11  ;;  %v2797_v28 = vrot.slane %v2795_v52, 1  ;;  %v3368_v47 = vpack.c.b16 %v8713_v53, %v8713_v53 }
 0x267   : > { %v3117_v21 = vadd.f32 %v3020_v13, %v2262_v40  ;;  %v1750_v13 = vpack.c.b16 %v8585_v50, %v8585_v50 }
 0x268   : > { %v2263_v58 = vpop.f32.mrf.mxu1  ;;  %v2038_v51 = vsel %vm1751_vm3, %v2028_v19, %v2037_v36  ;;  %v2798_v41 = vsel %vm2546_vm4, %v2793_v46, %v2797_v28  ;;  %v3657_v52 = vshrl.u32 %v3368_v47, 16 }
 0x269   : > { %v3878_v2 = vpop.f32.mrf.mxu3  ;;  %v3655_v58 = vsel %vm1751_vm3, %v3645_v30, %v3654_v42  ;;  %v2040_v11 = vshrl.u32 %v1750_v13, 16  ;;  %v2043_v12 = vshll.u32 %v1750_v13, 16 }
 0x26a   : > { %v3975_v8 = vadd.f32 %v3878_v2, %v3117_v21  ;;  %v3659_v13 = vrot.slane %v3657_v52, 3 }
 0x26b   : > { %v4246_v62 = vpop.f32.mrf.mxu0  ;;  %v2042_v29 = vrot.slane %v2040_v11, 3  ;;  %v2045_v50 = vrot.slane %v2043_v12, 4  ;;  %v9321_v11 = vld [vmem:[%s9692_s27 + $0x2c] sm:$0x8]  ;;  %v9545_v12 = vld [vmem:[%s9692_s27 + $0x2c] sm:$0xf0]  }
 0x26c   : > { %v10345_v15 = vadd.f32 %v4244_v35, %v3975_v8  ;;  %v2512_v35 = vunpack.c.l.b16 %v2380_v27  ;;  %v9063_v8 = vld [vmem:[%s9692_s27 + $0x110] sm:$0xff]   ;;  %v3660_v62 = vshll.u32 %v3368_v47, 16  ;;  %v2799_v27 = vshrl.u32 %v8393_v3, 16 }
 0x26e   : > { %v3022_v5 = vpop.f32.mrf.mxu2  ;;  %v2545_v38 = vpack.c.b16 %v2512_v35, %v2512_v35 }
 0x270   : > { %v2266_v21 = vpop.f32.mrf.mxu1  ;;  %v2803_v53 = vshll.u32 %v2545_v38, 16 }
 0x271   : > { %v3880_v40 = vpop.f32.mrf.mxu3  ;;  %v2267_v19 = vadd.f32 %v2266_v21, %v9968_v26  ;;  %v2046_v26 = vor.u32 %v2045_v50, %v2042_v29  ;;  %v2801_v21 = vor.u32 %v2799_v27, %v2797_v28  ;;  %v10373_v27 = vld [vmem:[%s9692_s27 + $0x28] sm:$0xff] }
 0x272   : > { %v2805_v35 = vrot.slane %v2803_v53, 1 }
 0x273   : > { %v4249_v2 = vpop.f32.mrf.mxu0  ;;  %7743 = vmatmul.msk.bf16.gmra.mxu1 %vm1443_vm2, %v2038_v51  ;;  %7904 = vmatmul.msk.bf16.gmra.mxu2 %vm1443_vm2, %v2798_v41  ;;  %v3662_v51 = vrot.slane %v3660_v62, 4  ;;  %v2047_v52 = vsel %vm1751_vm3, %v2037_v36, %v2046_v26  ;;  %v9547_v62 = vld [vmem:[%s9692_s27 + $0x34] sm:$0xff]  }
 0x274   : > { %v5427_v26 = vshll.u32 %v9547_v62, 16 }
 0x275   : > { %v3663_v47 = vor.u32 %v3662_v51, %v3659_v13  ;;  %v5424_v51 = vshrl.u32 %v9547_v62, 16 }
 0x276   : > { %7937 = vmatmul.msk.bf16.gmra.mxu3 %vm1443_vm2, %v3655_v58  ;;  %7970 = vmatmul.msk.bf16.gmra.mxu0 %vm1443_vm2, %v9063_v8  ;;  %v3025_v1 = vpop.f32.mrf.mxu2  ;;  %v11307_v58 = vld [vmem:[#allocation12_spill] sm:$0xff] }
 0x277   : > { %v3119_v33 = vadd.f32 %v3025_v1, %v2267_v19  ;;  %v8394_v1 = vld [vmem:[%s9692_s27 + $0x20] sm:$0xff]  ;;  %v3664_v50 = vsel %vm1751_vm3, %v3654_v42, %v3663_v47 }
 0x278   : > { %v2268_v46 = vpop.f32.mrf.mxu1  ;;  %v4596_v53 = vshll.u32 %v8394_v1, 16  ;;  %v11309_v42 = vld [vmem:[#allocation14_spill] sm:$0xff] }
 0x279   : > { %v3883_v30 = vpop.f32.mrf.mxu3  ;;  %v2269_v8 = vadd.f32 %v2268_v46, %v11307_v58  ;;  %v8426_v46 = vld [vmem:[%s9692_s27 + $0x30] sm:$0xff] }
 0x27a   : > { %v3977_v5 = vadd.f32 %v3883_v30, %v3119_v33  ;;  %v9322_v30 = vor.u32 %v9545_v12, %v9321_v11  ;;  %v6642_v58 = vshll.u32 %v8426_v46, 16  ;;  %v4594_v12 = vshrl.u32 %v8394_v1, 16 }
 0x27b   : > { %v4251_v40 = vpop.f32.mrf.mxu0  ;;  %v6640_v62 = vshrl.u32 %v8426_v46, 16 }
 0x27c   : > { %v10359_v41 = vadd.f32 %v4249_v2, %v3977_v5  ;;  %v2806_v2 = vsel %vm2546_vm4, %v2801_v21, %v2805_v35  ;;  %v5416_v36 = vshrl.u32 %v9322_v30, 16  ;;  %v5419_v13 = vshll.u32 %v9322_v30, 16  ;;  %v8427_v35 = vld [vmem:[%s9692_s27 + $0x38] sm:$0xff] }
 0x27e   : > { %v3027_v3 = vpop.f32.mrf.mxu2 }
 0x27f   : > { %v3120_v38 = vadd.f32 %v3027_v3, %v2269_v8  ;;  %v4598_v3 = vrot.slane %v4596_v53, 1 }
 0x280   : > { %v2271_v33 = vpop.f32.mrf.mxu1 }
 0x281   : > { %v3885_v19 = vpop.f32.mrf.mxu3  ;;  %v2272_v21 = vadd.f32 %v2271_v33, %v11309_v42  ;;  %v6647_v33 = vshll.u32 %v8427_v35, 16 }
 0x282   : > { %v3978_v28 = vadd.f32 %v3885_v19, %v3120_v38  ;;  %v5418_v19 = vrot.slane %v5416_v36, 3 }
 0x283   : > { %v4254_v29 = vpop.f32.mrf.mxu0  ;;  %7744 = vmatmul.msk.bf16.gmra.mxu1 %vm1443_vm2, %v2047_v52  ;;  %7905 = vmatmul.msk.bf16.gmra.mxu2 %vm1443_vm2, %v2806_v2  ;;  %v5421_v52 = vrot.slane %v5419_v13, 4  ;;  %v5426_v2 = vrot.slane %v5424_v51, 3 }
 0x284   : > { %v10375_v5 = vadd.f32 %v4251_v40, %v3978_v28  ;;  %v4601_v40 = vshll.u32 %v10373_v27, 16 }
 0x285   : > { %v5422_v1 = vor.u32 %v5421_v52, %v5418_v19  ;;  %v11311_v19 = vld [vmem:[#allocation2_spill] sm:$0xff] }
 0x286   : > { %11308 = vst [vmem:[#allocation12_spill] sm:$0xff] %v10375_v5  ;;  %7938 = vmatmul.msk.bf16.gmra.mxu3 %vm1443_vm2, %v3664_v50  ;;  %7971 = vmatmul.msk.bf16.gmra.mxu0 %vm1443_vm2, %v10343_v20  ;;  %v3030_v8 = vpop.f32.mrf.mxu2  ;;  %v5429_v20 = vrot.slane %v5427_v26, 4  ;;  %v6644_v50 = vrot.slane %v6642_v58, 1  ;;  %v9549_v58 = vld [vmem:[%s9692_s27 + $0x3c] sm:$0xff]  }
 0x287   : > { %v3121_v47 = vadd.f32 %v3030_v8, %v2272_v21  ;;  %v4599_v21 = vor.u32 %v4598_v3, %v4594_v12  ;;  %v4603_v8 = vrot.slane %v4601_v40, 1  ;;  %v8396_v12 = vld [vmem:[%s9692_s27 + $0x30] sm:$0xff]  ;;  %v5433_v3 = vshrl.u32 %v9549_v58, 16 }
 0x288   : > { %v2273_v38 = vpop.f32.mrf.mxu1  ;;  %v5430_v53 = vor.u32 %v5429_v20, %v5426_v2  ;;  %v6645_v5 = vor.u32 %v6644_v50, %v6640_v62  ;;  %v5436_v40 = vshll.u32 %v9549_v58, 16  ;;  %v8428_v2 = vld [vmem:[%s9692_s27 + $0x40] sm:$0xff]  ;;  %v4609_v50 = vshll.u32 %v8396_v12, 16 }
 0x289   : > { %v3888_v11 = vpop.f32.mrf.mxu3  ;;  %v6649_v38 = vrot.slane %v6647_v33, 1  ;;  %v4604_v26 = vsel %vm2546_vm4, %v4599_v21, %v4603_v8  ;;  %v5435_v33 = vrot.slane %v5433_v3, 3 }
 0x28a   : > { %v3979_v28 = vadd.f32 %v3888_v11, %v3121_v47  ;;  %v5431_v46 = vsel %vm1751_vm3, %v5422_v1, %v5430_v53  ;;  %v9065_v11 = vld [vmem:[%s9692_s27 + $0x30] sm:$0xff]   ;;  %v5438_v21 = vrot.slane %v5436_v40, 4 }
 0x28b   : > { %v4256_v30 = vpop.f32.mrf.mxu0 }
 0x28c   : > { %v10383_v42 = vadd.f32 %v4254_v29, %v3979_v28  ;;  %v6650_v29 = vsel %vm2546_vm4, %v6645_v5, %v6649_v38  ;;  %v4605_v5 = vshrl.u32 %v10373_v27, 16 }
 0x28e   : > { %11310 = vst [vmem:[#allocation14_spill] sm:$0xff] %v10383_v42  ;;  %v3032_v36 = vpop.f32.mrf.mxu2  ;;  %v4607_v58 = vor.u32 %v4605_v5, %v4603_v8  ;;  %v9066_v8 = vld [vmem:[%s9692_s27 + $0x38] sm:$0xff]  }
 0x290   : > { %v2276_v51 = vpop.f32.mrf.mxu1 }
 0x291   : > { %v3890_v13 = vpop.f32.mrf.mxu3  ;;  %v2277_v52 = vadd.f32 %v2276_v51, %v11311_v19  ;;  %v4611_v51 = vrot.slane %v4609_v50, 1 }
 0x292   : > { %v6651_v13 = vshrl.u32 %v8427_v35, 16 }
 0x293   : > { %v4259_v47 = vpop.f32.mrf.mxu0  ;;  %8101 = vmatmul.msk.bf16.vlgmr.msra.gmra.mxu1 %vm1443_vm2, %v4604_v26  ;;  %8134 = vmatmul.msk.bf16.vlgmr.msra.gmra.mxu2 %vm1443_vm2, %v5431_v46  ;;  %v6655_v26 = vshll.u32 %v8428_v2, 16 }
 0x296   : > { %8167 = vmatmul.msk.bf16.vlgmr.msra.gmra.mxu3 %vm1443_vm2, %v9065_v11  ;;  %8328 = vmatmul.msk.bf16.vlgmr.msra.gmra.mxu0 %vm1443_vm2, %v6650_v29  ;;  %v3035_v20 = vpop.f32.mrf.mxu2  ;;  %v5439_v11 = vor.u32 %v5438_v21, %v5435_v33  ;;  %v11313_v29 = vld [vmem:[#allocation3_spill] sm:$0xff] }
 0x297   : > { %v3123_v28 = vadd.f32 %v3035_v20, %v2277_v52  ;;  %v6653_v52 = vor.u32 %v6651_v13, %v6649_v38  ;;  %v6657_v20 = vrot.slane %v6655_v26, 1  ;;  %v8429_v21 = vld [vmem:[%s9692_s27 + $0x48] sm:$0xff] }
 0x298   : > { %v2278_v62 = vpop.f32.mrf.mxu1  ;;  %v5440_v35 = vsel %vm1751_vm3, %v5430_v53, %v5439_v11  ;;  %v11315_v53 = vld [vmem:[#allocation4_spill] sm:$0xff] }
 0x299   : > { %v3893_v30 = vpop.f32.mrf.mxu3  ;;  %v2279_v19 = vadd.f32 %v2278_v62, %v11313_v29  ;;  %v6658_v5 = vsel %vm2546_vm4, %v6653_v52, %v6657_v20 }
 0x29a   : > { %v3981_v1 = vadd.f32 %v3893_v30, %v3123_v28  ;;  %v4612_v28 = vsel %vm2546_vm4, %v4607_v58, %v4611_v51 }
 0x29b   : > { %v4261_v36 = vpop.f32.mrf.mxu0 }
 0x29c   : > { %v10398_v46 = vadd.f32 %v4259_v47, %v3981_v1  ;;  %v9551_v47 = vld [vmem:[%s9692_s27 + $0x44] sm:$0xff]  }
 0x29d   : > { %v5442_v62 = vshrl.u32 %v9551_v47, 16  ;;  %v5445_v50 = vshll.u32 %v9551_v47, 16 }
 0x29e   : > { %11312 = vst [vmem:[#allocation2_spill] sm:$0xff] %v10398_v46  ;;  %v3037_v42 = vpop.f32.mrf.mxu2 }
 0x29f   : > { %v3124_v27 = vadd.f32 %v3037_v42, %v2279_v19  ;;  %v8397_v42 = vld [vmem:[%s9692_s27 + $0x38] sm:$0xff]  ;;  %v4613_v19 = vshrl.u32 %v8396_v12, 16 }
 0x2a0   : > { %v2281_v40 = vpop.f32.mrf.mxu1  ;;  %v4617_v52 = vshll.u32 %v8397_v42, 16 }
 0x2a1   : > { %v3895_v3 = vpop.f32.mrf.mxu3  ;;  %v2282_v33 = vadd.f32 %v2281_v40, %v11315_v53  ;;  %v4615_v47 = vor.u32 %v4613_v19, %v4611_v51  ;;  %v8398_v51 = vld [vmem:[%s9692_s27 + $0x40] sm:$0xff] }
 0x2a2   : > { %v3982_v30 = vadd.f32 %v3895_v3, %v3124_v27  ;;  %v5444_v27 = vrot.slane %v5442_v62, 3  ;;  %v5447_v3 = vrot.slane %v5445_v50, 4 }
 0x2a3   : > { %v4264_v1 = vpop.f32.mrf.mxu0  ;;  %8102 = vmatmul.msk.bf16.gmra.mxu1 %vm1443_vm2, %v4612_v28  ;;  %8135 = vmatmul.msk.bf16.gmra.mxu2 %vm1443_vm2, %v5440_v35  ;;  %v6659_v35 = vshrl.u32 %v8428_v2, 16  ;;  %v9067_v2 = vld [vmem:[%s9692_s27 + $0x40] sm:$0xff]  }
 0x2a4   : > { %v10408_v38 = vadd.f32 %v4261_v36, %v3982_v30  ;;  %v6663_v30 = vshll.u32 %v8429_v21, 16  ;;  %v5448_v40 = vor.u32 %v5447_v3, %v5444_v27  ;;  %v8430_v3 = vld [vmem:[%s9692_s27 + $0x50] sm:$0xff] }
 0x2a5   : > { %v6661_v53 = vor.u32 %v6659_v35, %v6657_v20 }
 0x2a6   : > { %11314 = vst [vmem:[#allocation3_spill] sm:$0xff] %v10408_v38  ;;  %8168 = vmatmul.msk.bf16.gmra.mxu3 %vm1443_vm2, %v9066_v8  ;;  %8329 = vmatmul.msk.bf16.gmra.mxu0 %vm1443_vm2, %v6658_v5  ;;  %v3040_v13 = vpop.f32.mrf.mxu2  ;;  %v4619_v5 = vrot.slane %v4617_v52, 1  ;;  %v5449_v50 = vsel %vm1751_vm3, %v5439_v11, %v5448_v40  ;;  %v11317_v52 = vld [vmem:[#allocation5_spill] sm:$0xff] }
 0x2a7   : > { %v3125_v26 = vadd.f32 %v3040_v13, %v2282_v33  ;;  %v6665_v33 = vrot.slane %v6663_v30, 1  ;;  %v4621_v30 = vshrl.u32 %v8397_v42, 16 }
 0x2a8   : > { %v2283_v29 = vpop.f32.mrf.mxu1  ;;  %v4620_v62 = vsel %vm2546_vm4, %v4615_v47, %v4619_v5  ;;  %v4625_v47 = vshll.u32 %v8398_v51, 16 }
 0x2a9   : > { %v3898_v58 = vpop.f32.mrf.mxu3 }
 0x2aa   : > { %v3983_v36 = vadd.f32 %v3898_v58, %v3125_v26  ;;  %v9553_v26 = vld [vmem:[%s9692_s27 + $0x4c] sm:$0xff]  }
 0x2ab   : > { %v4266_v28 = vpop.f32.mrf.mxu0  ;;  %v5451_v20 = vshrl.u32 %v9553_v26, 16  ;;  %v5454_v19 = vshll.u32 %v9553_v26, 16  ;;  %v4623_v26 = vor.u32 %v4621_v30, %v4619_v5  ;;  %v9068_v5 = vld [vmem:[%s9692_s27 + $0x48] sm:$0xff]  }
 0x2ac   : > { %v10415_v8 = vadd.f32 %v4264_v1, %v3983_v36  ;;  %v6666_v1 = vsel %vm2546_vm4, %v6661_v53, %v6665_v33 }
 0x2ad   : > { %v5453_v53 = vrot.slane %v5451_v20, 3 }
 0x2ae   : > { %11316 = vst [vmem:[#allocation4_spill] sm:$0xff] %v10415_v8  ;;  %v3042_v13 = vpop.f32.mrf.mxu2  ;;  %v4627_v8 = vrot.slane %v4625_v47, 1 }
 0x2af   : > { %v5456_v13 = vrot.slane %v5454_v19, 4 }
 0x2b0   : > { %v2286_v12 = vpop.f32.mrf.mxu1 }
 0x2b1   : > { %v3900_v29 = vpop.f32.mrf.mxu3  ;;  %v2287_v27 = vadd.f32 %v2286_v12, %v11317_v52  ;;  %v5457_v12 = vor.u32 %v5456_v13, %v5453_v53  ;;  %v11319_v52 = vld [vmem:[#allocation6_spill] sm:$0xff]  ;;  %v8431_v53 = vld [vmem:[%s9692_s27 + $0x58] sm:$0xff] }
 0x2b3   : > { %v4269_v58 = vpop.f32.mrf.mxu0  ;;  %8103 = vmatmul.msk.bf16.gmra.mxu1 %vm1443_vm2, %v4620_v62  ;;  %8136 = vmatmul.msk.bf16.gmra.mxu2 %vm1443_vm2, %v5449_v50  ;;  %v6667_v50 = vshrl.u32 %v8429_v21, 16  ;;  %v5458_v21 = vsel %vm1751_vm3, %v5448_v40, %v5457_v12  ;;  %v11321_v40 = vld [vmem:[#allocation7_spill] sm:$0xff] }
 0x2b6   : > { %8169 = vmatmul.msk.bf16.gmra.mxu3 %vm1443_vm2, %v9067_v2  ;;  %8330 = vmatmul.msk.bf16.gmra.mxu0 %vm1443_vm2, %v6666_v1  ;;  %v3045_v11 = vpop.f32.mrf.mxu2  ;;  %v6671_v2 = vshll.u32 %v8430_v3, 16 }
 0x2b7   : > { %v3127_v36 = vadd.f32 %v3045_v11, %v2287_v27  ;;  %v6669_v27 = vor.u32 %v6667_v50, %v6665_v33 }
 0x2b8   : > { %v2288_v35 = vpop.f32.mrf.mxu1  ;;  %v6673_v11 = vrot.slane %v6671_v2, 1 }
 0x2b9   : > { %v3903_v28 = vpop.f32.mrf.mxu3  ;;  %v2289_v38 = vadd.f32 %v2288_v35, %v11319_v52  ;;  %v4629_v52 = vshrl.u32 %v8398_v51, 16 }
 0x2ba   : > { %v3985_v29 = vadd.f32 %v3903_v28, %v3127_v36  ;;  %v4628_v36 = vsel %vm2546_vm4, %v4623_v26, %v4627_v8  ;;  %v6674_v30 = vsel %vm2546_vm4, %v6669_v27, %v6673_v11 }
 0x2bb   : > { %v4271_v62 = vpop.f32.mrf.mxu0 }
 0x2bc   : > { %v10429_v1 = vadd.f32 %v4269_v58, %v3985_v29  ;;  %v9555_v58 = vld [vmem:[%s9692_s27 + $0x54] sm:$0xff]  }
 0x2bd   : > { %v5463_v35 = vshll.u32 %v9555_v58, 16 }
 0x2be   : > { %11318 = vst [vmem:[#allocation5_spill] sm:$0xff] %v10429_v1  ;;  %v3047_v46 = vpop.f32.mrf.mxu2 }
 0x2bf   : > { %v3128_v42 = vadd.f32 %v3047_v46, %v2289_v38  ;;  %v8399_v46 = vld [vmem:[%s9692_s27 + $0x48] sm:$0xff]  ;;  %v5460_v38 = vshrl.u32 %v9555_v58, 16  ;;  %v4631_v58 = vor.u32 %v4629_v52, %v4627_v8  ;;  %v8400_v8 = vld [vmem:[%s9692_s27 + $0x50] sm:$0xff] }
 0x2c0   : > { %v2291_v19 = vpop.f32.mrf.mxu1  ;;  %v4633_v27 = vshll.u32 %v8399_v46, 16 }
 0x2c1   : > { %v3905_v20 = vpop.f32.mrf.mxu3  ;;  %v2292_v47 = vadd.f32 %v2291_v19, %v11321_v40 }
 0x2c2   : > { %v3986_v28 = vadd.f32 %v3905_v20, %v3128_v42  ;;  %v5462_v42 = vrot.slane %v5460_v38, 3  ;;  %v5465_v20 = vrot.slane %v5463_v35, 4 }
 0x2c3   : > { %v4274_v29 = vpop.f32.mrf.mxu0  ;;  %8104 = vmatmul.msk.bf16.gmra.mxu1 %vm1443_vm2, %v4628_v36  ;;  %8137 = vmatmul.msk.bf16.gmra.mxu2 %vm1443_vm2, %v5458_v21  ;;  %v6675_v21 = vshrl.u32 %v8430_v3, 16  ;;  %v9069_v3 = vld [vmem:[%s9692_s27 + $0x50] sm:$0xff]  }
 0x2c4   : > { %v10439_v33 = vadd.f32 %v4271_v62, %v3986_v28  ;;  %v6679_v28 = vshll.u32 %v8431_v53, 16  ;;  %v5466_v19 = vor.u32 %v5465_v20, %v5462_v42  ;;  %v8432_v20 = vld [vmem:[%s9692_s27 + $0x60] sm:$0xff] }
 0x2c5   : > { %v6677_v40 = vor.u32 %v6675_v21, %v6673_v11 }
 0x2c6   : > { %11320 = vst [vmem:[#allocation6_spill] sm:$0xff] %v10439_v33  ;;  %8170 = vmatmul.msk.bf16.gmra.mxu3 %vm1443_vm2, %v9068_v5  ;;  %8331 = vmatmul.msk.bf16.gmra.mxu0 %vm1443_vm2, %v6674_v30  ;;  %v3050_v13 = vpop.f32.mrf.mxu2  ;;  %v4635_v30 = vrot.slane %v4633_v27, 1  ;;  %v5467_v35 = vsel %vm1751_vm3, %v5457_v12, %v5466_v19  ;;  %v11323_v27 = vld [vmem:[#allocation8_spill] sm:$0xff] }
 0x2c7   : > { %v3129_v50 = vadd.f32 %v3050_v13, %v2292_v47  ;;  %v6681_v47 = vrot.slane %v6679_v28, 1  ;;  %v4637_v28 = vshrl.u32 %v8399_v46, 16 }
 0x2c8   : > { %v2293_v26 = vpop.f32.mrf.mxu1  ;;  %v4636_v38 = vsel %vm2546_vm4, %v4631_v58, %v4635_v30  ;;  %v4641_v58 = vshll.u32 %v8400_v8, 16 }
 0x2c9   : > { %v3908_v2 = vpop.f32.mrf.mxu3 }
 0x2ca   : > { %v3987_v62 = vadd.f32 %v3908_v2, %v3129_v50  ;;  %v9557_v50 = vld [vmem:[%s9692_s27 + $0x5c] sm:$0xff]  }
 0x2cb   : > { %v4276_v36 = vpop.f32.mrf.mxu0  ;;  %v5469_v11 = vshrl.u32 %v9557_v50, 16  ;;  %v5472_v52 = vshll.u32 %v9557_v50, 16  ;;  %v4639_v50 = vor.u32 %v4637_v28, %v4635_v30  ;;  %v9070_v30 = vld [vmem:[%s9692_s27 + $0x58] sm:$0xff]  }
 0x2cc   : > { %v10446_v5 = vadd.f32 %v4274_v29, %v3987_v62  ;;  %v6682_v29 = vsel %vm2546_vm4, %v6677_v40, %v6681_v47 }
 0x2cd   : > { %v5471_v40 = vrot.slane %v5469_v11, 3 }
 0x2ce   : > { %11322 = vst [vmem:[#allocation7_spill] sm:$0xff] %v10446_v5  ;;  %v3052_v13 = vpop.f32.mrf.mxu2  ;;  %v4643_v5 = vrot.slane %v4641_v58, 1 }
 0x2cf   : > { %v5474_v13 = vrot.slane %v5472_v52, 4 }
 0x2d0   : > { %v2296_v51 = vpop.f32.mrf.mxu1 }
 0x2d1   : > { %v3910_v26 = vpop.f32.mrf.mxu3  ;;  %v2297_v42 = vadd.f32 %v2296_v51, %v11323_v27  ;;  %v5475_v51 = vor.u32 %v5474_v13, %v5471_v40  ;;  %v11325_v27 = vld [vmem:[#allocation9_spill] sm:$0xff]  ;;  %v10477_v40 = vld [vmem:[%s9692_s27 + $0x68] sm:$0xff] }
 0x2d3   : > { %v4279_v2 = vpop.f32.mrf.mxu0  ;;  %8105 = vmatmul.msk.bf16.gmra.mxu1 %vm1443_vm2, %v4636_v38  ;;  %8138 = vmatmul.msk.bf16.gmra.mxu2 %vm1443_vm2, %v5467_v35  ;;  %v6683_v35 = vshrl.u32 %v8431_v53, 16  ;;  %v5476_v53 = vsel %vm1751_vm3, %v5466_v19, %v5475_v51  ;;  %v11327_v19 = vld [vmem:[#allocation10_spill] sm:$0xff] }
 0x2d6   : > { %8171 = vmatmul.msk.bf16.gmra.mxu3 %vm1443_vm2, %v9069_v3  ;;  %8332 = vmatmul.msk.bf16.gmra.mxu0 %vm1443_vm2, %v6682_v29  ;;  %v3055_v12 = vpop.f32.mrf.mxu2  ;;  %v6687_v3 = vshll.u32 %v8432_v20, 16 }
 0x2d7   : > { %v3131_v62 = vadd.f32 %v3055_v12, %v2297_v42  ;;  %v6685_v42 = vor.u32 %v6683_v35, %v6681_v47 }
 0x2d8   : > { %v2298_v21 = vpop.f32.mrf.mxu1  ;;  %v6689_v12 = vrot.slane %v6687_v3, 1 }
 0x2d9   : > { %v3913_v36 = vpop.f32.mrf.mxu3  ;;  %v2299_v33 = vadd.f32 %v2298_v21, %v11325_v27  ;;  %v4645_v27 = vshrl.u32 %v8400_v8, 16 }
 0x2da   : > { %v3989_v26 = vadd.f32 %v3913_v36, %v3131_v62  ;;  %v4644_v62 = vsel %vm2546_vm4, %v4639_v50, %v4643_v5  ;;  %v6690_v28 = vsel %vm2546_vm4, %v6685_v42, %v6689_v12 }
 0x2db   : > { %v4281_v38 = vpop.f32.mrf.mxu0 }
 0x2dc   : > { %v10460_v29 = vadd.f32 %v4279_v2, %v3989_v26  ;;  %v9559_v2 = vld [vmem:[%s9692_s27 + $0x64] sm:$0xff]  }
 0x2dd   : > { %v5481_v21 = vshll.u32 %v9559_v2, 16 }
 0x2de   : > { %11324 = vst [vmem:[#allocation8_spill] sm:$0xff] %v10460_v29  ;;  %v3057_v1 = vpop.f32.mrf.mxu2 }
 0x2df   : > { %v3132_v46 = vadd.f32 %v3057_v1, %v2299_v33  ;;  %v8401_v1 = vld [vmem:[%s9692_s27 + $0x58] sm:$0xff]  ;;  %v5478_v33 = vshrl.u32 %v9559_v2, 16 }
 0x2e0   : > { %v2301_v52 = vpop.f32.mrf.mxu1  ;;  %v4649_v42 = vshll.u32 %v8401_v1, 16 }
 0x2e1   : > { %v3915_v11 = vpop.f32.mrf.mxu3  ;;  %v2302_v58 = vadd.f32 %v2301_v52, %v11327_v19  ;;  %v4647_v52 = vor.u32 %v4645_v27, %v4643_v5  ;;  %v10492_v5 = vld [vmem:[%s9692_s27 + $0x60] sm:$0xff] }
 0x2e2   : > { %v3990_v36 = vadd.f32 %v3915_v11, %v3132_v46  ;;  %v5480_v46 = vrot.slane %v5478_v33, 3 }
 0x2e3   : > { %v4284_v26 = vpop.f32.mrf.mxu0  ;;  %8106 = vmatmul.msk.bf16.gmra.mxu1 %vm1443_vm2, %v4644_v62  ;;  %8139 = vmatmul.msk.bf16.gmra.mxu2 %vm1443_vm2, %v5476_v53  ;;  %v6691_v53 = vshrl.u32 %v8432_v20, 16 }
 0x2e4   : > { %v10470_v47 = vadd.f32 %v4281_v38, %v3990_v36  ;;  %v5483_v38 = vrot.slane %v5481_v21, 4  ;;  %v6695_v36 = vshll.u32 %v10477_v40, 16 }
 0x2e5   : > { %v6693_v19 = vor.u32 %v6691_v53, %v6689_v12 }
 0x2e6   : > { %11326 = vst [vmem:[#allocation9_spill] sm:$0xff] %v10470_v47  ;;  %8172 = vmatmul.msk.bf16.gmra.mxu3 %vm1443_vm2, %v9070_v30  ;;  %8333 = vmatmul.msk.bf16.gmra.mxu0 %vm1443_vm2, %v6690_v28  ;;  %v3060_v13 = vpop.f32.mrf.mxu2  ;;  %v4651_v30 = vrot.slane %v4649_v42, 1  ;;  %v5484_v28 = vor.u32 %v5483_v38, %v5480_v46  ;;  %v11329_v42 = vld [vmem:[#allocation11_spill] sm:$0xff]  ;;  %v10496_v46 = vld [vmem:[%s9692_s27 + $0x70] sm:$0xff] }
 0x2e7   : > { %v3133_v35 = vadd.f32 %v3060_v13, %v2302_v58  ;;  %v6697_v58 = vrot.slane %v6695_v36, 1  ;;  %v4653_v36 = vshrl.u32 %v8401_v1, 16 }
 0x2e8   : > { %v2303_v50 = vpop.f32.mrf.mxu1  ;;  %v4652_v21 = vsel %vm2546_vm4, %v4647_v52, %v4651_v30  ;;  %v4657_v52 = vshll.u32 %v10492_v5, 16 }
 0x2e9   : > { %v3918_v3 = vpop.f32.mrf.mxu3  ;;  %v9071_v50 = vld [vmem:[%s9692_s27 + $0x60] sm:$0xff]  }
 0x2ea   : > { %v3991_v11 = vadd.f32 %v3918_v3, %v3133_v35  ;;  %v5485_v35 = vsel %vm1751_vm3, %v5475_v51, %v5484_v28  ;;  %v9561_v3 = vld [vmem:[%s9692_s27 + $0x6c] sm:$0xff]  }
 0x2eb   : > { %v4286_v62 = vpop.f32.mrf.mxu0  ;;  %v5487_v12 = vshrl.u32 %v9561_v3, 16  ;;  %v5490_v27 = vshll.u32 %v9561_v3, 16  ;;  %v6703_v3 = vshll.u32 %v10496_v46, 16 }
 0x2ec   : > { %v10480_v2 = vadd.f32 %v4284_v26, %v3991_v11  ;;  %v6698_v26 = vsel %vm2546_vm4, %v6693_v19, %v6697_v58 }
 0x2ed   : > { %v5489_v19 = vrot.slane %v5487_v12, 3 }
 0x2ee   : > { %11328 = vst [vmem:[#allocation10_spill] sm:$0xff] %v10480_v2  ;;  %v3062_v13 = vpop.f32.mrf.mxu2  ;;  %v9073_v2 = vld [vmem:[%s9692_s27 + $0x70] sm:$0xff]  }
 0x2ef   : > { %v5492_v13 = vrot.slane %v5490_v27, 4  ;;  %v11331_v27 = vld [vmem:[#allocation13_spill] sm:$0xff] }
 0x2f0   : > { %v2306_v33 = vpop.f32.mrf.mxu1 }
 0x2f1   : > { %v3920_v8 = vpop.f32.mrf.mxu3  ;;  %v2307_v51 = vadd.f32 %v2306_v33, %v11329_v42  ;;  %v5493_v12 = vor.u32 %v5492_v13, %v5489_v19  ;;  %v9072_v19 = vld [vmem:[%s9692_s27 + $0x68] sm:$0xff]  }
 0x2f2   : > { %v9632_v8 = vmov 0  }
 0x2f3   : > { %v4289_v20 = vpop.f32.mrf.mxu0  ;;  %8107 = vmatmul.msk.bf16.gmra.mxu1 %vm1443_vm2, %v4652_v21  ;;  %8140 = vmatmul.msk.bf16.gmra.mxu2 %vm1443_vm2, %v5485_v35  ;;  %1199 = vst.msk [vmem:[%s10503_s11] sm:$0xf] %vm1198_vm5, %v9632_v8  ;;  %v6699_v35 = vshrl.u32 %v10477_v40, 16 }
 0x2f4   : > { %1200 = vst.msk [vmem:[%s10503_s11 + $0x4] sm:$0xf] %vm1198_vm5, %v9632_v8 }
 0x2f5   : > { %1201 = vst.msk [vmem:[%s10503_s11 + $0x8] sm:$0xf] %vm1198_vm5, %v9632_v8  ;;  %v6701_v42 = vor.u32 %v6699_v35, %v6697_v58  ;;  %v9563_v58 = vld [vmem:[%s9692_s27 + $0x74] sm:$0xff]  }
 0x2f6   : > { %8173 = vmatmul.msk.bf16.gmra.mxu3 %vm1443_vm2, %v9071_v50  ;;  %8334 = vmatmul.msk.bf16.gmra.mxu0 %vm1443_vm2, %v6698_v26  ;;  %v3065_v38 = vpop.f32.mrf.mxu2  ;;  %1202 = vst.msk [vmem:[%s10503_s11 + $0xc] sm:$0xf] %vm1198_vm5, %v9632_v8  ;;  %v4655_v50 = vor.u32 %v4653_v36, %v4651_v30  ;;  %v4659_v26 = vrot.slane %v4657_v52, 1  ;;  %v5496_v35 = vshrl.u32 %v9563_v58, 16 }
 0x2f7   : > { %v3135_v11 = vadd.f32 %v3065_v38, %v2307_v51  ;;  %1203 = vst.msk [vmem:[%s10503_s11 + $0x10] sm:$0xf] %vm1198_vm5, %v9632_v8  ;;  %v6705_v51 = vrot.slane %v6703_v3, 1  ;;  %v5499_v3 = vshll.u32 %v9563_v58, 16 }
 0x2f8   : > { %v2308_v53 = vpop.f32.mrf.mxu1  ;;  %1204 = vst.msk [vmem:[%s10503_s11 + $0x14] sm:$0xf] %vm1198_vm5, %v9632_v8 }
 0x2f9   : > { %v3923_v62 = vpop.f32.mrf.mxu3  ;;  %v2309_v40 = vadd.f32 %v2308_v53, %v11331_v27  ;;  %1205 = vst.msk [vmem:[%s10503_s11 + $0x18] sm:$0xf] %vm1198_vm5, %v9632_v8  ;;  %v5494_v53 = vsel %vm1751_vm3, %v5484_v28, %v5493_v12  ;;  %v6706_v13 = vsel %vm2546_vm4, %v6701_v42, %v6705_v51  ;;  %v5501_v58 = vrot.slane %v5499_v3, 4 }
 0x2fa   : > { %v3993_v33 = vadd.f32 %v3923_v62, %v3135_v11  ;;  %1206 = vst.msk [vmem:[%s10503_s11 + $0x1c] sm:$0xf] %vm1198_vm5, %v9632_v8  ;;  %v4660_v62 = vsel %vm2546_vm4, %v4655_v50, %v4659_v26  ;;  %v11333_v50 = vld [vmem:[#allocation15_spill] sm:$0xff] }
 0x2fb   : > { %v4291_v21 = vpop.f32.mrf.mxu0  ;;  %1207 = vst.msk [vmem:[%s10503_s11 + $0x120] sm:$0xf] %vm1198_vm5, %v9632_v8 }
 0x2fc   : > { %v10516_v1 = vadd.f32 %v4289_v20, %v3993_v33  ;;  %1208 = vst.msk [vmem:[%s10503_s11 + $0x124] sm:$0xf] %vm1198_vm5, %v9632_v8  ;;  %v10547_v33 = vld [vmem:[%s9692_s27 + $0x68] sm:$0xff] }
 0x2fd   : > { %1209 = vst.msk [vmem:[%s10503_s11 + $0x128] sm:$0xf] %vm1198_vm5, %v9632_v8 }
 0x2fe   : > { %11330 = vst [vmem:[#allocation11_spill] sm:$0xff] %v10516_v1  ;;  %v3067_v38 = vpop.f32.mrf.mxu2 }
 0x2ff   : > { %v3136_v20 = vadd.f32 %v3067_v38, %v2309_v40  ;;  %1210 = vst.msk [vmem:[%s10503_s11 + $0x12c] sm:$0xf] %vm1198_vm5, %v9632_v8  ;;  %v10553_v40 = vld [vmem:[%s9692_s27 + $0x78] sm:$0xff] }
 0x300   : > { %v2311_v11 = vpop.f32.mrf.mxu1  ;;  %1211 = vst.msk [vmem:[%s10503_s11 + $0x130] sm:$0xf] %vm1198_vm5, %v9632_v8 }
 0x301   : > { %v3925_v30 = vpop.f32.mrf.mxu3  ;;  %v2312_v27 = vadd.f32 %v2311_v11, %v11333_v50  ;;  %1212 = vst.msk [vmem:[%s10503_s11 + $0x134] sm:$0xf] %vm1198_vm5, %v9632_v8 }
 0x302   : > { %v3994_v36 = vadd.f32 %v3925_v30, %v3136_v20  ;;  %1213 = vst.msk [vmem:[%s10503_s11 + $0x138] sm:$0xf] %vm1198_vm5, %v9632_v8  ;;  %v4661_v30 = vshrl.u32 %v10492_v5, 16 }
 0x303   : > { %v4294_v52 = vpop.f32.mrf.mxu0  ;;  %8108 = vmatmul.msk.bf16.gmra.mxu1 %vm1443_vm2, %v4660_v62  ;;  %8141 = vmatmul.msk.bf16.gmra.mxu2 %vm1443_vm2, %v5494_v53  ;;  %1214 = vst.msk [vmem:[%s10503_s11 + $0x13c] sm:$0xf] %vm1198_vm5, %v9632_v8  ;;  %v4665_v62 = vshll.u32 %v10547_v33, 16  ;;  %v5498_v53 = vrot.slane %v5496_v35, 3  ;;  %v173_v35 = vlaneseq }
 0x304   : > { %v10542_v28 = vadd.f32 %v4291_v21, %v3994_v36 }
 0x305   : > { %v5502_v8 = vor.u32 %v5501_v58, %v5498_v53 }
 0x306   : > { %11332 = vst [vmem:[#allocation13_spill] sm:$0xff] %v10542_v28  ;;  %8174 = vmatmul.msk.bf16.gmra.mxu3 %vm1443_vm2, %v9072_v19  ;;  %8335 = vmatmul.msk.bf16.gmra.mxu0 %vm1443_vm2, %v6706_v13  ;;  %v3070_v42 = vpop.f32.mrf.mxu2  ;;  %v6707_v19 = vshrl.u32 %v10496_v46, 16  ;;  %v6711_v13 = vshll.u32 %v10553_v40, 16 }
 0x307   : > { %v3137_v21 = vadd.f32 %v3070_v42, %v2312_v27  ;;  %v4663_v27 = vor.u32 %v4661_v30, %v4659_v26  ;;  %v4667_v42 = vrot.slane %v4665_v62, 1  ;;  %v5503_v46 = vsel %vm1751_vm3, %v5493_v12, %v5502_v8  ;;  %v10583_v62 = vld [vmem:[%s9692_s27 + $0x80] sm:$0xff] }
 0x308   : > { %v2313_v20 = vpop.f32.mrf.mxu1  ;;  %v6713_v28 = vrot.slane %v6711_v13, 1  ;;  %v10574_v26 = vshrl.u32 %v173_v35, 7 }
 0x309   : > { %v3928_v38 = vpop.f32.mrf.mxu3  ;;  %v6709_v20 = vor.u32 %v6707_v19, %v6705_v51 }
 0x30a   : > { %v3995_v36 = vadd.f32 %v3928_v38, %v3137_v21  ;;  %v4668_v21 = vsel %vm2546_vm4, %v4663_v27, %v4667_v42  ;;  %v9565_v38 = vld [vmem:[%s9692_s27 + $0x7c] sm:$0xff]   ;;  %v4669_v27 = vshrl.u32 %v10547_v33, 16 }
 0x30b   : > { %v4296_v11 = vpop.f32.mrf.mxu0  ;;  %v5505_v51 = vshrl.u32 %v9565_v38, 16  ;;  %v5508_v30 = vshll.u32 %v9565_v38, 16 }
 0x30c   : > { %v10565_v50 = vadd.f32 %v4294_v52, %v3995_v36  ;;  %v6714_v52 = vsel %vm2546_vm4, %v6709_v20, %v6713_v28  ;;  %v242_v36 = vand.u32 31, %v10574_v26 }
 0x30d   : > { %v5507_v20 = vrot.slane %v5505_v51, 3 }
 0x30e   : > { %11334 = vst [vmem:[#allocation15_spill] sm:$0xff] %v10565_v50  ;;  %v3072_v5 = vpop.f32.mrf.mxu2  ;;  %vm1006_vm6 = vcmp.ge.s32.totalorder %v242_v36, 1 }
 0x30f   : > { %v5510_v5 = vrot.slane %v5508_v30, 4 }
 0x310   : > { %v4961_v3 = vpop.f32.mrf.mxu1 }
 0x311   : > { %v3930_v1 = vpop.f32.mrf.mxu3  ;;  %v5121_v12 = vadd.f32 %v4961_v3, %v10011_v39  ;;  %v6715_v3 = vshrl.u32 %v10553_v40, 16 }
 0x312   : > { %v10579_v1 = vld [vmem:[%s9692_s27 + $0x70] sm:$0xff] }
 0x313   : > { %v7007_v11 = vpop.f32.mrf.mxu0  ;;  %8109 = vmatmul.msk.bf16.gmra.mxu1 %vm1443_vm2, %v4668_v21  ;;  %8142 = vmatmul.msk.bf16.gmra.mxu2 %vm1443_vm2, %v5503_v46  ;;  %v10591_v21 = vld [vmem:[%s11291_s2] ss:$0 sm:$0xff]  ;;  %v6719_v46 = vshll.u32 %v10583_v62, 16 }
 0x316   : > { %8175 = vmatmul.msk.bf16.gmra.mxu3 %vm1443_vm2, %v9073_v2  ;;  %8336 = vmatmul.msk.bf16.gmra.mxu0 %vm1443_vm2, %v6714_v52  ;;  %v5819_v53 = vpop.f32.mrf.mxu2  ;;  %v4673_v2 = vshll.u32 %v10579_v1, 16  ;;  %v4671_v52 = vor.u32 %v4669_v27, %v4667_v42  ;;  %v9567_v27 = vld [vmem:[%s9692_s27 + $0x84] sm:$0xff]  }
 0x317   : > { %v5979_v58 = vadd.f32 %v5819_v53, %v5121_v12  ;;  %v5511_v12 = vor.u32 %v5510_v5, %v5507_v20  ;;  %v6717_v53 = vor.u32 %v6715_v3, %v6713_v28  ;;  %v9074_v5 = vld [vmem:[%s9692_s27 + $0x78] sm:$0xff]  }
 0x318   : > { %v4963_v13 = vpop.f32.mrf.mxu1  ;;  %v4675_v33 = vrot.slane %v4673_v2, 1 }
 0x319   : > { %v6185_v19 = vpop.f32.mrf.mxu3  ;;  %v5122_v30 = vadd.f32 %v4963_v13, %v10021_v54  ;;  %v5512_v42 = vsel %vm1751_vm3, %v5502_v8, %v5511_v12  ;;  %v10610_v8 = vld [vmem:[%s9692_s27 + $0x78] sm:$0xff]  ;;  %v5517_v13 = vshll.u32 %v9567_v27, 16 }
 0x31a   : > { %v6345_v35 = vadd.f32 %v6185_v19, %v5979_v58  ;;  %v6721_v58 = vrot.slane %v6719_v46, 1  ;;  %v4676_v36 = vsel %vm2546_vm4, %v4671_v52, %v4675_v33 }
 0x31b   : > { %v7009_v39 = vpop.f32.mrf.mxu0 }
 0x31c   : > { %v7167_v38 = vadd.f32 %v7007_v11, %v6345_v35  ;;  %v6722_v54 = vsel %vm2546_vm4, %v6717_v53, %v6721_v58  ;;  %v4677_v53 = vshrl.u32 %v10579_v1, 16 }
 0x31e   : > { %v7234_v51 = vadd.f32 %v10591_v21, %v7167_v38  ;;  %v5821_v19 = vpop.f32.mrf.mxu2 }
 0x31f   : > { %v5980_v47 = vadd.f32 %v5821_v19, %v5122_v30  ;;  %v4681_v19 = vshll.u32 %v10610_v8, 16 }
 0x320   : > { %v7426_v50 = vsel %vm1006_vm6, %v7234_v51, 0.0  ;;  %v4966_v11 = vpop.f32.mrf.mxu1 }
 0x321   : > { %v6187_v40 = vpop.f32.mrf.mxu3  ;;  %v7490_v29 = vpack.c.bf16 %v7426_v50, %v7426_v50  ;;  %v176_v50 = vadd.s32 16, %v10574_v26 }
 0x322   : > { %v6346_v2 = vadd.f32 %v6187_v40, %v5980_v47  ;;  %v5514_v47 = vshrl.u32 %v9567_v27, 16 }
 0x323   : > { %v7012_v20 = vpop.f32.mrf.mxu0  ;;  %7554 = vst.msk [vmem:[%s10503_s11 + $0x20] sm:$0xf] %vm1198_vm5, %v7490_v29  ;;  %8110 = vmatmul.msk.bf16.gmra.mxu1 %vm1443_vm2, %v4676_v36  ;;  %8143 = vmatmul.msk.bf16.gmra.mxu2 %vm1443_vm2, %v5512_v42  ;;  %v5123_v29 = vadd.f32 %v4966_v11, %v10028_v57  ;;  %v256_v52 = vand.u32 31, %v176_v50  ;;  %v5519_v36 = vrot.slane %v5517_v13, 4  ;;  %v6723_v57 = vshrl.u32 %v10583_v62, 16 }
 0x324   : > { %v7168_v28 = vadd.f32 %v7009_v39, %v6346_v2  ;;  %v10615_v39 = vld [vmem:[%s9692_s27 + $0x88] sm:$0xff]  ;;  %v5516_v40 = vrot.slane %v5514_v47, 3 }
 0x325   : > { %v6727_v11 = vshll.u32 %v10615_v39, 16  ;;  %vm1072_vm7 = vcmp.le.s32.totalorder %v256_v52, 16  ;;  %v6725_v50 = vor.u32 %v6723_v57, %v6721_v58  ;;  %v9075_v52 = vld [vmem:[%s9692_s27 + $0x80] sm:$0xff]   ;;  %v178_v58 = vadd.s32 32, %v10574_v26 }
 0x326   : > { %8176 = vmatmul.msk.bf16.gmra.mxu3 %vm1443_vm2, %v9074_v5  ;;  %8337 = vmatmul.msk.bf16.gmra.mxu0 %vm1443_vm2, %v6722_v54  ;;  %v7235_v35 = vadd.f32 %v10591_v21, %v7168_v28  ;;  %v5824_v3 = vpop.f32.mrf.mxu2  ;;  %v4679_v5 = vor.u32 %v4677_v53, %v4675_v33  ;;  %v4683_v54 = vrot.slane %v4681_v19, 1  ;;  %v5520_v1 = vor.u32 %v5519_v36, %v5516_v40  ;;  %v10641_v40 = vld [vmem:[%s9692_s27 + $0x90] sm:$0xff] }
 0x327   : > { %v5981_v38 = vadd.f32 %v5824_v3, %v5123_v29  ;;  %v6729_v47 = vrot.slane %v6727_v11, 1 }
 0x328   : > { %v7491_v46 = vpack.c.bf16 %v7235_v35, %v7235_v35  ;;  %v4968_v30 = vpop.f32.mrf.mxu1 }
 0x329   : > { %v6190_v51 = vpop.f32.mrf.mxu3  ;;  %v10637_v30 = vld [vmem:[%s9692_s27 + $0x80] sm:$0xff] }
 0x32a   : > { %7555 = vst.msk [vmem:[%s10503_s11 + $0x24] sm:$0xf] %vm1198_vm5, %v7491_v46  ;;  %v6347_v42 = vadd.f32 %v6190_v51, %v5981_v38  ;;  %v4684_v46 = vsel %vm2546_vm4, %v4679_v5, %v4683_v54  ;;  %v9569_v38 = vld [vmem:[%s9692_s27 + $0x8c] sm:$0xff]   ;;  %v6730_v51 = vsel %vm2546_vm4, %v6725_v50, %v6729_v47  ;;  %v4689_v5 = vshll.u32 %v10637_v30, 16 }
 0x32b   : > { %v7014_v27 = vpop.f32.mrf.mxu0  ;;  %v5526_v53 = vshll.u32 %v9569_v38, 16 }
 0x32c   : > { %v7169_v2 = vadd.f32 %v7012_v20, %v6347_v42  ;;  %v5521_v20 = vsel %vm1751_vm3, %v5511_v12, %v5520_v1  ;;  %v5523_v12 = vshrl.u32 %v9569_v38, 16  ;;  %v270_v27 = vand.u32 31, %v178_v58 }
 0x32d   : > { %v5528_v50 = vrot.slane %v5526_v53, 4 }
 0x32e   : > { %v7236_v28 = vadd.f32 %v10591_v21, %v7169_v2  ;;  %v5826_v13 = vpop.f32.mrf.mxu2  ;;  %v4685_v2 = vshrl.u32 %v10610_v8, 16  ;;  %vm1010_vm8 = vcmp.ge.s32.totalorder %v270_v27, 1 }
 0x330   : > { %v7428_v35 = vsel %vm1072_vm7, %v7236_v28, 0.0  ;;  %v4971_v62 = vpop.f32.mrf.mxu1  ;;  %v5525_v28 = vrot.slane %v5523_v12, 3 }
 0x331   : > { %v6192_v29 = vpop.f32.mrf.mxu3  ;;  %v7492_v3 = vpack.c.bf16 %v7428_v35, %v7428_v35  ;;  %v5125_v19 = vadd.f32 %v4971_v62, %v10042_v14  ;;  %v4687_v62 = vor.u32 %v4685_v2, %v4683_v54  ;;  %v9076_v2 = vld [vmem:[%s9692_s27 + $0x88] sm:$0xff]  }
 0x332   : > { %v6731_v29 = vshrl.u32 %v10615_v39, 16 }
 0x333   : > { %v7017_v33 = vpop.f32.mrf.mxu0  ;;  %7556 = vst.msk [vmem:[%s10503_s11 + $0x28] sm:$0xf] %vm1198_vm5, %v7492_v3  ;;  %8111 = vmatmul.msk.bf16.gmra.mxu1 %vm1443_vm2, %v4684_v46  ;;  %8144 = vmatmul.msk.bf16.gmra.mxu2 %vm1443_vm2, %v5521_v20  ;;  %v6735_v3 = vshll.u32 %v10641_v40, 16  ;;  %v4691_v46 = vrot.slane %v4689_v5, 1  ;;  %v5529_v20 = vor.u32 %v5528_v50, %v5525_v28 }
 0x335   : > { %v5530_v54 = vsel %vm1751_vm3, %v5520_v1, %v5529_v20  ;;  %v10662_v1 = vld [vmem:[%s9692_s27 + $0x88] sm:$0xff] }
 0x336   : > { %8177 = vmatmul.msk.bf16.gmra.mxu3 %vm1443_vm2, %v9075_v52  ;;  %8338 = vmatmul.msk.bf16.gmra.mxu0 %vm1443_vm2, %v6730_v51  ;;  %v5829_v36 = vpop.f32.mrf.mxu2  ;;  %v6733_v52 = vor.u32 %v6731_v29, %v6729_v47  ;;  %v6737_v51 = vrot.slane %v6735_v3, 1 }
 0x337   : > { %v5983_v42 = vadd.f32 %v5829_v36, %v5125_v19  ;;  %v4692_v36 = vsel %vm2546_vm4, %v4687_v62, %v4691_v46 }
 0x338   : > { %v4973_v11 = vpop.f32.mrf.mxu1 }
 0x339   : > { %v6195_v57 = vpop.f32.mrf.mxu3  ;;  %v5126_v8 = vadd.f32 %v4973_v11, %v10053_v0  ;;  %v6738_v0 = vsel %vm2546_vm4, %v6733_v52, %v6737_v51  ;;  %v180_v11 = vadd.s32 48, %v10574_v26  ;;  %v4693_v52 = vshrl.u32 %v10637_v30, 16 }
 0x33a   : > { %v6349_v13 = vadd.f32 %v6195_v57, %v5983_v42  ;;  %v9571_v42 = vld [vmem:[%s9692_s27 + $0x94] sm:$0xff]  }
 0x33b   : > { %v7019_v35 = vpop.f32.mrf.mxu0  ;;  %v5532_v5 = vshrl.u32 %v9571_v42, 16  ;;  %v5535_v28 = vshll.u32 %v9571_v42, 16  ;;  %v284_v62 = vand.u32 31, %v180_v11 }
 0x33c   : > { %v7171_v14 = vadd.f32 %v7017_v33, %v6349_v13 }
 0x33d   : > { %vm1076_vm9 = vcmp.le.s32.totalorder %v284_v62, 16 }
 0x33e   : > { %v7238_v38 = vadd.f32 %v10591_v21, %v7171_v14  ;;  %v5831_v58 = vpop.f32.mrf.mxu2 }
 0x33f   : > { %v5984_v53 = vadd.f32 %v5831_v58, %v5126_v8  ;;  %v4697_v58 = vshll.u32 %v10662_v1, 16 }
 0x340   : > { %v7430_v12 = vsel %vm1010_vm8, %v7238_v38, 0.0  ;;  %v4976_v33 = vpop.f32.mrf.mxu1 }
 0x341   : > { %v6197_v39 = vpop.f32.mrf.mxu3  ;;  %v7494_v19 = vpack.c.bf16 %v7430_v12, %v7430_v12  ;;  %v5127_v13 = vadd.f32 %v4976_v33, %v10059_v60  ;;  %v5534_v12 = vrot.slane %v5532_v5, 3  ;;  %v6739_v60 = vshrl.u32 %v10641_v40, 16 }
 0x342   : > { %v6350_v27 = vadd.f32 %v6197_v39, %v5984_v53  ;;  %v5537_v53 = vrot.slane %v5535_v28, 4  ;;  %v4699_v42 = vrot.slane %v4697_v58, 1 }
 0x343   : > { %v7022_v57 = vpop.f32.mrf.mxu0  ;;  %7558 = vst.msk [vmem:[%s10503_s11 + $0x30] sm:$0xf] %vm1198_vm5, %v7494_v19  ;;  %8112 = vmatmul.msk.bf16.gmra.mxu1 %vm1443_vm2, %v4692_v36  ;;  %8145 = vmatmul.msk.bf16.gmra.mxu2 %vm1443_vm2, %v5530_v54  ;;  %v4695_v54 = vor.u32 %v4693_v52, %v4691_v46 }
 0x344   : > { %v7172_v47 = vadd.f32 %v7019_v35, %v6350_v27  ;;  %v10667_v35 = vld [vmem:[%s9692_s27 + $0x98] sm:$0xff]  ;;  %v5538_v30 = vor.u32 %v5537_v53, %v5534_v12 }
 0x345   : > { %v6743_v33 = vshll.u32 %v10667_v35, 16 }
 0x346   : > { %8178 = vmatmul.msk.bf16.gmra.mxu3 %vm1443_vm2, %v9076_v2  ;;  %8339 = vmatmul.msk.bf16.gmra.mxu0 %vm1443_vm2, %v6738_v0  ;;  %v7239_v50 = vadd.f32 %v10591_v21, %v7172_v47  ;;  %v5834_v29 = vpop.f32.mrf.mxu2  ;;  %v6741_v2 = vor.u32 %v6739_v60, %v6737_v51  ;;  %v182_v51 = vadd.s32 64, %v10574_v26 }
 0x347   : > { %v5985_v14 = vadd.f32 %v5834_v29, %v5127_v13  ;;  %v6745_v0 = vrot.slane %v6743_v33, 1  ;;  %v9573_v13 = vld [vmem:[%s9692_s27 + $0x9c] sm:$0xff]   ;;  %v9077_v29 = vld [vmem:[%s9692_s27 + $0x90] sm:$0xff]  }
 0x348   : > { %v7495_v3 = vpack.c.bf16 %v7239_v50, %v7239_v50  ;;  %v4978_v8 = vpop.f32.mrf.mxu1  ;;  %v4700_v50 = vsel %vm2546_vm4, %v4695_v54, %v4699_v42  ;;  %v5544_v62 = vshll.u32 %v9573_v13, 16  ;;  %v298_v12 = vand.u32 31, %v182_v51 }
 0x349   : > { %v6200_v38 = vpop.f32.mrf.mxu3  ;;  %v10693_v8 = vld [vmem:[%s9692_s27 + $0xa0] sm:$0xff] }
 0x34a   : > { %7559 = vst.msk [vmem:[%s10503_s11 + $0x34] sm:$0xf] %vm1198_vm5, %v7495_v3  ;;  %v6351_v39 = vadd.f32 %v6200_v38, %v5985_v14  ;;  %v6746_v3 = vsel %vm2546_vm4, %v6741_v2, %v6745_v0  ;;  %v10689_v14 = vld [vmem:[%s9692_s27 + $0x90] sm:$0xff]  ;;  %v6747_v2 = vshrl.u32 %v10667_v35, 16  ;;  %vm1014_vm10 = vcmp.ge.s32.totalorder %v298_v12, 1 }
 0x34b   : > { %v7024_v19 = vpop.f32.mrf.mxu0  ;;  %v4705_v60 = vshll.u32 %v10689_v14, 16  ;;  %v184_v12 = vadd.s32 80, %v10574_v26 }
 0x34c   : > { %v7173_v36 = vadd.f32 %v7022_v57, %v6351_v39  ;;  %v5539_v57 = vsel %vm1751_vm3, %v5529_v20, %v5538_v30  ;;  %v5541_v20 = vshrl.u32 %v9573_v13, 16  ;;  %v4701_v19 = vshrl.u32 %v10662_v1, 16 }
 0x34e   : > { %v7240_v27 = vadd.f32 %v10591_v21, %v7173_v36  ;;  %v5836_v47 = vpop.f32.mrf.mxu2  ;;  %v5543_v33 = vrot.slane %v5541_v20, 3  ;;  %v5546_v36 = vrot.slane %v5544_v62, 4  ;;  %v9575_v62 = vld [vmem:[%s9692_s27 + $0xa4] sm:$0xff]  }
 0x34f   : > { %v6751_v47 = vshll.u32 %v10693_v8, 16 }
 0x350   : > { %v7432_v11 = vsel %vm1076_vm9, %v7240_v27, 0.0  ;;  %v4981_v40 = vpop.f32.mrf.mxu1 }
 0x351   : > { %v6202_v5 = vpop.f32.mrf.mxu3  ;;  %v7496_v28 = vpack.c.bf16 %v7432_v11, %v7432_v11  ;;  %v5129_v38 = vadd.f32 %v4981_v40, %v10073_v43  ;;  %v4703_v11 = vor.u32 %v4701_v19, %v4699_v42 }
 0x352   : > { %v4707_v5 = vrot.slane %v4705_v60, 1 }
 0x353   : > { %v7027_v46 = vpop.f32.mrf.mxu0  ;;  %7560 = vst.msk [vmem:[%s10503_s11 + $0x38] sm:$0xf] %vm1198_vm5, %v7496_v28  ;;  %8113 = vmatmul.msk.bf16.gmra.mxu1 %vm1443_vm2, %v4700_v50  ;;  %8146 = vmatmul.msk.bf16.gmra.mxu2 %vm1443_vm2, %v5539_v57  ;;  %v5547_v28 = vor.u32 %v5546_v36, %v5543_v33  ;;  %v6749_v50 = vor.u32 %v6747_v2, %v6745_v0  ;;  %v6753_v57 = vrot.slane %v6751_v47, 1  ;;  %v10719_v33 = vld [vmem:[%s9692_s27 + $0xa8] sm:$0xff]  ;;  %v312_v2 = vand.u32 31, %v184_v12 }
 0x354   : > { %v4708_v20 = vsel %vm2546_vm4, %v4703_v11, %v4707_v5  ;;  %v4709_v11 = vshrl.u32 %v10689_v14, 16 }
 0x355   : > { %v5548_v42 = vsel %vm1751_vm3, %v5538_v30, %v5547_v28  ;;  %v10714_v30 = vld [vmem:[%s9692_s27 + $0x98] sm:$0xff]  ;;  %vm1080_vm11 = vcmp.le.s32.totalorder %v312_v2, 16 }
 0x356   : > { %8179 = vmatmul.msk.bf16.gmra.mxu3 %vm1443_vm2, %v9077_v29  ;;  %8340 = vmatmul.msk.bf16.gmra.mxu0 %vm1443_vm2, %v6746_v3  ;;  %v5839_v52 = vpop.f32.mrf.mxu2 }
 0x357   : > { %v5987_v58 = vadd.f32 %v5839_v52, %v5129_v38 }
 0x358   : > { %v4983_v39 = vpop.f32.mrf.mxu1 }
 0x359   : > { %v6205_v53 = vpop.f32.mrf.mxu3  ;;  %v5130_v1 = vadd.f32 %v4983_v39, %v10084_v34  ;;  %v6754_v34 = vsel %vm2546_vm4, %v6749_v50, %v6753_v57  ;;  %v5553_v39 = vshll.u32 %v9575_v62, 16 }
 0x35a   : > { %v6353_v54 = vadd.f32 %v6205_v53, %v5987_v58  ;;  %v9078_v58 = vld [vmem:[%s9692_s27 + $0x98] sm:$0xff]   ;;  %v5550_v53 = vshrl.u32 %v9575_v62, 16 }
 0x35b   : > { %v7029_v27 = vpop.f32.mrf.mxu0  ;;  %v5555_v50 = vrot.slane %v5553_v39, 4  ;;  %v9079_v39 = vld [vmem:[%s9692_s27 + $0xa0] sm:$0xff]  }
 0x35c   : > { %v7175_v43 = vadd.f32 %v7027_v46, %v6353_v54 }
 0x35e   : > { %v7242_v40 = vadd.f32 %v10591_v21, %v7175_v43  ;;  %v5841_v13 = vpop.f32.mrf.mxu2 }
 0x35f   : > { %v5988_v3 = vadd.f32 %v5841_v13, %v5130_v1  ;;  %v5552_v1 = vrot.slane %v5550_v53, 3  ;;  %v9577_v53 = vld [vmem:[%s9692_s27 + $0xac] sm:$0xff]  }
 0x360   : > { %v7434_v29 = vsel %vm1014_vm10, %v7242_v40, 0.0  ;;  %v4986_v46 = vpop.f32.mrf.mxu1  ;;  %v4713_v40 = vshll.u32 %v10714_v30, 16 }
 0x361   : > { %v6207_v35 = vpop.f32.mrf.mxu3  ;;  %v7498_v51 = vpack.c.bf16 %v7434_v29, %v7434_v29  ;;  %v5131_v60 = vadd.f32 %v4986_v46, %v10090_v17  ;;  %v6755_v17 = vshrl.u32 %v10693_v8, 16  ;;  %v5556_v14 = vor.u32 %v5555_v50, %v5552_v1 }
 0x362   : > { %v6354_v38 = vadd.f32 %v6207_v35, %v5988_v3  ;;  %v6759_v3 = vshll.u32 %v10719_v33, 16  ;;  %v4715_v46 = vrot.slane %v4713_v40, 1  ;;  %v4717_v1 = vshrl.u32 %v10714_v30, 16 }
 0x363   : > { %v7032_v52 = vpop.f32.mrf.mxu0  ;;  %7562 = vst.msk [vmem:[%s10503_s11 + $0x40] sm:$0xf] %vm1198_vm5, %v7498_v51  ;;  %8114 = vmatmul.msk.bf16.gmra.mxu1 %vm1443_vm2, %v4708_v20  ;;  %8147 = vmatmul.msk.bf16.gmra.mxu2 %vm1443_vm2, %v5548_v42  ;;  %v4711_v51 = vor.u32 %v4709_v11, %v4707_v5  ;;  %v6757_v42 = vor.u32 %v6755_v17, %v6753_v57  ;;  %v186_v57 = vadd.s32 96, %v10574_v26 }
 0x364   : > { %v7176_v0 = vadd.f32 %v7029_v27, %v6354_v38  ;;  %v6761_v62 = vrot.slane %v6759_v3, 1 }
 0x365   : > { %v4716_v12 = vsel %vm2546_vm4, %v4711_v51, %v4715_v46 }
 0x366   : > { %8180 = vmatmul.msk.bf16.gmra.mxu3 %vm1443_vm2, %v9078_v58  ;;  %8341 = vmatmul.msk.bf16.gmra.mxu0 %vm1443_vm2, %v6754_v34  ;;  %v7243_v19 = vadd.f32 %v10591_v21, %v7176_v0  ;;  %v5844_v36 = vpop.f32.mrf.mxu2 }
 0x367   : > { %v5989_v27 = vadd.f32 %v5844_v36, %v5131_v60  ;;  %v10741_v60 = vld [vmem:[%s9692_s27 + $0xa0] sm:$0xff]  ;;  %v5562_v36 = vshll.u32 %v9577_v53, 16 }
 0x368   : > { %v7499_v54 = vpack.c.bf16 %v7243_v19, %v7243_v19  ;;  %v4988_v43 = vpop.f32.mrf.mxu1  ;;  %v6762_v19 = vsel %vm2546_vm4, %v6757_v42, %v6761_v62  ;;  %v4721_v50 = vshll.u32 %v10741_v60, 16 }
 0x369   : > { %v6210_v47 = vpop.f32.mrf.mxu3  ;;  %v326_v43 = vand.u32 31, %v186_v57 }
 0x36a   : > { %7563 = vst.msk [vmem:[%s10503_s11 + $0x44] sm:$0xf] %vm1198_vm5, %v7499_v54  ;;  %v6355_v13 = vadd.f32 %v6210_v47, %v5989_v27  ;;  %v10745_v27 = vld [vmem:[%s9692_s27 + $0xb0] sm:$0xff]  ;;  %v4723_v42 = vrot.slane %v4721_v50, 1 }
 0x36b   : > { %v7034_v29 = vpop.f32.mrf.mxu0  ;;  %v6767_v51 = vshll.u32 %v10745_v27, 16  ;;  %vm1018_vm12 = vcmp.ge.s32.totalorder %v326_v43, 1 }
 0x36c   : > { %v7177_v35 = vadd.f32 %v7032_v52, %v6355_v13  ;;  %v5557_v52 = vsel %vm1751_vm3, %v5547_v28, %v5556_v14  ;;  %v5559_v28 = vshrl.u32 %v9577_v53, 16  ;;  %v5564_v29 = vrot.slane %v5562_v36, 4  ;;  %v9080_v36 = vld [vmem:[%s9692_s27 + $0xa8] sm:$0xff]  }
 0x36e   : > { %v7244_v20 = vadd.f32 %v10591_v21, %v7177_v35  ;;  %v5846_v38 = vpop.f32.mrf.mxu2  ;;  %v5561_v13 = vrot.slane %v5559_v28, 3  ;;  %v6763_v35 = vshrl.u32 %v10719_v33, 16 }
 0x370   : > { %v7436_v58 = vsel %vm1080_vm11, %v7244_v20, 0.0  ;;  %v4991_v8 = vpop.f32.mrf.mxu1  ;;  %v4719_v20 = vor.u32 %v4717_v1, %v4715_v46  ;;  %v5565_v38 = vor.u32 %v5564_v29, %v5561_v13 }
 0x371   : > { %v6212_v34 = vpop.f32.mrf.mxu3  ;;  %v7500_v0 = vpack.c.bf16 %v7436_v58, %v7436_v58  ;;  %v5133_v54 = vadd.f32 %v4991_v8, %v10104_v25 }
 0x372   : > { %v6765_v34 = vor.u32 %v6763_v35, %v6761_v62  ;;  %v5566_v46 = vsel %vm1751_vm3, %v5556_v14, %v5565_v38  ;;  %v10766_v14 = vld [vmem:[%s9692_s27 + $0xa8] sm:$0xff]  ;;  %v4725_v35 = vshrl.u32 %v10741_v60, 16 }
 0x373   : > { %v7037_v5 = vpop.f32.mrf.mxu0  ;;  %7564 = vst.msk [vmem:[%s10503_s11 + $0x48] sm:$0xf] %vm1198_vm5, %v7500_v0  ;;  %8115 = vmatmul.msk.bf16.gmra.mxu1 %vm1443_vm2, %v4716_v12  ;;  %8148 = vmatmul.msk.bf16.gmra.mxu2 %vm1443_vm2, %v5557_v52  ;;  %v6769_v0 = vrot.slane %v6767_v51, 1  ;;  %v4729_v51 = vshll.u32 %v10766_v14, 16 }
 0x376   : > { %8181 = vmatmul.msk.bf16.gmra.mxu3 %vm1443_vm2, %v9079_v39  ;;  %8342 = vmatmul.msk.bf16.gmra.mxu0 %vm1443_vm2, %v6762_v19  ;;  %v5849_v2 = vpop.f32.mrf.mxu2  ;;  %v4724_v39 = vsel %vm2546_vm4, %v4719_v20, %v4723_v42  ;;  %v9579_v19 = vld [vmem:[%s9692_s27 + $0xb4] sm:$0xff]  }
 0x377   : > { %v5991_v47 = vadd.f32 %v5849_v2, %v5133_v54  ;;  %v188_v54 = vadd.s32 112, %v10574_v26  ;;  %v5568_v2 = vshrl.u32 %v9579_v19, 16 }
 0x378   : > { %v4993_v40 = vpop.f32.mrf.mxu1 }
 0x379   : > { %v6215_v11 = vpop.f32.mrf.mxu3  ;;  %v5134_v30 = vadd.f32 %v4993_v40, %v10115_v4  ;;  %v6770_v4 = vsel %vm2546_vm4, %v6765_v34, %v6769_v0  ;;  %v10771_v40 = vld [vmem:[%s9692_s27 + $0xb8] sm:$0xff]  ;;  %v340_v29 = vand.u32 31, %v188_v54 }
 0x37a   : > { %v6357_v17 = vadd.f32 %v6215_v11, %v5991_v47  ;;  %v5571_v47 = vshll.u32 %v9579_v19, 16  ;;  %v6775_v34 = vshll.u32 %v10771_v40, 16 }
 0x37b   : > { %v7039_v3 = vpop.f32.mrf.mxu0  ;;  %vm1084_vm13 = vcmp.le.s32.totalorder %v340_v29, 16 }
 0x37c   : > { %v7179_v25 = vadd.f32 %v7037_v5, %v6357_v17  ;;  %v5573_v20 = vrot.slane %v5571_v47, 4 }
 0x37e   : > { %v7246_v58 = vadd.f32 %v10591_v21, %v7179_v25  ;;  %v5851_v8 = vpop.f32.mrf.mxu2  ;;  %v5570_v25 = vrot.slane %v5568_v2, 3  ;;  %v10793_v2 = vld [vmem:[%s9692_s27 + $0xb0] sm:$0xff] }
 0x37f   : > { %v5992_v52 = vadd.f32 %v5851_v8, %v5134_v30 }
 0x380   : > { %v7438_v12 = vsel %vm1018_vm12, %v7246_v58, 0.0  ;;  %v4996_v5 = vpop.f32.mrf.mxu1  ;;  %v5574_v60 = vor.u32 %v5573_v20, %v5570_v25 }
 0x381   : > { %v6217_v33 = vpop.f32.mrf.mxu3  ;;  %v7502_v53 = vpack.c.bf16 %v7438_v12, %v7438_v12  ;;  %v5135_v11 = vadd.f32 %v4996_v5, %v10121_v24  ;;  %v6771_v24 = vshrl.u32 %v10745_v27, 16  ;;  %v4727_v12 = vor.u32 %v4725_v35, %v4723_v42 }
 0x382   : > { %v6358_v57 = vadd.f32 %v6217_v33, %v5992_v52  ;;  %v4731_v52 = vrot.slane %v4729_v51, 1  ;;  %v6777_v5 = vrot.slane %v6775_v34, 1  ;;  %v4737_v35 = vshll.u32 %v10793_v2, 16 }
 0x383   : > { %v7042_v28 = vpop.f32.mrf.mxu0  ;;  %7566 = vst.msk [vmem:[%s10503_s11 + $0x50] sm:$0xf] %vm1198_vm5, %v7502_v53  ;;  %8116 = vmatmul.msk.bf16.gmra.mxu1 %vm1443_vm2, %v4724_v39  ;;  %8149 = vmatmul.msk.bf16.gmra.mxu2 %vm1443_vm2, %v5566_v46  ;;  %v6773_v53 = vor.u32 %v6771_v24, %v6769_v0  ;;  %v190_v0 = vadd.s32 128, %v10574_v26 }
 0x384   : > { %v7180_v62 = vadd.f32 %v7039_v3, %v6358_v57 }
 0x385   : > { %v6778_v54 = vsel %vm2546_vm4, %v6773_v53, %v6777_v5 }
 0x386   : > { %8182 = vmatmul.msk.bf16.gmra.mxu3 %vm1443_vm2, %v9080_v36  ;;  %8343 = vmatmul.msk.bf16.gmra.mxu0 %vm1443_vm2, %v6770_v4  ;;  %v7247_v43 = vadd.f32 %v10591_v21, %v7180_v62  ;;  %v5854_v1 = vpop.f32.mrf.mxu2  ;;  %v4732_v36 = vsel %vm2546_vm4, %v4727_v12, %v4731_v52  ;;  %v9581_v4 = vld [vmem:[%s9692_s27 + $0xbc] sm:$0xff]   ;;  %v9081_v62 = vld [vmem:[%s9692_s27 + $0xb0] sm:$0xff]  }
 0x387   : > { %v5993_v13 = vadd.f32 %v5854_v1, %v5135_v11  ;;  %v5580_v47 = vshll.u32 %v9581_v4, 16  ;;  %v10797_v11 = vld [vmem:[%s9692_s27 + $0xc0] sm:$0xff] }
 0x388   : > { %v7503_v50 = vpack.c.bf16 %v7247_v43, %v7247_v43  ;;  %v4998_v3 = vpop.f32.mrf.mxu1  ;;  %v6783_v24 = vshll.u32 %v10797_v11, 16 }
 0x389   : > { %v6220_v17 = vpop.f32.mrf.mxu3  ;;  %v4733_v3 = vshrl.u32 %v10766_v14, 16  ;;  %v5582_v25 = vrot.slane %v5580_v47, 4 }
 0x38a   : > { %7567 = vst.msk [vmem:[%s10503_s11 + $0x54] sm:$0xf] %vm1198_vm5, %v7503_v50  ;;  %v6359_v58 = vadd.f32 %v6220_v17, %v5993_v13  ;;  %v354_v13 = vand.u32 31, %v190_v0  ;;  %v192_v0 = vadd.s32 144, %v10574_v26 }
 0x38b   : > { %v7044_v30 = vpop.f32.mrf.mxu0  ;;  %v4735_v34 = vor.u32 %v4733_v3, %v4731_v52 }
 0x38c   : > { %v7181_v8 = vadd.f32 %v7042_v28, %v6359_v58  ;;  %v5575_v28 = vsel %vm1751_vm3, %v5565_v38, %v5574_v60  ;;  %v5577_v38 = vshrl.u32 %v9581_v4, 16  ;;  %v6779_v30 = vshrl.u32 %v10771_v40, 16  ;;  %v9583_v4 = vld [vmem:[%s9692_s27 + $0xc4] sm:$0xff]  }
 0x38d   : > { %vm1022_vm14 = vcmp.ge.s32.totalorder %v354_v13, 1  ;;  %v5589_v47 = vshll.u32 %v9583_v4, 16  ;;  %v368_v3 = vand.u32 31, %v192_v0 }
 0x38e   : > { %v7248_v33 = vadd.f32 %v10591_v21, %v7181_v8  ;;  %v5856_v39 = vpop.f32.mrf.mxu2  ;;  %v5579_v51 = vrot.slane %v5577_v38, 3  ;;  %v4739_v8 = vrot.slane %v4737_v35, 1  ;;  %v6781_v53 = vor.u32 %v6779_v30, %v6777_v5 }
 0x38f   : > { %v6785_v39 = vrot.slane %v6783_v24, 1  ;;  %v5586_v38 = vshrl.u32 %v9583_v4, 16  ;;  %v5591_v30 = vrot.slane %v5589_v47, 4  ;;  %vm1088_vm15 = vcmp.le.s32.totalorder %v368_v3, 16 }
 0x390   : > { %v7440_v46 = vsel %vm1084_vm13, %v7248_v33, 0.0  ;;  %v5001_v27 = vpop.f32.mrf.mxu1  ;;  %v5583_v12 = vor.u32 %v5582_v25, %v5579_v51  ;;  %v4741_v25 = vshrl.u32 %v10793_v2, 16 }
 0x391   : > { %v6222_v19 = vpop.f32.mrf.mxu3  ;;  %v7504_v57 = vpack.c.bf16 %v7440_v46, %v7440_v46  ;;  %v5137_v43 = vadd.f32 %v5001_v27, %v10135_v48 }
 0x392   : > { %v5584_v52 = vsel %vm1751_vm3, %v5574_v60, %v5583_v12  ;;  %v10818_v60 = vld [vmem:[%s9692_s27 + $0xb8] sm:$0xff] }
 0x393   : > { %v7047_v42 = vpop.f32.mrf.mxu0  ;;  %7568 = vst.msk [vmem:[%s10503_s11 + $0x58] sm:$0xf] %vm1198_vm5, %v7504_v57  ;;  %8117 = vmatmul.msk.bf16.gmra.mxu1 %vm1443_vm2, %v4732_v36  ;;  %8150 = vmatmul.msk.bf16.gmra.mxu2 %vm1443_vm2, %v5575_v28  ;;  %v4740_v28 = vsel %vm2546_vm4, %v4735_v34, %v4739_v8 }
 0x396   : > { %8183 = vmatmul.msk.bf16.gmra.mxu3 %vm1443_vm2, %v9081_v62  ;;  %8344 = vmatmul.msk.bf16.gmra.mxu0 %vm1443_vm2, %v6778_v54  ;;  %v5859_v1 = vpop.f32.mrf.mxu2  ;;  %v9082_v54 = vld [vmem:[%s9692_s27 + $0xb8] sm:$0xff]  }
 0x397   : > { %v5995_v50 = vadd.f32 %v5859_v1, %v5137_v43 }
 0x398   : > { %v5003_v17 = vpop.f32.mrf.mxu1 }
 0x399   : > { %v6225_v29 = vpop.f32.mrf.mxu3  ;;  %v5138_v14 = vadd.f32 %v5003_v17, %v10146_v49  ;;  %v6786_v49 = vsel %vm2546_vm4, %v6781_v53, %v6785_v39 }
 0x39a   : > { %v6361_v20 = vadd.f32 %v6225_v29, %v5995_v50  ;;  %v10823_v50 = vld [vmem:[%s9692_s27 + $0xc8] sm:$0xff] }
 0x39b   : > { %v7049_v58 = vpop.f32.mrf.mxu0  ;;  %v6791_v34 = vshll.u32 %v10823_v50, 16 }
 0x39c   : > { %v7183_v48 = vadd.f32 %v7047_v42, %v6361_v20  ;;  %v4745_v20 = vshll.u32 %v10818_v60, 16 }
 0x39e   : > { %v7250_v33 = vadd.f32 %v10591_v21, %v7183_v48  ;;  %v5861_v46 = vpop.f32.mrf.mxu2  ;;  %v4747_v53 = vrot.slane %v4745_v20, 1 }
 0x39f   : > { %v5996_v57 = vadd.f32 %v5861_v46, %v5138_v14  ;;  %v4743_v14 = vor.u32 %v4741_v25, %v4739_v8 }
 0x3a0   : > { %v7442_v19 = vsel %vm1022_vm14, %v7250_v33, 0.0  ;;  %v5006_v36 = vpop.f32.mrf.mxu1 }
 0x3a1   : > { %v6227_v40 = vpop.f32.mrf.mxu3  ;;  %v7506_v27 = vpack.c.bf16 %v7442_v19, %v7442_v19  ;;  %v5139_v1 = vadd.f32 %v5006_v36, %v10152_v16  ;;  %v6787_v16 = vshrl.u32 %v10797_v11, 16 }
 0x3a2   : > { %v6362_v42 = vadd.f32 %v6227_v40, %v5996_v57  ;;  %v6793_v57 = vrot.slane %v6791_v34, 1 }
 0x3a3   : > { %v7052_v62 = vpop.f32.mrf.mxu0  ;;  %7570 = vst.msk [vmem:[%s10503_s11 + $0x60] sm:$0xf] %vm1198_vm5, %v7506_v27  ;;  %8118 = vmatmul.msk.bf16.gmra.mxu1 %vm1443_vm2, %v4740_v28  ;;  %8151 = vmatmul.msk.bf16.gmra.mxu2 %vm1443_vm2, %v5584_v52  ;;  %v6789_v19 = vor.u32 %v6787_v16, %v6785_v39  ;;  %v4748_v52 = vsel %vm2546_vm4, %v4743_v14, %v4747_v53  ;;  %v194_v39 = vadd.s32 160, %v10574_v26 }
 0x3a4   : > { %v7184_v5 = vadd.f32 %v7049_v58, %v6362_v42  ;;  %v5588_v58 = vrot.slane %v5586_v38, 3  ;;  %v9585_v42 = vld [vmem:[%s9692_s27 + $0xcc] sm:$0xff]  }
 0x3a5   : > { %v10849_v38 = vld [vmem:[%s9692_s27 + $0xd0] sm:$0xff] }
 0x3a6   : > { %8184 = vmatmul.msk.bf16.gmra.mxu3 %vm1443_vm2, %v9082_v54  ;;  %8345 = vmatmul.msk.bf16.gmra.mxu0 %vm1443_vm2, %v6786_v49  ;;  %v7251_v43 = vadd.f32 %v10591_v21, %v7184_v5  ;;  %v5864_v13 = vpop.f32.mrf.mxu2  ;;  %v5592_v2 = vor.u32 %v5591_v30, %v5588_v58  ;;  %v6794_v54 = vsel %vm2546_vm4, %v6789_v19, %v6793_v57  ;;  %v10845_v49 = vld [vmem:[%s9692_s27 + $0xc0] sm:$0xff]  ;;  %v5598_v5 = vshll.u32 %v9585_v42, 16 }
 0x3a7   : > { %v5997_v17 = vadd.f32 %v5864_v13, %v5139_v1  ;;  %v382_v1 = vand.u32 31, %v194_v39  ;;  %v4753_v3 = vshll.u32 %v10845_v49, 16  ;;  %v6795_v58 = vshrl.u32 %v10823_v50, 16 }
 0x3a8   : > { %v7507_v29 = vpack.c.bf16 %v7251_v43, %v7251_v43  ;;  %v5008_v51 = vpop.f32.mrf.mxu1  ;;  %v5593_v4 = vsel %vm1751_vm3, %v5583_v12, %v5592_v2  ;;  %v5595_v12 = vshrl.u32 %v9585_v42, 16  ;;  %v6799_v30 = vshll.u32 %v10849_v38, 16  ;;  %v9084_v42 = vld [vmem:[%s9692_s27 + $0xc8] sm:$0xff]  }
 0x3a9   : > { %v6230_v35 = vpop.f32.mrf.mxu3  ;;  %v5600_v51 = vrot.slane %v5598_v5, 4  ;;  %vm1026_vm0 = vcmp.ge.s32.totalorder %v382_v1, 1  ;;  %v10875_v5 = vld [vmem:[%s9692_s27 + $0xd8] sm:$0xff] }
 0x3aa   : > { %7571 = vst.msk [vmem:[%s10503_s11 + $0x64] sm:$0xf] %vm1198_vm5, %v7507_v29  ;;  %v6363_v24 = vadd.f32 %v6230_v35, %v5997_v17  ;;  %v4749_v17 = vshrl.u32 %v10818_v60, 16  ;;  %v5597_v35 = vrot.slane %v5595_v12, 3  ;;  %v6801_v14 = vrot.slane %v6799_v30, 1 }
 0x3ab   : > { %v7054_v48 = vpop.f32.mrf.mxu0 }
 0x3ac   : > { %v7185_v33 = vadd.f32 %v7052_v62, %v6363_v24  ;;  %v9083_v62 = vld [vmem:[%s9692_s27 + $0xc0] sm:$0xff]   ;;  %v4751_v24 = vor.u32 %v4749_v17, %v4747_v53  ;;  %v4755_v48 = vrot.slane %v4753_v3, 1  ;;  %v5601_v16 = vor.u32 %v5600_v51, %v5597_v35 }
 0x3ad   : > { %v4757_v17 = vshrl.u32 %v10845_v49, 16  ;;  %v10886_v49 = vld [vmem:[%s11291_s2] ss:$0 sm:$0xff] }
 0x3ae   : > { %v7252_v46 = vadd.f32 %v10591_v21, %v7185_v33  ;;  %v5866_v40 = vpop.f32.mrf.mxu2  ;;  %v6797_v33 = vor.u32 %v6795_v58, %v6793_v57  ;;  %v5602_v53 = vsel %vm1751_vm3, %v5592_v2, %v5601_v16  ;;  %v10870_v2 = vld [vmem:[%s9692_s27 + $0xc8] sm:$0xff] }
 0x3af   : > { %v4761_v3 = vshll.u32 %v10870_v2, 16  ;;  %v4759_v30 = vor.u32 %v4757_v17, %v4755_v48 }
 0x3b0   : > { %v7444_v27 = vsel %vm1088_vm15, %v7252_v46, 0.0  ;;  %v5011_v11 = vpop.f32.mrf.mxu1 }
 0x3b1   : > { %v6232_v36 = vpop.f32.mrf.mxu3  ;;  %v7508_v28 = vpack.c.bf16 %v7444_v27, %v7444_v27  ;;  %v5141_v0 = vadd.f32 %v5011_v11, %v10166_v18  ;;  %v9587_v11 = vld [vmem:[%s9692_s27 + $0xd4] sm:$0xff]  }
 0x3b3   : > { %v7057_v8 = vpop.f32.mrf.mxu0  ;;  %7572 = vst.msk [vmem:[%s10503_s11 + $0x68] sm:$0xf] %vm1198_vm5, %v7508_v28  ;;  %8119 = vmatmul.msk.bf16.gmra.mxu1 %vm1443_vm2, %v4748_v52  ;;  %8152 = vmatmul.msk.bf16.gmra.mxu2 %vm1443_vm2, %v5593_v4  ;;  %v4756_v28 = vsel %vm2546_vm4, %v4751_v24, %v4755_v48 }
 0x3b6   : > { %8185 = vmatmul.msk.bf16.gmra.mxu3 %vm1443_vm2, %v9083_v62  ;;  %8346 = vmatmul.msk.bf16.gmra.mxu0 %vm1443_vm2, %v6794_v54  ;;  %v5869_v47 = vpop.f32.mrf.mxu2  ;;  %v5604_v62 = vshrl.u32 %v9587_v11, 16  ;;  %v5607_v54 = vshll.u32 %v9587_v11, 16 }
 0x3b7   : > { %v5999_v43 = vadd.f32 %v5869_v47, %v5141_v0 }
 0x3b8   : > { %v5013_v29 = vpop.f32.mrf.mxu1  ;;  %v5606_v35 = vrot.slane %v5604_v62, 3  ;;  %v5609_v51 = vrot.slane %v5607_v54, 4 }
 0x3b9   : > { %v6235_v13 = vpop.f32.mrf.mxu3  ;;  %v5142_v60 = vadd.f32 %v5013_v29, %v10177_v55  ;;  %v6802_v55 = vsel %vm2546_vm4, %v6797_v33, %v6801_v14 }
 0x3ba   : > { %v6365_v25 = vadd.f32 %v6235_v13, %v5999_v43  ;;  %v5610_v24 = vor.u32 %v5609_v51, %v5606_v35 }
 0x3bb   : > { %v7059_v20 = vpop.f32.mrf.mxu0 }
 0x3bc   : > { %v7187_v18 = vadd.f32 %v7057_v8, %v6365_v25  ;;  %v196_v8 = vadd.s32 176, %v10574_v26 }
 0x3be   : > { %v7254_v34 = vadd.f32 %v10591_v21, %v7187_v18  ;;  %v5871_v46 = vpop.f32.mrf.mxu2  ;;  %v396_v1 = vand.u32 31, %v196_v8  ;;  %v4763_v18 = vrot.slane %v4761_v3, 1 }
 0x3bf   : > { %v6000_v40 = vadd.f32 %v5871_v46, %v5142_v60 }
 0x3c0   : > { %v7446_v19 = vsel %vm1026_vm0, %v7254_v34, 0.0  ;;  %v5016_v36 = vpop.f32.mrf.mxu1  ;;  %vm1092_vm1 = vcmp.le.s32.totalorder %v396_v1, 16  ;;  %v4764_v48 = vsel %vm2546_vm4, %v4759_v30, %v4763_v18 }
 0x3c1   : > { %v6237_v50 = vpop.f32.mrf.mxu3  ;;  %v7510_v27 = vpack.c.bf16 %v7446_v19, %v7446_v19  ;;  %v5143_v12 = vadd.f32 %v5016_v36, %v10183_v32  ;;  %v6803_v32 = vshrl.u32 %v10849_v38, 16  ;;  %v9589_v36 = vld [vmem:[%s9692_s27 + $0xdc] sm:$0xff]  }
 0x3c2   : > { %v6366_v52 = vadd.f32 %v6237_v50, %v6000_v40 }
 0x3c3   : > { %v7062_v4 = vpop.f32.mrf.mxu0  ;;  %7574 = vst.msk [vmem:[%s10503_s11 + $0x70] sm:$0xf] %vm1198_vm5, %v7510_v27  ;;  %8120 = vmatmul.msk.bf16.gmra.mxu1 %vm1443_vm2, %v4756_v28  ;;  %8153 = vmatmul.msk.bf16.gmra.mxu2 %vm1443_vm2, %v5602_v53  ;;  %v6805_v60 = vor.u32 %v6803_v32, %v6801_v14  ;;  %v5611_v27 = vsel %vm1751_vm3, %v5601_v16, %v5610_v24  ;;  %v9085_v53 = vld [vmem:[%s9692_s27 + $0xd0] sm:$0xff]   ;;  %v198_v14 = vadd.s32 192, %v10574_v26  ;;  %v5613_v16 = vshrl.u32 %v9589_v36, 16 }
 0x3c4   : > { %v7188_v57 = vadd.f32 %v7059_v20, %v6366_v52  ;;  %v6807_v20 = vshll.u32 %v10875_v5, 16  ;;  %v10902_v52 = vld [vmem:[%s9692_s27 + $0xd0] sm:$0xff] }
 0x3c5   : > { %v410_v62 = vand.u32 31, %v198_v14 }
 0x3c6   : > { %8186 = vmatmul.msk.bf16.gmra.mxu3 %vm1443_vm2, %v9084_v42  ;;  %8347 = vmatmul.msk.bf16.gmra.mxu0 %vm1443_vm2, %v6802_v55  ;;  %v7255_v39 = vadd.f32 %v10591_v21, %v7188_v57  ;;  %v5874_v0 = vpop.f32.mrf.mxu2  ;;  %v6809_v33 = vrot.slane %v6807_v20, 1  ;;  %v10906_v55 = vld [vmem:[%s9692_s27 + $0xe0] sm:$0xff] }
 0x3c7   : > { %v6001_v43 = vadd.f32 %v5874_v0, %v5143_v12  ;;  %v4765_v12 = vshrl.u32 %v10870_v2, 16  ;;  %v4769_v0 = vshll.u32 %v10902_v52, 16  ;;  %v6815_v17 = vshll.u32 %v10906_v55, 16 }
 0x3c8   : > { %v7511_v47 = vpack.c.bf16 %v7255_v39, %v7255_v39  ;;  %v5018_v29 = vpop.f32.mrf.mxu1  ;;  %v6810_v11 = vsel %vm2546_vm4, %v6805_v60, %v6809_v33  ;;  %vm1030_vm6 = vcmp.ge.s32.totalorder %v410_v62, 1  ;;  %v4773_v62 = vshrl.u32 %v10902_v52, 16 }
 0x3c9   : > { %v6240_v13 = vpop.f32.mrf.mxu3  ;;  %v6811_v29 = vshrl.u32 %v10875_v5, 16  ;;  %v4767_v3 = vor.u32 %v4765_v12, %v4763_v18  ;;  %v4771_v35 = vrot.slane %v4769_v0, 1  ;;  %v6817_v32 = vrot.slane %v6815_v17, 1 }
 0x3ca   : > { %7575 = vst.msk [vmem:[%s10503_s11 + $0x74] sm:$0xf] %vm1198_vm5, %v7511_v47  ;;  %v6367_v25 = vadd.f32 %v6240_v13, %v6001_v43  ;;  %v5615_v47 = vrot.slane %v5613_v16, 3 }
 0x3cb   : > { %v7064_v21 = vpop.f32.mrf.mxu0 }
 0x3cc   : > { %v7189_v58 = vadd.f32 %v7062_v4, %v6367_v25  ;;  %v5616_v4 = vshll.u32 %v9589_v36, 16  ;;  %v6813_v21 = vor.u32 %v6811_v29, %v6809_v33 }
 0x3ce   : > { %v7256_v34 = vadd.f32 %v10886_v49, %v7189_v58  ;;  %v5876_v38 = vpop.f32.mrf.mxu2  ;;  %v5618_v43 = vrot.slane %v5616_v4, 4 }
 0x3cf   : > { %v4772_v38 = vsel %vm2546_vm4, %v4767_v3, %v4771_v35 }
 0x3d0   : > { %v7448_v46 = vsel %vm1092_vm1, %v7256_v34, 0.0  ;;  %v5021_v50 = vpop.f32.mrf.mxu1  ;;  %v5619_v51 = vor.u32 %v5618_v43, %v5615_v47 }
 0x3d1   : > { %v6242_v19 = vpop.f32.mrf.mxu3  ;;  %v7512_v40 = vpack.c.bf16 %v7448_v46, %v7448_v46  ;;  %v5145_v42 = vadd.f32 %v5021_v50, %v10197_v59  ;;  %v9591_v46 = vld [vmem:[%s9692_s27 + $0xe4] sm:$0xff]   ;;  %v9086_v50 = vld [vmem:[%s9692_s27 + $0xd8] sm:$0xff]  }
 0x3d2   : > { %v5620_v18 = vsel %vm1751_vm3, %v5610_v24, %v5619_v51  ;;  %v10927_v24 = vld [vmem:[%s9692_s27 + $0xd8] sm:$0xff]  ;;  %v5625_v36 = vshll.u32 %v9591_v46, 16 }
 0x3d3   : > { %v7067_v28 = vpop.f32.mrf.mxu0  ;;  %7576 = vst.msk [vmem:[%s10503_s11 + $0x78] sm:$0xf] %vm1198_vm5, %v7512_v40  ;;  %8121 = vmatmul.msk.bf16.gmra.mxu1 %vm1443_vm2, %v4764_v48  ;;  %8154 = vmatmul.msk.bf16.gmra.mxu2 %vm1443_vm2, %v5611_v27  ;;  %v200_v48 = vadd.s32 208, %v10574_v26  ;;  %v5622_v27 = vshrl.u32 %v9591_v46, 16 }
 0x3d4   : > { %v5627_v12 = vrot.slane %v5625_v36, 4 }
 0x3d6   : > { %8187 = vmatmul.msk.bf16.gmra.mxu3 %vm1443_vm2, %v9085_v53  ;;  %8348 = vmatmul.msk.bf16.gmra.mxu0 %vm1443_vm2, %v6810_v11  ;;  %v5879_v57 = vpop.f32.mrf.mxu2  ;;  %v10932_v11 = vld [vmem:[%s9692_s27 + $0xe8] sm:$0xff] }
 0x3d7   : > { %v6003_v8 = vadd.f32 %v5879_v57, %v5145_v42  ;;  %v424_v42 = vand.u32 31, %v200_v48  ;;  %v6823_v43 = vshll.u32 %v10932_v11, 16 }
 0x3d8   : > { %v5023_v39 = vpop.f32.mrf.mxu1 }
 0x3d9   : > { %v6245_v54 = vpop.f32.mrf.mxu3  ;;  %v5146_v2 = vadd.f32 %v5023_v39, %v10208_v6  ;;  %v6818_v6 = vsel %vm2546_vm4, %v6813_v21, %v6817_v32  ;;  %v5624_v39 = vrot.slane %v5622_v27, 3  ;;  %vm1096_vm7 = vcmp.le.s32.totalorder %v424_v42, 16 }
 0x3da   : > { %v6369_v1 = vadd.f32 %v6245_v54, %v6003_v8  ;;  %v4777_v54 = vshll.u32 %v10927_v24, 16  ;;  %v6825_v3 = vrot.slane %v6823_v43, 1  ;;  %v4781_v27 = vshrl.u32 %v10927_v24, 16 }
 0x3db   : > { %v7069_v13 = vpop.f32.mrf.mxu0  ;;  %v5628_v52 = vor.u32 %v5627_v12, %v5624_v39 }
 0x3dc   : > { %v7191_v59 = vadd.f32 %v7067_v28, %v6369_v1  ;;  %v4779_v29 = vrot.slane %v4777_v54, 1 }
 0x3de   : > { %v7258_v25 = vadd.f32 %v10886_v49, %v7191_v59  ;;  %v5881_v20 = vpop.f32.mrf.mxu2 }
 0x3df   : > { %v6004_v30 = vadd.f32 %v5881_v20, %v5146_v2 }
 0x3e0   : > { %v7450_v58 = vsel %vm1030_vm6, %v7258_v25, 0.0  ;;  %v5026_v60 = vpop.f32.mrf.mxu1 }
 0x3e1   : > { %v6247_v5 = vpop.f32.mrf.mxu3  ;;  %v7514_v34 = vpack.c.bf16 %v7450_v58, %v7450_v58  ;;  %v5147_v53 = vadd.f32 %v5026_v60, %v10214_v31  ;;  %v6819_v31 = vshrl.u32 %v10906_v55, 16 }
 0x3e2   : > { %v6370_v19 = vadd.f32 %v6247_v5, %v6004_v30  ;;  %v5629_v30 = vsel %vm1751_vm3, %v5619_v51, %v5628_v52  ;;  %v9593_v5 = vld [vmem:[%s9692_s27 + $0xec] sm:$0xff]  }
 0x3e3   : > { %v7072_v40 = vpop.f32.mrf.mxu0  ;;  %7578 = vst.msk [vmem:[%s10503_s11 + $0x80] sm:$0xf] %vm1198_vm5, %v7514_v34  ;;  %8122 = vmatmul.msk.bf16.gmra.mxu1 %vm1443_vm2, %v4772_v38  ;;  %8155 = vmatmul.msk.bf16.gmra.mxu2 %vm1443_vm2, %v5620_v18  ;;  %v6821_v59 = vor.u32 %v6819_v31, %v6817_v32  ;;  %v9087_v34 = vld [vmem:[%s9692_s27 + $0xe0] sm:$0xff]   ;;  %v202_v32 = vadd.s32 224, %v10574_v26  ;;  %v5631_v51 = vshrl.u32 %v9593_v5, 16  ;;  %v5634_v18 = vshll.u32 %v9593_v5, 16 }
 0x3e4   : > { %v7192_v33 = vadd.f32 %v7069_v13, %v6370_v19  ;;  %v4775_v13 = vor.u32 %v4773_v62, %v4771_v35  ;;  %v10954_v38 = vld [vmem:[%s9692_s27 + $0xe0] sm:$0xff]  ;;  %v10958_v19 = vld [vmem:[%s9692_s27 + $0xf0] sm:$0xff]  ;;  %v10984_v5 = vld [vmem:[%s9692_s27 + $0xf8] sm:$0xff] }
 0x3e5   : > { %v6826_v60 = vsel %vm2546_vm4, %v6821_v59, %v6825_v3  ;;  %v4785_v36 = vshll.u32 %v10954_v38, 16  ;;  %v6831_v42 = vshll.u32 %v10958_v19, 16 }
 0x3e6   : > { %8188 = vmatmul.msk.bf16.gmra.mxu3 %vm1443_vm2, %v9086_v50  ;;  %8349 = vmatmul.msk.bf16.gmra.mxu0 %vm1443_vm2, %v6818_v6  ;;  %v7259_v28 = vadd.f32 %v10886_v49, %v7192_v33  ;;  %v5884_v14 = vpop.f32.mrf.mxu2  ;;  %v4780_v58 = vsel %vm2546_vm4, %v4775_v13, %v4779_v29  ;;  %v438_v6 = vand.u32 31, %v202_v32 }
 0x3e7   : > { %v6005_v4 = vadd.f32 %v5884_v14, %v5147_v53  ;;  %v5636_v53 = vrot.slane %v5634_v18, 4  ;;  %v6833_v12 = vrot.slane %v6831_v42, 1 }
 0x3e8   : > { %v7515_v16 = vpack.c.bf16 %v7259_v28, %v7259_v28  ;;  %v5028_v8 = vpop.f32.mrf.mxu1  ;;  %v5633_v28 = vrot.slane %v5631_v51, 3  ;;  %vm1034_vm8 = vcmp.ge.s32.totalorder %v438_v6, 1 }
 0x3e9   : > { %v6250_v57 = vpop.f32.mrf.mxu3  ;;  %v4787_v8 = vrot.slane %v4785_v36, 1 }
 0x3ea   : > { %7579 = vst.msk [vmem:[%s10503_s11 + $0x84] sm:$0xf] %vm1198_vm5, %v7515_v16  ;;  %v6371_v0 = vadd.f32 %v6250_v57, %v6005_v4  ;;  %v6827_v4 = vshrl.u32 %v10932_v11, 16  ;;  %v4783_v57 = vor.u32 %v4781_v27, %v4779_v29  ;;  %v5637_v62 = vor.u32 %v5636_v53, %v5633_v28 }
 0x3eb   : > { %v7074_v47 = vpop.f32.mrf.mxu0  ;;  %v6839_v27 = vshll.u32 %v10984_v5, 16 }
 0x3ec   : > { %v7193_v1 = vadd.f32 %v7072_v40, %v6371_v0  ;;  %v6829_v39 = vor.u32 %v6827_v4, %v6825_v3  ;;  %v4788_v13 = vsel %vm2546_vm4, %v4783_v57, %v4787_v8  ;;  %v5638_v29 = vsel %vm1751_vm3, %v5628_v52, %v5637_v62  ;;  %v10979_v52 = vld [vmem:[%s9692_s27 + $0xe8] sm:$0xff] }
 0x3ed   : > { %v6841_v4 = vrot.slane %v6839_v27, 1 }
 0x3ee   : > { %v7260_v17 = vadd.f32 %v10886_v49, %v7193_v1  ;;  %v5886_v25 = vpop.f32.mrf.mxu2 }
 0x3f0   : > { %v7452_v2 = vsel %vm1096_vm7, %v7260_v17, 0.0  ;;  %v5031_v55 = vpop.f32.mrf.mxu1  ;;  %v9595_v17 = vld [vmem:[%s9692_s27 + $0xf4] sm:$0xff]  }
 0x3f1   : > { %v6252_v21 = vpop.f32.mrf.mxu3  ;;  %v7516_v20 = vpack.c.bf16 %v7452_v2, %v7452_v2  ;;  %v5149_v46 = vadd.f32 %v5031_v55, %v10228_v22  ;;  %v9088_v2 = vld [vmem:[%s9692_s27 + $0xe8] sm:$0xff]   ;;  %v5643_v55 = vshll.u32 %v9595_v17, 16 }
 0x3f2   : > { %v204_v21 = vadd.s32 240, %v10574_v26 }
 0x3f3   : > { %v7077_v35 = vpop.f32.mrf.mxu0  ;;  %7580 = vst.msk [vmem:[%s10503_s11 + $0x88] sm:$0xf] %vm1198_vm5, %v7516_v20  ;;  %8123 = vmatmul.msk.bf16.gmra.mxu1 %vm1443_vm2, %v4780_v58  ;;  %8156 = vmatmul.msk.bf16.gmra.mxu2 %vm1443_vm2, %v5629_v30  ;;  %v5640_v20 = vshrl.u32 %v9595_v17, 16  ;;  %v5645_v6 = vrot.slane %v5643_v55, 4 }
 0x3f4   : > { %v452_v32 = vand.u32 31, %v204_v21 }
 0x3f6   : > { %8189 = vmatmul.msk.bf16.gmra.mxu3 %vm1443_vm2, %v9087_v34  ;;  %8350 = vmatmul.msk.bf16.gmra.mxu0 %vm1443_vm2, %v6826_v60  ;;  %v5889_v40 = vpop.f32.mrf.mxu2  ;;  %vm1100_vm9 = vcmp.le.s32.totalorder %v452_v32, 16 }
 0x3f7   : > { %v6007_v50 = vadd.f32 %v5889_v40, %v5149_v46  ;;  %v4789_v46 = vshrl.u32 %v10954_v38, 16  ;;  %v4793_v40 = vshll.u32 %v10979_v52, 16 }
 0x3f8   : > { %v5033_v48 = vpop.f32.mrf.mxu1 }
 0x3f9   : > { %v6255_v33 = vpop.f32.mrf.mxu3  ;;  %v5150_v24 = vadd.f32 %v5033_v48, %v10239_v44  ;;  %v6834_v44 = vsel %vm2546_vm4, %v6829_v39, %v6833_v12  ;;  %v4791_v28 = vor.u32 %v4789_v46, %v4787_v8  ;;  %v4795_v53 = vrot.slane %v4793_v40, 1 }
 0x3fa   : > { %v6373_v14 = vadd.f32 %v6255_v33, %v6007_v50  ;;  %v5642_v50 = vrot.slane %v5640_v20, 3 }
 0x3fb   : > { %v7079_v16 = vpop.f32.mrf.mxu0 }
 0x3fc   : > { %v7195_v22 = vadd.f32 %v7077_v35, %v6373_v14  ;;  %v5646_v38 = vor.u32 %v5645_v6, %v5642_v50 }
 0x3fe   : > { %v7262_v54 = vadd.f32 %v10886_v49, %v7195_v22  ;;  %v5891_v0 = vpop.f32.mrf.mxu2  ;;  %v5647_v39 = vsel %vm1751_vm3, %v5637_v62, %v5646_v38 }
 0x3ff   : > { %v6008_v31 = vadd.f32 %v5891_v0, %v5150_v24  ;;  %v4796_v24 = vsel %vm2546_vm4, %v4791_v28, %v4795_v53  ;;  %v9597_v0 = vld [vmem:[%s9692_s27 + $0xfc] sm:$0xff]  }
 0x400   : > { %v7454_v47 = vsel %vm1034_vm8, %v7262_v54, 0.0  ;;  %v5036_v1 = vpop.f32.mrf.mxu1  ;;  %v5649_v62 = vshrl.u32 %v9597_v0, 16 }
 0x401   : > { %v6257_v11 = vpop.f32.mrf.mxu3  ;;  %v7518_v43 = vpack.c.bf16 %v7454_v47, %v7454_v47  ;;  %v5151_v30 = vadd.f32 %v5036_v1, %v10245_v63  ;;  %v6835_v63 = vshrl.u32 %v10958_v19, 16  ;;  %v9089_v47 = vld [vmem:[%s9692_s27 + $0xf0] sm:$0xff]  }
 0x402   : > { %v6374_v59 = vadd.f32 %v6257_v11, %v6008_v31  ;;  %v11006_v11 = vld [vmem:[%s9692_s27 + $0xf0] sm:$0xff]  ;;  %v5651_v21 = vrot.slane %v5649_v62, 3 }
 0x403   : > { %v7082_v25 = vpop.f32.mrf.mxu0  ;;  %7582 = vst.msk [vmem:[%s10503_s11 + $0x90] sm:$0xf] %vm1198_vm5, %v7518_v43  ;;  %8124 = vmatmul.msk.bf16.gmra.mxu1 %vm1443_vm2, %v4788_v13  ;;  %8157 = vmatmul.msk.bf16.gmra.mxu2 %vm1443_vm2, %v5638_v29  ;;  %v5652_v43 = vshll.u32 %v9597_v0, 16  ;;  %v11010_v13 = vld [vmem:[%s9692_s27 + $0x100] sm:$0xff] }
 0x404   : > { %v7196_v3 = vadd.f32 %v7079_v16, %v6374_v59  ;;  %v6837_v16 = vor.u32 %v6835_v63, %v6833_v12  ;;  %v206_v12 = vadd.s32 256, %v10574_v26 }
 0x405   : > { %v5654_v20 = vrot.slane %v5652_v43, 4 }
 0x406   : > { %8190 = vmatmul.msk.bf16.gmra.mxu3 %vm1443_vm2, %v9088_v2  ;;  %8351 = vmatmul.msk.bf16.gmra.mxu0 %vm1443_vm2, %v6834_v44  ;;  %v7263_v58 = vadd.f32 %v10886_v49, %v7196_v3  ;;  %v5894_v35 = vpop.f32.mrf.mxu2  ;;  %v6842_v31 = vsel %vm2546_vm4, %v6837_v16, %v6841_v4  ;;  %v466_v59 = vand.u32 31, %v206_v12  ;;  %v4797_v44 = vshrl.u32 %v10979_v52, 16 }
 0x407   : > { %v6009_v60 = vadd.f32 %v5894_v35, %v5151_v30  ;;  %v4801_v3 = vshll.u32 %v11006_v11, 16  ;;  %v6843_v30 = vshrl.u32 %v10984_v5, 16  ;;  %v6847_v35 = vshll.u32 %v11010_v13, 16 }
 0x408   : > { %v7519_v34 = vpack.c.bf16 %v7263_v58, %v7263_v58  ;;  %v5038_v18 = vpop.f32.mrf.mxu1  ;;  %vm1038_vm10 = vcmp.ge.s32.totalorder %v466_v59, 1  ;;  %v5655_v32 = vor.u32 %v5654_v20, %v5651_v21  ;;  %v4805_v12 = vshrl.u32 %v11006_v11, 16 }
 0x409   : > { %v6260_v51 = vpop.f32.mrf.mxu3  ;;  %v6845_v18 = vor.u32 %v6843_v30, %v6841_v4  ;;  %v6849_v46 = vrot.slane %v6847_v35, 1  ;;  %v208_v4 = vadd.s32 272, %v10574_v26 }
 0x40a   : > { %7583 = vst.msk [vmem:[%s10503_s11 + $0x94] sm:$0xf] %vm1198_vm5, %v7519_v34  ;;  %v6375_v33 = vadd.f32 %v6260_v51, %v6009_v60  ;;  %v4799_v34 = vor.u32 %v4797_v44, %v4795_v53  ;;  %v4803_v60 = vrot.slane %v4801_v3, 1  ;;  %v5656_v27 = vsel %vm1751_vm3, %v5646_v38, %v5655_v32  ;;  %v11031_v38 = vld [vmem:[%s9692_s27 + $0xf8] sm:$0xff] }
 0x40b   : > { %v7084_v48 = vpop.f32.mrf.mxu0  ;;  %v4809_v62 = vshll.u32 %v11031_v38, 16 }
 0x40c   : > { %v7197_v36 = vadd.f32 %v7082_v25, %v6375_v33  ;;  %v4804_v63 = vsel %vm2546_vm4, %v4799_v34, %v4803_v60 }
 0x40d   : > { %v4811_v44 = vrot.slane %v4809_v62, 1 }
 0x40e   : > { %v7264_v14 = vadd.f32 %v10886_v49, %v7197_v36  ;;  %v5896_v42 = vpop.f32.mrf.mxu2  ;;  %v9599_v36 = vld [vmem:[%s9692_s27 + $0x104] sm:$0xff]  }
 0x40f   : > { %v5658_v42 = vshrl.u32 %v9599_v36, 16 }
 0x410   : > { %v7456_v22 = vsel %vm1100_vm9, %v7264_v14, 0.0  ;;  %v5041_v19 = vpop.f32.mrf.mxu1  ;;  %v9090_v14 = vld [vmem:[%s9692_s27 + $0xf8] sm:$0xff]  }
 0x411   : > { %v6262_v57 = vpop.f32.mrf.mxu3  ;;  %v7520_v54 = vpack.c.bf16 %v7456_v22, %v7456_v22  ;;  %v5153_v1 = vadd.f32 %v5041_v19, %v10259_v9  ;;  %v5661_v22 = vshll.u32 %v9599_v36, 16  ;;  %v11036_v19 = vld [vmem:[%s9692_s27 + $0x108] sm:$0xff]  ;;  %v5660_v43 = vrot.slane %v5658_v42, 3 }
 0x412   : > { %v6855_v59 = vshll.u32 %v11036_v19, 16  ;;  %v6859_v42 = vshrl.u32 %v11036_v19, 16 }
 0x413   : > { %v7087_v8 = vpop.f32.mrf.mxu0  ;;  %7584 = vst.msk [vmem:[%s10503_s11 + $0x98] sm:$0xf] %vm1198_vm5, %v7520_v54  ;;  %8125 = vmatmul.msk.bf16.gmra.mxu1 %vm1443_vm2, %v4796_v24  ;;  %8158 = vmatmul.msk.bf16.gmra.mxu2 %vm1443_vm2, %v5647_v39 }
 0x414   : > { %v6857_v20 = vrot.slane %v6855_v59, 1 }
 0x416   : > { %8191 = vmatmul.msk.bf16.gmra.mxu3 %vm1443_vm2, %v9089_v47  ;;  %8352 = vmatmul.msk.bf16.gmra.mxu0 %vm1443_vm2, %v6842_v31  ;;  %v5899_v29 = vpop.f32.mrf.mxu2 }
 0x417   : > { %v6011_v17 = vadd.f32 %v5899_v29, %v5153_v1  ;;  %v5663_v1 = vrot.slane %v5661_v22, 4 }
 0x418   : > { %v5043_v2 = vpop.f32.mrf.mxu1 }
 0x419   : > { %v6265_v25 = vpop.f32.mrf.mxu3  ;;  %v5154_v52 = vadd.f32 %v5043_v2, %v10270_v61  ;;  %v6850_v61 = vsel %vm2546_vm4, %v6845_v18, %v6849_v46  ;;  %v4807_v2 = vor.u32 %v4805_v12, %v4803_v60  ;;  %v5664_v11 = vor.u32 %v5663_v1, %v5660_v43 }
 0x41a   : > { %v6377_v55 = vadd.f32 %v6265_v25, %v6011_v17 }
 0x41b   : > { %v7089_v58 = vpop.f32.mrf.mxu0  ;;  %v5665_v34 = vsel %vm1751_vm3, %v5655_v32, %v5664_v11 }
 0x41c   : > { %v7199_v9 = vadd.f32 %v7087_v8, %v6377_v55  ;;  %v480_v8 = vand.u32 31, %v208_v4 }
 0x41e   : > { %v7266_v51 = vadd.f32 %v10886_v49, %v7199_v9  ;;  %v5901_v40 = vpop.f32.mrf.mxu2  ;;  %vm1104_vm11 = vcmp.le.s32.totalorder %v480_v8, 16  ;;  %v4812_v9 = vsel %vm2546_vm4, %v4807_v2, %v4811_v44 }
 0x41f   : > { %v6012_v6 = vadd.f32 %v5901_v40, %v5154_v52  ;;  %v9091_v52 = vld [vmem:[%s9692_s27 + $0x100] sm:$0xff]  }
 0x420   : > { %v7458_v50 = vsel %vm1038_vm10, %v7266_v51, 0.0  ;;  %v5046_v48 = vpop.f32.mrf.mxu1  ;;  %v9601_v51 = vld [vmem:[%s9692_s27 + $0x10c] sm:$0xff]   ;;  %v11058_v40 = vld [vmem:[%s9692_s27 + $0x100] sm:$0xff] }
 0x421   : > { %v6267_v5 = vpop.f32.mrf.mxu3  ;;  %v7522_v33 = vpack.c.bf16 %v7458_v50, %v7458_v50  ;;  %v5155_v54 = vadd.f32 %v5046_v48, %v10276_v10  ;;  %v6851_v10 = vshrl.u32 %v11010_v13, 16  ;;  %v5667_v32 = vshrl.u32 %v9601_v51, 16 }
 0x422   : > { %v6378_v28 = vadd.f32 %v6267_v5, %v6012_v6  ;;  %v5670_v50 = vshll.u32 %v9601_v51, 16  ;;  %v11062_v5 = vld [vmem:[%s9692_s27 + $0x110] sm:$0xff] }
 0x423   : > { %v7092_v53 = vpop.f32.mrf.mxu0  ;;  %7586 = vst.msk [vmem:[%s10503_s11 + $0xa0] sm:$0xf] %vm1198_vm5, %v7522_v33  ;;  %8126 = vmatmul.msk.bf16.gmra.mxu1 %vm1443_vm2, %v4804_v63  ;;  %8159 = vmatmul.msk.bf16.gmra.mxu2 %vm1443_vm2, %v5656_v27  ;;  %v6853_v21 = vor.u32 %v6851_v10, %v6849_v46  ;;  %v210_v46 = vadd.s32 288, %v10574_v26  ;;  %v6863_v22 = vshll.u32 %v11062_v5, 16 }
 0x424   : > { %v7200_v16 = vadd.f32 %v7089_v58, %v6378_v28  ;;  %v4813_v28 = vshrl.u32 %v11031_v38, 16 }
 0x425   : > { %v6858_v18 = vsel %vm2546_vm4, %v6853_v21, %v6857_v20  ;;  %v494_v63 = vand.u32 31, %v210_v46  ;;  %v6865_v8 = vrot.slane %v6863_v22, 1  ;;  %v9605_v22 = vld [vmem:[%s9692_s27 + $0x11c] sm:$0xff]  }
 0x426   : > { %8192 = vmatmul.msk.bf16.gmra.mxu3 %vm1443_vm2, %v9090_v14  ;;  %8353 = vmatmul.msk.bf16.gmra.mxu0 %vm1443_vm2, %v6850_v61  ;;  %v7267_v57 = vadd.f32 %v10886_v49, %v7200_v16  ;;  %v5904_v24 = vpop.f32.mrf.mxu2  ;;  %v5669_v14 = vrot.slane %v5667_v32, 3  ;;  %v5672_v61 = vrot.slane %v5670_v50, 4 }
 0x427   : > { %v6013_v0 = vadd.f32 %v5904_v24, %v5155_v54  ;;  %vm1042_vm12 = vcmp.ge.s32.totalorder %v494_v63, 1 }
 0x428   : > { %v7523_v39 = vpack.c.bf16 %v7267_v57, %v7267_v57  ;;  %v5048_v31 = vpop.f32.mrf.mxu1  ;;  %v4815_v57 = vor.u32 %v4813_v28, %v4811_v44  ;;  %v5673_v24 = vor.u32 %v5672_v61, %v5669_v14  ;;  %v212_v44 = vadd.s32 304, %v10574_v26 }
 0x429   : > { %v6270_v47 = vpop.f32.mrf.mxu3 }
 0x42a   : > { %7587 = vst.msk [vmem:[%s10503_s11 + $0xa4] sm:$0xf] %vm1198_vm5, %v7523_v39  ;;  %v6379_v29 = vadd.f32 %v6270_v47, %v6013_v0  ;;  %v6861_v0 = vor.u32 %v6859_v42, %v6857_v20 }
 0x42b   : > { %v7094_v17 = vpop.f32.mrf.mxu0 }
 0x42c   : > { %v7201_v25 = vadd.f32 %v7092_v53, %v6379_v29  ;;  %v4817_v53 = vshll.u32 %v11058_v40, 16  ;;  %v5674_v29 = vsel %vm1751_vm3, %v5664_v11, %v5673_v24  ;;  %v9603_v17 = vld [vmem:[%s9692_s27 + $0x114] sm:$0xff]   ;;  %v11083_v11 = vld [vmem:[%s9692_s27 + $0x108] sm:$0xff] }
 0x42d   : > { %v5679_v21 = vshll.u32 %v9603_v17, 16 }
 0x42e   : > { %v7268_v3 = vadd.f32 %v10886_v49, %v7201_v25  ;;  %v5906_v55 = vpop.f32.mrf.mxu2  ;;  %v4819_v54 = vrot.slane %v4817_v53, 1  ;;  %v9092_v25 = vld [vmem:[%s9692_s27 + $0x108] sm:$0xff]  }
 0x42f   : > { %v5681_v46 = vrot.slane %v5679_v21, 4 }
 0x430   : > { %v7460_v58 = vsel %vm1104_vm11, %v7268_v3, 0.0  ;;  %v5051_v13 = vpop.f32.mrf.mxu1  ;;  %v4820_v1 = vsel %vm2546_vm4, %v4815_v57, %v4819_v54  ;;  %v5676_v3 = vshrl.u32 %v9603_v17, 16  ;;  %v9093_v57 = vld [vmem:[%s9692_s27 + $0x110] sm:$0xff]  }
 0x431   : > { %v6272_v30 = vpop.f32.mrf.mxu3  ;;  %v7524_v35 = vpack.c.bf16 %v7460_v58, %v7460_v58  ;;  %v5157_v6 = vadd.f32 %v5051_v13, %v10290_v37  ;;  %v11088_v58 = vld [vmem:[%s9692_s27 + $0x118] sm:$0xff] }
 0x433   : > { %v7097_v60 = vpop.f32.mrf.mxu0  ;;  %7588 = vst.msk [vmem:[%s10503_s11 + $0xa8] sm:$0xf] %vm1198_vm5, %v7524_v35  ;;  %8127 = vmatmul.msk.bf16.gmra.mxu1 %vm1443_vm2, %v4812_v9  ;;  %8160 = vmatmul.msk.bf16.gmra.mxu2 %vm1443_vm2, %v5665_v34  ;;  %v508_v9 = vand.u32 31, %v212_v44 }
 0x435   : > { %vm1108_vm13 = vcmp.le.s32.totalorder %v508_v9, 16 }
 0x436   : > { %8193 = vmatmul.msk.bf16.gmra.mxu3 %vm1443_vm2, %v9091_v52  ;;  %8354 = vmatmul.msk.bf16.gmra.mxu0 %vm1443_vm2, %v6858_v18  ;;  %v5909_v33 = vpop.f32.mrf.mxu2  ;;  %v4825_v52 = vshll.u32 %v11083_v11, 16  ;;  %v5678_v18 = vrot.slane %v5676_v3, 3 }
 0x437   : > { %v6015_v48 = vadd.f32 %v5909_v33, %v5157_v6  ;;  %v6871_v6 = vshll.u32 %v11088_v58, 16 }
 0x438   : > { %v5053_v36 = vpop.f32.mrf.mxu1  ;;  %v4827_v63 = vrot.slane %v4825_v52, 1 }
 0x439   : > { %v6275_v27 = vpop.f32.mrf.mxu3  ;;  %v5158_v38 = vadd.f32 %v5053_v36, %v10301_v7  ;;  %v6866_v7 = vsel %vm2546_vm4, %v6861_v0, %v6865_v8  ;;  %v6873_v28 = vrot.slane %v6871_v6, 1  ;;  %v5688_v0 = vshll.u32 %v9605_v22, 16  ;;  %v11135_v6 = vld [vmem:[%s9692_s27 + $0x118] sm:$0xff] }
 0x43a   : > { %v6381_v16 = vadd.f32 %v6275_v27, %v6015_v48 }
 0x43b   : > { %v7099_v4 = vpop.f32.mrf.mxu0 }
 0x43c   : > { %v7203_v37 = vadd.f32 %v7097_v60, %v6381_v16  ;;  %v4821_v60 = vshrl.u32 %v11058_v40, 16  ;;  %v5682_v40 = vor.u32 %v5681_v46, %v5678_v18  ;;  %v9606_v18 = vld [vmem:[%s9692_s27 + $0x124] sm:$0xff]  }
 0x43e   : > { %v7270_v39 = vadd.f32 %v10886_v49, %v7203_v37  ;;  %v5911_v47 = vpop.f32.mrf.mxu2  ;;  %v4823_v48 = vor.u32 %v4821_v60, %v4819_v54  ;;  %v5683_v42 = vsel %vm1751_vm3, %v5673_v24, %v5682_v40  ;;  %v5685_v24 = vshrl.u32 %v9605_v22, 16 }
 0x43f   : > { %v6016_v12 = vadd.f32 %v5911_v47, %v5158_v38  ;;  %v11110_v38 = vld [vmem:[%s9692_s27 + $0x110] sm:$0xff]  ;;  %v11114_v47 = vld [vmem:[%s9692_s27 + $0x120] sm:$0xff] }
 0x440   : > { %v7462_v31 = vsel %vm1042_vm12, %v7270_v39, 0.0  ;;  %v5056_v43 = vpop.f32.mrf.mxu1  ;;  %v214_v39 = vadd.s32 320, %v10574_v26  ;;  %v5687_v17 = vrot.slane %v5685_v24, 3  ;;  %v11152_v24 = vld [vmem:[%s9692_s27 + $0x128] sm:$0xff]  }
 0x441   : > { %v6277_v19 = vpop.f32.mrf.mxu3  ;;  %v7526_v62 = vpack.c.bf16 %v7462_v31, %v7462_v31  ;;  %v5159_v55 = vadd.f32 %v5056_v43, %v10307_v56  ;;  %v6867_v56 = vshrl.u32 %v11062_v5, 16 }
 0x442   : > { %v6382_v10 = vadd.f32 %v6277_v19, %v6016_v12  ;;  %v522_v19 = vand.u32 31, %v214_v39 }
 0x443   : > { %v7102_v59 = vpop.f32.mrf.mxu0  ;;  %7590 = vst.msk [vmem:[%s10503_s11 + $0xb0] sm:$0xf] %vm1198_vm5, %v7526_v62  ;;  %8128 = vmatmul.msk.bf16.gmra.mxu1 %vm1443_vm2, %v4820_v1  ;;  %8161 = vmatmul.msk.bf16.gmra.mxu2 %vm1443_vm2, %v5674_v29  ;;  %v6869_v36 = vor.u32 %v6867_v56, %v6865_v8  ;;  %v4829_v1 = vshrl.u32 %v11083_v11, 16  ;;  %v4833_v29 = vshll.u32 %v11110_v38, 16 }
 0x444   : > { %v7204_v2 = vadd.f32 %v7099_v4, %v6382_v10  ;;  %v4828_v4 = vsel %vm2546_vm4, %v4823_v48, %v4827_v63  ;;  %v5690_v10 = vrot.slane %v5688_v0, 4  ;;  %vm1046_vm14 = vcmp.ge.s32.totalorder %v522_v19, 1 }
 0x445   : > { %v6874_v54 = vsel %vm2546_vm4, %v6869_v36, %v6873_v28  ;;  %v4831_v44 = vor.u32 %v4829_v1, %v4827_v63  ;;  %v4835_v3 = vrot.slane %v4833_v29, 1  ;;  %v5694_v48 = vshrl.u32 %v9606_v18, 16  ;;  %v11143_v36 = vld [vmem:[%s9692_s27 + $0x128] sm:$0xff]  ;;  %v4427_v1 = vld [vmem:[%s9692_s27 + $0x120] sm:$0x1] }
 0x446   : > { %8194 = vmatmul.msk.bf16.gmra.mxu3 %vm1443_vm2, %v9092_v25  ;;  %8355 = vmatmul.msk.bf16.gmra.mxu0 %vm1443_vm2, %v6866_v7  ;;  %v7271_v20 = vadd.f32 %v10886_v49, %v7204_v2  ;;  %v5914_v30 = vpop.f32.mrf.mxu2  ;;  %v6875_v7 = vshrl.u32 %v11088_v58, 16  ;;  %v6879_v2 = vshll.u32 %v11114_v47, 16  ;;  %v11120_v21 = vor.u32 %v5690_v10, %v5687_v17 }
 0x447   : > { %v6017_v13 = vadd.f32 %v5914_v30, %v5159_v55  ;;  %v4836_v60 = vsel %vm2546_vm4, %v4831_v44, %v4835_v3  ;;  %v5697_v63 = vshll.u32 %v9606_v18, 16  ;;  %v5696_v22 = vrot.slane %v5694_v48, 3 }
 0x448   : > { %v7527_v35 = vpack.c.bf16 %v7271_v20, %v7271_v20  ;;  %v5058_v51 = vpop.f32.mrf.mxu1  ;;  %v6877_v55 = vor.u32 %v6875_v7, %v6873_v28  ;;  %v6881_v30 = vrot.slane %v6879_v2, 1  ;;  %v5692_v52 = vsel %vm1751_vm3, %v5682_v40, %v11120_v21 }
 0x449   : > { %v6280_v34 = vpop.f32.mrf.mxu3  ;;  %v6887_v39 = vshll.u32 %v11143_v36, 16  ;;  %v4845_v18 = vshrl.u32 %v11135_v6, 16 }
 0x44a   : > { %7591 = vst.msk [vmem:[%s10503_s11 + $0xb4] sm:$0xf] %vm1198_vm5, %v7527_v35  ;;  %v6383_v32 = vadd.f32 %v6280_v34, %v6017_v13 }
 0x44b   : > { %v7104_v50 = vpop.f32.mrf.mxu0 }
 0x44c   : > { %v7205_v33 = vadd.f32 %v7102_v59, %v6383_v32  ;;  %v6882_v50 = vsel %vm2546_vm4, %v6877_v55, %v6881_v30  ;;  %v218_v55 = vadd.s32 352, %v10574_v26 }
 0x44e   : > { %v7272_v27 = vadd.f32 %v10886_v49, %v7205_v33  ;;  %v5916_v53 = vpop.f32.mrf.mxu2  ;;  %v216_v33 = vadd.s32 336, %v10574_v26 }
 0x450   : > { %v7464_v14 = vsel %vm1108_vm13, %v7272_v27, 0.0  ;;  %v5061_v5 = vpop.f32.mrf.mxu1 }
 0x451   : > { %v6282_v61 = vpop.f32.mrf.mxu3  ;;  %v7528_v16 = vpack.c.bf16 %v7464_v14, %v7464_v14  ;;  %v5161_v8 = vadd.f32 %v5061_v5, %v10324_v23  ;;  %v4841_v5 = vshll.u32 %v11135_v6, 16 }
 0x453   : > { %v7107_v37 = vpop.f32.mrf.mxu0  ;;  %7592 = vst.msk [vmem:[%s10503_s11 + $0xb8] sm:$0xf] %vm1198_vm5, %v7528_v16  ;;  %8129 = vmatmul.msk.bf16.gmra.mxu1 %vm1443_vm2, %v4828_v4  ;;  %8162 = vmatmul.msk.bf16.gmra.mxu2 %vm1443_vm2, %v5683_v42  ;;  %v4837_v16 = vshrl.u32 %v11110_v38, 16  ;;  %v536_v4 = vand.u32 31, %v216_v33  ;;  %v6891_v33 = vshrl.u32 %v11143_v36, 16 }
 0x455   : > { %v4839_v38 = vor.u32 %v4837_v16, %v4835_v3  ;;  %vm1112_vm15 = vcmp.le.s32.totalorder %v536_v4, 16 }
 0x456   : > { %8195 = vmatmul.msk.bf16.gmra.mxu3 %vm1443_vm2, %v9093_v57  ;;  %8356 = vmatmul.msk.bf16.gmra.mxu0 %vm1443_vm2, %v6874_v54  ;;  %v5919_v31 = vpop.f32.mrf.mxu2  ;;  %v6883_v54 = vshrl.u32 %v11114_v47, 16  ;;  %v6473_v47 = vld [vmem:[%s9692_s27 + $0x130] sm:$0x1] }
 0x457   : > { %v6019_v12 = vadd.f32 %v5919_v31, %v5161_v8  ;;  %v4843_v8 = vrot.slane %v4841_v5, 1 }
 0x458   : > { %v5063_v43 = vpop.f32.mrf.mxu1 }
 0x459   : > { %v6285_v62 = vpop.f32.mrf.mxu3  ;;  %v5162_v20 = vadd.f32 %v5063_v43, %v10335_v45  ;;  %v9094_v45 = vld [vmem:[%s9692_s27 + $0x118] sm:$0xff]   ;;  %v6889_v43 = vrot.slane %v6887_v39, 1 }
 0x45a   : > { %v6385_v59 = vadd.f32 %v6285_v62, %v6019_v12  ;;  %v8841_v12 = vunpack.c.h.b16 %v11152_v24  ;;  %v6885_v62 = vor.u32 %v6883_v54, %v6881_v30 }
 0x45b   : > { %v7109_v25 = vpop.f32.mrf.mxu0 }
 0x45c   : > { %v7207_v23 = vadd.f32 %v7107_v37, %v6385_v59  ;;  %v5699_v37 = vrot.slane %v5697_v63, 4  ;;  %v4844_v59 = vsel %vm2546_vm4, %v4839_v38, %v4843_v8  ;;  %v5414_v44 = vpack.c.b16 %v8841_v12, %v8841_v12  ;;  %v11336_v12 = vld [vmem:[#allocation14_spill] sm:$0xff] }
 0x45e   : > { %v7274_v11 = vadd.f32 %v10886_v49, %v7207_v23  ;;  %v5921_v35 = vpop.f32.mrf.mxu2  ;;  %v5700_v31 = vor.u32 %v5699_v37, %v5696_v22  ;;  %v4559_v23 = vunpack.c.l.b16 %v4427_v1  ;;  %v5703_v30 = vshrl.u32 %v5414_v44, 16 }
 0x45f   : > { %v6020_v58 = vadd.f32 %v5921_v35, %v5162_v20  ;;  %v6605_v20 = vunpack.c.l.b16 %v6473_v47  ;;  %v5706_v35 = vshll.u32 %v5414_v44, 16 }
 0x460   : > { %v7466_v13 = vsel %vm1046_vm14, %v7274_v11, 0.0  ;;  %v5066_v51 = vpop.f32.mrf.mxu1  ;;  %v5701_v2 = vsel %vm1751_vm3, %v11120_v21, %v5700_v31  ;;  %v9095_v11 = vld [vmem:[%s9692_s27 + $0x120] sm:$0xff]   ;;  %v4592_v21 = vpack.c.b16 %v4559_v23, %v4559_v23 }
 0x461   : > { %v6287_v9 = vpop.f32.mrf.mxu3  ;;  %v7530_v34 = vpack.c.bf16 %v7466_v13, %v7466_v13  ;;  %v5163_v27 = vadd.f32 %v5066_v51, %v10345_v15  ;;  %v550_v51 = vand.u32 31, %v218_v55 }
 0x462   : > { %v6386_v46 = vadd.f32 %v6287_v9, %v6020_v58  ;;  %v6638_v58 = vpack.c.b16 %v6605_v20, %v6605_v20  ;;  %v11337_v20 = vld [vmem:[#allocation2_spill] sm:$0xff] }
 0x463   : > { %v7112_v32 = vpop.f32.mrf.mxu0  ;;  %7594 = vst.msk [vmem:[%s10503_s11 + $0xc0] sm:$0xf] %vm1198_vm5, %v7530_v34  ;;  %8130 = vmatmul.msk.bf16.gmra.mxu1 %vm1443_vm2, %v4836_v60  ;;  %8163 = vmatmul.msk.bf16.gmra.mxu2 %vm1443_vm2, %v5692_v52  ;;  %vm1050_vm0 = vcmp.ge.s32.totalorder %v550_v51, 1 }
 0x464   : > { %v7208_v56 = vadd.f32 %v7109_v25, %v6386_v46  ;;  %v4849_v46 = vshll.u32 %v4592_v21, 16  ;;  %v6895_v48 = vshll.u32 %v6638_v58, 16 }
 0x466   : > { %8196 = vmatmul.msk.bf16.gmra.mxu3 %vm1443_vm2, %v9094_v45  ;;  %8357 = vmatmul.msk.bf16.gmra.mxu0 %vm1443_vm2, %v6882_v50  ;;  %v7275_v40 = vadd.f32 %v10886_v49, %v7208_v56  ;;  %v5924_v28 = vpop.f32.mrf.mxu2  ;;  %v5708_v45 = vrot.slane %v5706_v35, 4  ;;  %v6897_v16 = vrot.slane %v6895_v48, 1 }
 0x467   : > { %v6021_v14 = vadd.f32 %v5924_v28, %v5163_v27  ;;  %v11176_v28 = vld [vmem:[%s11291_s2] ss:$0 sm:$0xff] }
 0x468   : > { %v7531_v53 = vpack.c.bf16 %v7275_v40, %v7275_v40  ;;  %v5068_v42 = vpop.f32.mrf.mxu1  ;;  %v4847_v40 = vor.u32 %v4845_v18, %v4843_v8  ;;  %v220_v8 = vadd.s32 368, %v10574_v26 }
 0x469   : > { %v6290_v61 = vpop.f32.mrf.mxu3 }
 0x46a   : > { %7595 = vst.msk [vmem:[%s10503_s11 + $0xc4] sm:$0xf] %vm1198_vm5, %v7531_v53  ;;  %v6387_v57 = vadd.f32 %v6290_v61, %v6021_v14  ;;  %v11335_v53 = vld [vmem:[#allocation12_spill] sm:$0xff]  ;;  %v6893_v61 = vor.u32 %v6891_v33, %v6889_v43  ;;  %v564_v47 = vand.u32 31, %v220_v8 }
 0x46b   : > { %v7114_v15 = vpop.f32.mrf.mxu0 }
 0x46c   : > { %v7209_v0 = vadd.f32 %v7112_v32, %v6387_v57  ;;  %v5705_v32 = vrot.slane %v5703_v30, 3 }
 0x46e   : > { %v7276_v19 = vadd.f32 %v10886_v49, %v7209_v0  ;;  %v5926_v29 = vpop.f32.mrf.mxu2  ;;  %v6890_v49 = vsel %vm2546_vm4, %v6885_v62, %v6889_v43  ;;  %v5709_v27 = vor.u32 %v5708_v45, %v5705_v32  ;;  %v6898_v0 = vsel %vm2546_vm4, %v6893_v61, %v6897_v16 }
 0x470   : > { %v7468_v17 = vsel %vm1112_vm15, %v7276_v19, 0.0  ;;  %v5071_v7 = vpop.f32.mrf.mxu1  ;;  %v5710_v15 = vsel %vm1751_vm3, %v5700_v31, %v5709_v27  ;;  %vm1116_vm3 = vcmp.le.s32.totalorder %v564_v47, 16 }
 0x471   : > { %v6292_v10 = vpop.f32.mrf.mxu3  ;;  %v7532_v25 = vpack.c.bf16 %v7468_v17, %v7468_v17  ;;  %v5165_v13 = vadd.f32 %v5071_v7, %v10359_v41  ;;  %v4851_v41 = vrot.slane %v4849_v46, 1 }
 0x473   : > { %v7117_v3 = vpop.f32.mrf.mxu0  ;;  %7596 = vst.msk [vmem:[%s10503_s11 + $0xc8] sm:$0xf] %vm1198_vm5, %v7532_v25  ;;  %8131 = vmatmul.msk.bf16.gmra.mxu1 %vm1443_vm2, %v4844_v59  ;;  %8164 = vmatmul.msk.bf16.gmra.mxu2 %vm1443_vm2, %v5701_v2  ;;  %v4852_v57 = vsel %vm2546_vm4, %v4847_v40, %v4851_v41  ;;  %v224_v41 = vadd.s32 400, %v10574_v26 }
 0x476   : > { %8197 = vmatmul.msk.bf16.gmra.mxu3 %vm1443_vm2, %v9095_v11  ;;  %8358 = vmatmul.msk.bf16.gmra.mxu0 %vm1443_vm2, %v6890_v49  ;;  %v5929_v9 = vpop.f32.mrf.mxu2  ;;  %v222_v49 = vadd.s32 384, %v10574_v26 }
 0x477   : > { %v6023_v34 = vadd.f32 %v5929_v9, %v5165_v13 }
 0x478   : > { %v5073_v52 = vpop.f32.mrf.mxu1  ;;  %v578_v13 = vand.u32 31, %v222_v49 }
 0x479   : > { %v6295_v60 = vpop.f32.mrf.mxu3  ;;  %v5166_v14 = vadd.f32 %v5073_v52, %v11335_v53  ;;  %v11338_v52 = vld [vmem:[#allocation3_spill] sm:$0xff] }
 0x47a   : > { %v6389_v50 = vadd.f32 %v6295_v60, %v6023_v34 }
 0x47b   : > { %v7119_v56 = vpop.f32.mrf.mxu0 }
 0x47c   : > { %v7211_v63 = vadd.f32 %v7117_v3, %v6389_v50 }
 0x47e   : > { %v7278_v6 = vadd.f32 %v11176_v28, %v7211_v63  ;;  %v5931_v5 = vpop.f32.mrf.mxu2 }
 0x47f   : > { %v6024_v4 = vadd.f32 %v5931_v5, %v5166_v14 }
 0x480   : > { %v7470_v36 = vsel %vm1050_vm0, %v7278_v6, 0.0  ;;  %v5076_v37 = vpop.f32.mrf.mxu1  ;;  %v11339_v6 = vld [vmem:[#allocation4_spill] sm:$0xff] }
 0x481   : > { %v6297_v42 = vpop.f32.mrf.mxu3  ;;  %v7534_v22 = vpack.c.bf16 %v7470_v36, %v7470_v36  ;;  %v5167_v19 = vadd.f32 %v5076_v37, %v11336_v12  ;;  %v592_v36 = vand.u32 31, %v224_v41  ;;  %v11340_v12 = vld [vmem:[#allocation5_spill] sm:$0xff] }
 0x482   : > { %v6390_v54 = vadd.f32 %v6297_v42, %v6024_v4 }
 0x483   : > { %v7122_v39 = vpop.f32.mrf.mxu0  ;;  %7598 = vst.msk [vmem:[%s10503_s11 + $0xd0] sm:$0xf] %vm1198_vm5, %v7534_v22  ;;  %8132 = vmatmul.msk.bf16.gmra.mxu1 %vm1443_vm2, %v4852_v57  ;;  %8165 = vmatmul.msk.bf16.gmra.mxu2 %vm1443_vm2, %v5710_v15  ;;  %vm1120_vm4 = vcmp.le.s32.totalorder %v592_v36, 16 }
 0x484   : > { %v7212_v38 = vadd.f32 %v7119_v56, %v6390_v54 }
 0x486   : > { %8198 = vmatmul.msk.bf16.gmra.mxu3 %vm1443_vm2, %v11152_v24  ;;  %8359 = vmatmul.msk.bf16.gmra.mxu0 %vm1443_vm2, %v6898_v0  ;;  %v7279_v31 = vadd.f32 %v11176_v28, %v7212_v38  ;;  %v5934_v62 = vpop.f32.mrf.mxu2  ;;  %vm1054_vm2 = vcmp.ge.s32.totalorder %v578_v13, 1  ;;  %v11342_v13 = vld [vmem:[#allocation7_spill] sm:$0xff] }
 0x487   : > { %v6025_v1 = vadd.f32 %v5934_v62, %v5167_v19 }
 0x488   : > { %v7535_v43 = vpack.c.bf16 %v7279_v31, %v7279_v31  ;;  %v5078_v17 = vpop.f32.mrf.mxu1  ;;  %v226_v31 = vadd.s32 416, %v10574_v26 }
 0x489   : > { %v6300_v29 = vpop.f32.mrf.mxu3 }
 0x48a   : > { %7599 = vst.msk [vmem:[%s10503_s11 + $0xd4] sm:$0xf] %vm1198_vm5, %v7535_v43  ;;  %v6391_v10 = vadd.f32 %v6300_v29, %v6025_v1  ;;  %v606_v29 = vand.u32 31, %v226_v31 }
 0x48b   : > { %v7124_v59 = vpop.f32.mrf.mxu0 }
 0x48c   : > { %v7213_v24 = vadd.f32 %v7122_v39, %v6391_v10  ;;  %vm1058_vm1 = vcmp.ge.s32.totalorder %v606_v29, 1  ;;  %v11345_v29 = vld [vmem:[#allocation10_spill] sm:$0xff] }
 0x48e   : > { %v7280_v25 = vadd.f32 %v11176_v28, %v7213_v24  ;;  %v5936_v7 = vpop.f32.mrf.mxu2 }
 0x490   : > { %v7472_v2 = vsel %vm1116_vm3, %v7280_v25, 0.0  ;;  %v5081_v3 = vpop.f32.mrf.mxu1  ;;  %v11341_v25 = vld [vmem:[#allocation6_spill] sm:$0xff] }
 0x491   : > { %v6302_v23 = vpop.f32.mrf.mxu3  ;;  %v7536_v44 = vpack.c.bf16 %v7472_v2, %v7472_v2  ;;  %v5169_v55 = vadd.f32 %v5081_v3, %v11337_v20 }
 0x493   : > { %v7127_v11 = vpop.f32.mrf.mxu0  ;;  %7600 = vst.msk [vmem:[%s10503_s11 + $0xd8] sm:$0xf] %vm1198_vm5, %v7536_v44 }
 0x496   : > { %v5939_v21 = vpop.f32.mrf.mxu2 }
 0x497   : > { %v6027_v30 = vadd.f32 %v5939_v21, %v5169_v55 }
 0x498   : > { %v5083_v58 = vpop.f32.mrf.mxu1 }
 0x499   : > { %v6305_v35 = vpop.f32.mrf.mxu3  ;;  %v5170_v18 = vadd.f32 %v5083_v58, %v11338_v52 }
 0x49a   : > { %v6393_v9 = vadd.f32 %v6305_v35, %v6027_v30  ;;  %v228_v30 = vadd.s32 432, %v10574_v26 }
 0x49b   : > { %v7129_v34 = vpop.f32.mrf.mxu0 }
 0x49c   : > { %v7215_v51 = vadd.f32 %v7127_v11, %v6393_v9  ;;  %v620_v52 = vand.u32 31, %v228_v30 }
 0x49e   : > { %v7282_v60 = vadd.f32 %v11176_v28, %v7215_v51  ;;  %v5941_v46 = vpop.f32.mrf.mxu2  ;;  %vm1124_vm6 = vcmp.le.s32.totalorder %v620_v52, 16 }
 0x49f   : > { %v6028_v45 = vadd.f32 %v5941_v46, %v5170_v18 }
 0x4a0   : > { %v7474_v32 = vsel %vm1054_vm2, %v7282_v60, 0.0  ;;  %v5086_v33 = vpop.f32.mrf.mxu1 }
 0x4a1   : > { %v6307_v50 = vpop.f32.mrf.mxu3  ;;  %v7538_v56 = vpack.c.bf16 %v7474_v32, %v7474_v32  ;;  %v5171_v53 = vadd.f32 %v5086_v33, %v11339_v6  ;;  %v11343_v6 = vld [vmem:[#allocation8_spill] sm:$0xff] }
 0x4a2   : > { %v6394_v48 = vadd.f32 %v6307_v50, %v6028_v45 }
 0x4a3   : > { %v7132_v63 = vpop.f32.mrf.mxu0  ;;  %7602 = vst.msk [vmem:[%s10503_s11 + $0xe0] sm:$0xf] %vm1198_vm5, %v7538_v56 }
 0x4a4   : > { %v7216_v40 = vadd.f32 %v7129_v34, %v6394_v48 }
 0x4a6   : > { %v7283_v27 = vadd.f32 %v11176_v28, %v7216_v40  ;;  %v5944_v14 = vpop.f32.mrf.mxu2 }
 0x4a7   : > { %v6029_v16 = vadd.f32 %v5944_v14, %v5171_v53 }
 0x4a8   : > { %v7539_v61 = vpack.c.bf16 %v7283_v27, %v7283_v27  ;;  %v5088_v4 = vpop.f32.mrf.mxu1  ;;  %v230_v27 = vadd.s32 448, %v10574_v26 }
 0x4a9   : > { %v6310_v5 = vpop.f32.mrf.mxu3 }
 0x4aa   : > { %7603 = vst.msk [vmem:[%s10503_s11 + $0xe4] sm:$0xf] %vm1198_vm5, %v7539_v61  ;;  %v6395_v42 = vadd.f32 %v6310_v5, %v6029_v16  ;;  %v634_v5 = vand.u32 31, %v230_v27 }
 0x4ab   : > { %v7134_v22 = vpop.f32.mrf.mxu0 }
 0x4ac   : > { %v7217_v37 = vadd.f32 %v7132_v63, %v6395_v42  ;;  %vm1062_vm7 = vcmp.ge.s32.totalorder %v634_v5, 1 }
 0x4ae   : > { %v7284_v57 = vadd.f32 %v11176_v28, %v7217_v37  ;;  %v5946_v15 = vpop.f32.mrf.mxu2 }
 0x4b0   : > { %v7476_v54 = vsel %vm1120_vm4, %v7284_v57, 0.0  ;;  %v5091_v38 = vpop.f32.mrf.mxu1  ;;  %v11344_v57 = vld [vmem:[#allocation9_spill] sm:$0xff] }
 0x4b1   : > { %v6312_v39 = vpop.f32.mrf.mxu3  ;;  %v7540_v0 = vpack.c.bf16 %v7476_v54, %v7476_v54  ;;  %v5173_v19 = vadd.f32 %v5091_v38, %v11340_v12 }
 0x4b3   : > { %v7137_v8 = vpop.f32.mrf.mxu0  ;;  %7604 = vst.msk [vmem:[%s10503_s11 + $0xe8] sm:$0xf] %vm1198_vm5, %v7540_v0 }
 0x4b6   : > { %v5949_v62 = vpop.f32.mrf.mxu2 }
 0x4b7   : > { %v6031_v43 = vadd.f32 %v5949_v62, %v5173_v19 }
 0x4b8   : > { %v5093_v47 = vpop.f32.mrf.mxu1 }
 0x4b9   : > { %v6315_v1 = vpop.f32.mrf.mxu3  ;;  %v5174_v7 = vadd.f32 %v5093_v47, %v11341_v25 }
 0x4ba   : > { %v6397_v17 = vadd.f32 %v6315_v1, %v6031_v43  ;;  %v232_v43 = vadd.s32 464, %v10574_v26 }
 0x4bb   : > { %v7139_v10 = vpop.f32.mrf.mxu0 }
 0x4bc   : > { %v7219_v59 = vadd.f32 %v7137_v8, %v6397_v17  ;;  %v648_v25 = vand.u32 31, %v232_v43 }
 0x4be   : > { %v7286_v24 = vadd.f32 %v11176_v28, %v7219_v59  ;;  %v5951_v2 = vpop.f32.mrf.mxu2  ;;  %vm1128_vm8 = vcmp.le.s32.totalorder %v648_v25, 16 }
 0x4bf   : > { %v6032_v44 = vadd.f32 %v5951_v2, %v5174_v7 }
 0x4c0   : > { %v7478_v23 = vsel %vm1058_vm1, %v7286_v24, 0.0  ;;  %v5096_v49 = vpop.f32.mrf.mxu1 }
 0x4c1   : > { %v6317_v3 = vpop.f32.mrf.mxu3  ;;  %v7542_v11 = vpack.c.bf16 %v7478_v23, %v7478_v23  ;;  %v5175_v58 = vadd.f32 %v5096_v49, %v11342_v13  ;;  %v234_v13 = vadd.s32 480, %v10574_v26 }
 0x4c2   : > { %v6398_v20 = vadd.f32 %v6317_v3, %v6032_v44 }
 0x4c3   : > { %v7142_v55 = vpop.f32.mrf.mxu0  ;;  %7606 = vst.msk [vmem:[%s10503_s11 + $0xf0] sm:$0xf] %vm1198_vm5, %v7542_v11  ;;  %v662_v52 = vand.u32 31, %v234_v13 }
 0x4c4   : > { %v7220_v21 = vadd.f32 %v7139_v10, %v6398_v20 }
 0x4c5   : > { %vm1066_vm9 = vcmp.ge.s32.totalorder %v662_v52, 1 }
 0x4c6   : > { %v7287_v35 = vadd.f32 %v11176_v28, %v7220_v21  ;;  %v5954_v9 = vpop.f32.mrf.mxu2 }
 0x4c7   : > { %v6033_v51 = vadd.f32 %v5954_v9, %v5175_v58  ;;  %v11346_v58 = vld [vmem:[#allocation11_spill] sm:$0xff] }
 0x4c8   : > { %v7543_v34 = vpack.c.bf16 %v7287_v35, %v7287_v35  ;;  %v5098_v18 = vpop.f32.mrf.mxu1  ;;  %v9633_v35 = vmov 0.0|0.0  }
 0x4c9   : > { %v6320_v60 = vpop.f32.mrf.mxu3  ;;  %7557 = vst.msk [vmem:[%s10503_s11 + $0x2c] sm:$0xf] %vm1198_vm5, %v9633_v35 }
 0x4ca   : > { %7607 = vst.msk [vmem:[%s10503_s11 + $0xf4] sm:$0xf] %vm1198_vm5, %v7543_v34  ;;  %v6399_v46 = vadd.f32 %v6320_v60, %v6033_v51 }
 0x4cb   : > { %v7144_v32 = vpop.f32.mrf.mxu0  ;;  %7561 = vst.msk [vmem:[%s10503_s11 + $0x3c] sm:$0xf] %vm1198_vm5, %v9633_v35 }
 0x4cc   : > { %v7221_v45 = vadd.f32 %v7142_v55, %v6399_v46  ;;  %7565 = vst.msk [vmem:[%s10503_s11 + $0x4c] sm:$0xf] %vm1198_vm5, %v9633_v35 }
 0x4cd   : > { %7569 = vst.msk [vmem:[%s10503_s11 + $0x5c] sm:$0xf] %vm1198_vm5, %v9633_v35 }
 0x4ce   : > { %v7288_v50 = vadd.f32 %v11176_v28, %v7221_v45  ;;  %v5956_v56 = vpop.f32.mrf.mxu2  ;;  %7573 = vst.msk [vmem:[%s10503_s11 + $0x6c] sm:$0xf] %vm1198_vm5, %v9633_v35 }
 0x4cf   : > { %7577 = vst.msk [vmem:[%s10503_s11 + $0x7c] sm:$0xf] %vm1198_vm5, %v9633_v35  ;;  %v11347_v56 = vld [vmem:[#allocation13_spill] sm:$0xff] }
 0x4d0   : > { %v7480_v33 = vsel %vm1124_vm6, %v7288_v50, 0.0  ;;  %v5101_v40 = vpop.f32.mrf.mxu1  ;;  %7581 = vst.msk [vmem:[%s10503_s11 + $0x8c] sm:$0xf] %vm1198_vm5, %v9633_v35 }
 0x4d1   : > { %v6322_v48 = vpop.f32.mrf.mxu3  ;;  %v7544_v63 = vpack.c.bf16 %v7480_v33, %v7480_v33  ;;  %v5177_v53 = vadd.f32 %v5101_v40, %v11343_v6  ;;  %7585 = vst.msk [vmem:[%s10503_s11 + $0x9c] sm:$0xf] %vm1198_vm5, %v9633_v35 }
 0x4d2   : > { %7589 = vst.msk [vmem:[%s10503_s11 + $0xac] sm:$0xf] %vm1198_vm5, %v9633_v35 }
 0x4d3   : > { %v7147_v41 = vpop.f32.mrf.mxu0  ;;  %7608 = vst.msk [vmem:[%s10503_s11 + $0xf8] sm:$0xf] %vm1198_vm5, %v7544_v63 }
 0x4d4   : > { %7593 = vst.msk [vmem:[%s10503_s11 + $0xbc] sm:$0xf] %vm1198_vm5, %v9633_v35 }
 0x4d5   : > { %7597 = vst.msk [vmem:[%s10503_s11 + $0xcc] sm:$0xf] %vm1198_vm5, %v9633_v35 }
 0x4d6   : > { %v5959_v14 = vpop.f32.mrf.mxu2  ;;  %7601 = vst.msk [vmem:[%s10503_s11 + $0xdc] sm:$0xf] %vm1198_vm5, %v9633_v35 }
 0x4d7   : > { %v6035_v61 = vadd.f32 %v5959_v14, %v5177_v53  ;;  %7605 = vst.msk [vmem:[%s10503_s11 + $0xec] sm:$0xf] %vm1198_vm5, %v9633_v35 }
 0x4d8   : > { %v5103_v36 = vpop.f32.mrf.mxu1  ;;  %7609 = vst.msk [vmem:[%s10503_s11 + $0xfc] sm:$0xf] %vm1198_vm5, %v9633_v35 }
 0x4d9   : > { %v6325_v16 = vpop.f32.mrf.mxu3  ;;  %v5178_v15 = vadd.f32 %v5103_v36, %v11344_v57  ;;  %7613 = vst.msk [vmem:[%s10503_s11 + $0x10c] sm:$0xf] %vm1198_vm5, %v9633_v35  ;;  %v11348_v36 = vld [vmem:[#allocation15_spill] sm:$0xff] }
 0x4da   : > { %v6401_v4 = vadd.f32 %v6325_v16, %v6035_v61  ;;  %7617 = vst.msk [vmem:[%s10503_s11 + $0x11c] sm:$0xf] %vm1198_vm5, %v9633_v35  ;;  %v236_v16 = vadd.s32 496, %v10574_v26 }
 0x4db   : > { %v7149_v42 = vpop.f32.mrf.mxu0 }
 0x4dc   : > { %v7223_v22 = vadd.f32 %v7147_v41, %v6401_v4 }
 0x4de   : > { %v7290_v37 = vadd.f32 %v11176_v28, %v7223_v22  ;;  %v5961_v54 = vpop.f32.mrf.mxu2 }
 0x4df   : > { %v6036_v0 = vadd.f32 %v5961_v54, %v5178_v15  ;;  %v676_v15 = vand.u32 31, %v236_v16 }
 0x4e0   : > { %v7482_v39 = vsel %vm1062_vm7, %v7290_v37, 0.0  ;;  %v5106_v31 = vpop.f32.mrf.mxu1 }
 0x4e1   : > { %v6327_v38 = vpop.f32.mrf.mxu3  ;;  %v7546_v8 = vpack.c.bf16 %v7482_v39, %v7482_v39  ;;  %v5179_v47 = vadd.f32 %v5106_v31, %v11345_v29  ;;  %vm1132_vm10 = vcmp.le.s32.totalorder %v676_v15, 16 }
 0x4e2   : > { %v6402_v12 = vadd.f32 %v6327_v38, %v6036_v0 }
 0x4e3   : > { %v7152_v19 = vpop.f32.mrf.mxu0  ;;  %7610 = vst.msk [vmem:[%s10503_s11 + $0x100] sm:$0xf] %vm1198_vm5, %v7546_v8 }
 0x4e4   : > { %v7224_v62 = vadd.f32 %v7149_v42, %v6402_v12 }
 0x4e6   : > { %v7291_v1 = vadd.f32 %v11176_v28, %v7224_v62  ;;  %v5964_v17 = vpop.f32.mrf.mxu2 }
 0x4e7   : > { %v6037_v59 = vadd.f32 %v5964_v17, %v5179_v47 }
 0x4e8   : > { %v7547_v10 = vpack.c.bf16 %v7291_v1, %v7291_v1  ;;  %v5108_v7 = vpop.f32.mrf.mxu1 }
 0x4e9   : > { %v6330_v24 = vpop.f32.mrf.mxu3 }
 0x4ea   : > { %7611 = vst.msk [vmem:[%s10503_s11 + $0x104] sm:$0xf] %vm1198_vm5, %v7547_v10  ;;  %v6403_v2 = vadd.f32 %v6330_v24, %v6037_v59 }
 0x4eb   : > { %v7154_v23 = vpop.f32.mrf.mxu0 }
 0x4ec   : > { %v7225_v44 = vadd.f32 %v7152_v19, %v6403_v2 }
 0x4ee   : > { %v7292_v3 = vadd.f32 %v11176_v28, %v7225_v44  ;;  %v5966_v11 = vpop.f32.mrf.mxu2 }
 0x4f0   : > { %v7484_v49 = vsel %vm1128_vm8, %v7292_v3, 0.0  ;;  %v5111_v21 = vpop.f32.mrf.mxu1 }
 0x4f1   : > { %v6332_v20 = vpop.f32.mrf.mxu3  ;;  %v7548_v55 = vpack.c.bf16 %v7484_v49, %v7484_v49  ;;  %v5181_v9 = vadd.f32 %v5111_v21, %v11346_v58 }
 0x4f3   : > { %v7157_v30 = vpop.f32.mrf.mxu0  ;;  %7612 = vst.msk [vmem:[%s10503_s11 + $0x108] sm:$0xf] %vm1198_vm5, %v7548_v55 }
 0x4f6   : > { %v5969_v34 = vpop.f32.mrf.mxu2 }
 0x4f7   : > { %v6039_v51 = vadd.f32 %v5969_v34, %v5181_v9 }
 0x4f8   : > { %v5113_v18 = vpop.f32.mrf.mxu1 }
 0x4f9   : > { %v6335_v60 = vpop.f32.mrf.mxu3  ;;  %v5182_v33 = vadd.f32 %v5113_v18, %v11347_v56 }
 0x4fa   : > { %v6405_v46 = vadd.f32 %v6335_v60, %v6039_v51 }
 0x4fb   : > { %v7159_v32 = vpop.f32.mrf.mxu0 }
 0x4fc   : > { %v7227_v45 = vadd.f32 %v7157_v30, %v6405_v46 }
 0x4fe   : > { %v7294_v50 = vadd.f32 %v11176_v28, %v7227_v45  ;;  %v5971_v48 = vpop.f32.mrf.mxu2 }
 0x4ff   : > { %v6040_v40 = vadd.f32 %v5971_v48, %v5182_v33 }
 0x500   : > { %v7486_v63 = vsel %vm1066_vm9, %v7294_v50, 0.0  ;;  %v5116_v6 = vpop.f32.mrf.mxu1 }
 0x501   : > { %v6337_v41 = vpop.f32.mrf.mxu3  ;;  %v7550_v27 = vpack.c.bf16 %v7486_v63, %v7486_v63  ;;  %v5183_v4 = vadd.f32 %v5116_v6, %v11348_v36 }
 0x502   : > { %v6406_v53 = vadd.f32 %v6337_v41, %v6040_v40 }
 0x503   : > { %v7162_v14 = vpop.f32.mrf.mxu0  ;;  %7614 = vst.msk [vmem:[%s10503_s11 + $0x110] sm:$0xf] %vm1198_vm5, %v7550_v27 }
 0x504   : > { %v7228_v61 = vadd.f32 %v7159_v32, %v6406_v53 }
 0x506   : > { %v7295_v5 = vadd.f32 %v11176_v28, %v7228_v61  ;;  %v5974_v42 = vpop.f32.mrf.mxu2 }
 0x507   : > { %v6041_v37 = vadd.f32 %v5974_v42, %v5183_v4 }
 0x508   : > { %v7551_v22 = vpack.c.bf16 %v7295_v5, %v7295_v5  ;;  %v5118_v54 = vpop.f32.mrf.mxu1 }
 0x509   : > { %v6340_v57 = vpop.f32.mrf.mxu3 }
 0x50a   : > { %7615 = vst.msk [vmem:[%s10503_s11 + $0x114] sm:$0xf] %vm1198_vm5, %v7551_v22  ;;  %v6407_v39 = vadd.f32 %v6340_v57, %v6041_v37 }
 0x50b   : > { %v7164_v0 = vpop.f32.mrf.mxu0 }
 0x50c   : > { %v7229_v38 = vadd.f32 %v7162_v14, %v6407_v39 }
 0x50e   : > { %v7296_v8 = vadd.f32 %v11176_v28, %v7229_v38  ;;  %v5976_v26 = vpop.f32.mrf.mxu2 }
 0x510   : > { %v7488_v31 = vsel %vm1132_vm10, %v7296_v8, 0.0 }
 0x511   : > { %v6342_v12 = vpop.f32.mrf.mxu3  ;;  %v7552_v19 = vpack.c.bf16 %v7488_v31, %v7488_v31 }
 0x513   : > { %7616 = vst.msk [vmem:[%s10503_s11 + $0x118] sm:$0xf] %vm1198_vm5, %v7552_v19 }
 0x514 PF: > { %s13_s12 = sadd.s32 1, %s9629_s12  }
 0x515   : > { %p10_p4 = scmp.ge.s32.totalorder %s13_s12, 4  }
 0x517   :  { %12 = sbr.rel (!%p10_p4) target bundleno = 1 (0x1), region = 70 }

</bundles_post_ra>
